<compile_context>
chip_gen: v7x
topology: tpu7x:2x2x1
jax: 0.10.0
libtpu: 0.0.40
codegen_flags: <defaults>
</compile_context>

<pallas_src>
import math

import jax
import jax.numpy as jnp
import numpy as np
from jax import lax
from jax.experimental import pallas as pl
from jax.experimental.pallas import tpu as pltpu

# ----------------------------- configuration -------------------------------
B = 2
N_VERT = 16          # num_of_vertices
NUM_OF_D = 1         # num_of_d == num_of_features == in_channels (first block)
T_STEPS = 12         # num_of_timesteps
K_CHEB = 3           # chebyshev order == SAt heads
C_FILT = 32          # nb_chev_filter == nb_time_filter
D_MODEL = 32
D_K = 8
D_V = 8
N_HEADS = 4          # TAt heads
EPS = 1e-5

HDK = N_HEADS * D_K                    # 32
HDV = N_HEADS * D_V                    # 32
KDK = K_CHEB * D_K                     # 24
TN = T_STEPS * N_VERT                  # 192

# ------------------------ packed-constant layouts ---------------------------
# P16 (width N): [fcT (HDV rows) | pos_T (T) | lnT_gamma | lnT_beta | pad]
P16_FCT, P16_POS = 0, HDV
P16_LNG, P16_LNB = HDV + T_STEPS, HDV + T_STEPS + 1
P16_ROWS = 48
# P32C: rows (width D_MODEL): [pos_S (N) | wpreT (T) | bpre | lnS_g | lnS_b | pad]
#       extra cols (per-channel vectors, C rows): [theta (K) | wres | bres | lnF_g | lnF_b]
P32_POSS, P32_WPRE = 0, N_VERT
P32_BPRE = N_VERT + T_STEPS
P32_LNSG, P32_LNSB = P32_BPRE + 1, P32_BPRE + 2
P32_ROWS = 32
P32_THETA = D_MODEL
P32_WRES, P32_BRES = P32_THETA + K_CHEB, P32_THETA + K_CHEB + 1
P32_LNFG, P32_LNFB = P32_THETA + K_CHEB + 2, P32_THETA + K_CHEB + 3
P32_COLS = P32_LNFB + 1
# P48 (width K*N): [W_Q_S|W_K_S (D_MODEL rows) | adj*mask (N rows) | cheb (N rows)]
P48_WQK, P48_ADJM, P48_CHEB = 0, D_MODEL, D_MODEL + N_VERT
P48_ROWS = D_MODEL + 2 * N_VERT
# GTUW (2C rows): [w3cat (3C) | w5cat (5C) | w7cat (7C) | b3 | b5 | b7]
GTUW_W3, GTUW_W5, GTUW_W7 = 0, 3 * C_FILT, 8 * C_FILT
GTUW_B = 15 * C_FILT
GTUW_COLS = GTUW_B + 3
# FCK (width T*N): [kron(wfc^T, I_N) ((3T-12)*N rows) | bfc repeated | pad]
FCK_W = 0
FCK_B = (3 * T_STEPS - 12) * N_VERT    # 384
FCK_ROWS = 392


def _ln_last(x, g, b):
    """LayerNorm over the last axis (works both in-kernel and in the reference)."""
    mu = jnp.mean(x, axis=-1, keepdims=True)
    var = jnp.mean(jnp.square(x - mu), axis=-1, keepdims=True)
    return (x - mu) * lax.rsqrt(var + EPS) * g + b


def _flatten_rows(a):
    """Row-major flatten (R, L) -> (1, R*L) using only static slices + concat."""
    return jnp.concatenate([a[i:i + 1, :] for i in range(a.shape[0])], axis=1)


# ------------------------------ fused kernel --------------------------------
def _dstagnn_fused_kernel(x_ref, xf_ref, ra_ref, p16_ref, wqkv_ref, p32_ref,
                          p48_ref, gtuw_ref, fck_ref, out_ref, sc_ref):
    f32 = jnp.float32
    T, N = T_STEPS, N_VERT
    H, dk, dv = N_HEADS, D_K, D_V
    K, C = K_CHEB, C_FILT
    inv_sqrt_dk = 1.0 / math.sqrt(dk)

    x_t = x_ref[0]                                               # (T, N)

    # ---- EmbedT + temporal multi-head attention (packed QKV, no broadcasts)
    temx = _ln_last(x_t + p16_ref[P16_POS:P16_POS + T, :],
                    p16_ref[P16_LNG:P16_LNG + 1, :],
                    p16_ref[P16_LNB:P16_LNB + 1, :])             # (T, N)
    qkv = jnp.dot(temx, wqkv_ref[...], preferred_element_type=f32)   # (T, 3*H*dk)
    ctx_heads = []
    for h in range(H):
        q_h = qkv[:, h * dk:(h + 1) * dk]
        k_h = qkv[:, HDK + h * dk:HDK + (h + 1) * dk]
        v_h = qkv[:, 2 * HDK + h * dv:2 * HDK + (h + 1) * dv]
        s_h = lax.dot_general(q_h, k_h, (((1,), (1,)), ((), ())),
                              preferred_element_type=f32) * inv_sqrt_dk
        s_h = s_h + ra_ref[0, h]
        sc_ref[0, h] = s_h
        # DSTAGNN quirk: F.softmax(scores, dim=3) == softmax over the QUERY axis.
        m_h = jnp.max(s_h, axis=0, keepdims=True)
        e_h = jnp.exp(s_h - m_h)
        a_h = e_h * pl.reciprocal(jnp.sum(e_h, axis=0, keepdims=True), approx=True)
        ctx_heads.append(jnp.dot(a_h, v_h, preferred_element_type=f32))
    ctx = jnp.concatenate(ctx_heads, axis=1)                     # (T, H*dv)
    fcT = p16_ref[P16_FCT:P16_FCT + HDV, :]                      # (H*dv, N)
    tat = _ln_last(jnp.dot(ctx, fcT, preferred_element_type=f32) + temx, 1.0, 0.0)

    # ---- pre_conv (1x1, as matmul) + EmbedS + spatial attention scores ----
    x_tat = lax.dot_general(tat, p32_ref[P32_WPRE:P32_WPRE + T, 0:D_MODEL],
                            (((0,), (0,)), ((), ())),
                            preferred_element_type=f32) \
        + p32_ref[P32_BPRE:P32_BPRE + 1, 0:D_MODEL]              # (N, d_model)
    # TODO(synk): EmbedS dropout(p=0.05) implemented as eval-mode identity.
    semx = _ln_last(x_tat + p32_ref[P32_POSS:P32_POSS + N, 0:D_MODEL],
                    p32_ref[P32_LNSG:P32_LNSG + 1, 0:D_MODEL],
                    p32_ref[P32_LNSB:P32_LNSB + 1, 0:D_MODEL])   # (N, d_model)
    qks = jnp.dot(semx, p48_ref[P48_WQK:P48_WQK + D_MODEL, :],
                  preferred_element_type=f32)                    # (N, 2*K*dk)

    # ---- chebyshev graph conv with spatial attention, t-major flat layout --
    theta = p32_ref[:, P32_THETA:P32_THETA + K]                  # (C, K)
    gcn = jnp.zeros((C, TN), f32)
    for k in range(K):
        q_k = qks[:, k * dk:(k + 1) * dk]
        k_k = qks[:, KDK + k * dk:KDK + (k + 1) * dk]
        stat_k = lax.dot_general(q_k, k_k, (((1,), (1,)), ((), ())),
                                 preferred_element_type=f32) * inv_sqrt_dk
        spa = stat_k + p48_ref[P48_ADJM:P48_ADJM + N, k * N:(k + 1) * N]
        m_s = jnp.max(spa, axis=0, keepdims=True)                # softmax over source vertex
        e_s = jnp.exp(spa - m_s)
        spa = e_s * pl.reciprocal(jnp.sum(e_s, axis=0, keepdims=True), approx=True)
        tk_at = p48_ref[P48_CHEB:P48_CHEB + N, k * N:(k + 1) * N] * spa
        r_k = jnp.dot(x_t, tk_at, preferred_element_type=f32)    # (T, N) == rhs_k^T
        gcn = gcn + theta[:, k:k + 1] * _flatten_rows(r_k)       # rank-1 update
    gcn = jnp.maximum(gcn, 0.0)                                  # (C, T*N), lane-dense

    # ---- GTU(3,5,7): one lane-dense matmul per branch ---------------------
    gates = []
    for bi, (ksz, col0) in enumerate(((3, GTUW_W3), (5, GTUW_W5), (7, GTUW_W7))):
        tout = T - ksz + 1
        x_cat = jnp.concatenate(
            [gcn[:, dt * N:(dt + tout) * N] for dt in range(ksz)], axis=0)
        acc = (jnp.dot(gtuw_ref[:, col0:col0 + ksz * C], x_cat,
                       preferred_element_type=f32)
               + gtuw_ref[:, GTUW_B + bi:GTUW_B + bi + 1])       # (2C, tout*N)
        gates.append(jnp.tanh(acc[:C, :]) * jax.nn.sigmoid(acc[C:, :]))
    gate_all = jnp.concatenate(gates, axis=1)                    # (C, (3T-12)*N)

    # ---- fcmy (Linear(3T-12 -> T) per vertex) as ONE matmul (kron weight) --
    tc = (jnp.dot(gate_all, fck_ref[FCK_W:FCK_B, :], preferred_element_type=f32)
          + fck_ref[FCK_B:FCK_B + 1, :])                         # (C, T*N)
    # TODO(synk): fcmy's Dropout(0.05) implemented as eval-mode identity.
    tco = jnp.maximum(tc, 0.0)

    # ---- residual 1x1 conv + relu + LayerNorm over channels ---------------
    x_flat = xf_ref[0]                                           # (1, T*N), t-major
    wres = p32_ref[:, P32_WRES:P32_WRES + 1]
    bres = p32_ref[:, P32_BRES:P32_BRES + 1]
    z = jnp.maximum(wres * x_flat + bres + tco, 0.0)             # (C, T*N)
    mu = jnp.mean(z, axis=0, keepdims=True)
    var = jnp.mean(jnp.square(z - mu), axis=0, keepdims=True)
    out_ref[0] = ((z - mu) * lax.rsqrt(var + EPS)
                  * p32_ref[:, P32_LNFG:P32_LNFG + 1]
                  + p32_ref[:, P32_LNFB:P32_LNFB + 1])


# --------------------------------- wrapper ----------------------------------
def dstagnn_block_forward(x, res_att, p):
    Bsz = x.shape[0]
    N, T, K, C = N_VERT, T_STEPS, K_CHEB, C_FILT
    f32 = jnp.float32

    # layout glue (tiny XLA ops, outside the kernel)
    x_tn = jnp.transpose(x[:, :, 0, :], (0, 2, 1))               # (B, T, N)
    x_flat = x_tn.reshape(Bsz, 1, TN)                            # t-major flatten
    res_sq = res_att[:, 0]                                       # (B, H, T, T)

    # ---- packed constant blocks --------------------------------------------
    p16 = jnp.concatenate(
        [p["fcT_T"], p["pos_T"], p["lnT_g"], p["lnT_b"],
         jnp.zeros((P16_ROWS - (HDV + T + 2), N), f32)], axis=0)            # (48, 16)
    wqkv = jnp.concatenate([p["WQ_T"], p["WK_T"], p["WV_T"]], axis=1)       # (16, 96)
    p32_main = jnp.concatenate(
        [p["pos_S"], p["wpreT"], p["bpre"], p["lnS_g"], p["lnS_b"],
         jnp.zeros((P32_ROWS - (N + T + 3), D_MODEL), f32)], axis=0)        # (32, 32)
    chan = jnp.concatenate(
        [p["Theta"][:, 0, :].T, p["wres"], p["bres"], p["lnF_g"], p["lnF_b"]],
        axis=1)                                                             # (32, 7)
    p32c = jnp.concatenate([p32_main, chan], axis=1)                        # (32, 39)
    wqk_s = jnp.concatenate([p["WQ_S"], p["WK_S"]], axis=1)                 # (32, 48)
    adjm = jnp.concatenate([p["adj_pa"] * p["mask"][k] for k in range(K)], axis=1)
    chebh = jnp.concatenate([p["cheb"][k] for k in range(K)], axis=1)
    p48 = jnp.concatenate([wqk_s, adjm, chebh], axis=0)                     # (64, 48)

    def wcat(w):   # conv weight (2C, C, ksz) -> (2C, ksz*C), columns (dt, c)
        return jnp.transpose(w, (0, 2, 1)).reshape(2 * C, -1)
    gtuw = jnp.concatenate(
        [wcat(p["w3"]), wcat(p["w5"]), wcat(p["w7"]),
         p["b3"], p["b5"], p["b7"]], axis=1)                                # (64, 483)

    wfck = jnp.kron(p["wfc"].T, jnp.eye(N, dtype=f32))                      # (384, 192)
    bfc_flat = jnp.repeat(p["bfc"], N)[None, :]                             # (1, 192)
    fck = jnp.concatenate([wfck, bfc_flat,
                           jnp.zeros((FCK_ROWS - FCK_B - 1, TN), f32)], axis=0)

    def shared(shape):
        nd = len(shape)
        return pl.BlockSpec(shape, lambda b, nd=nd: (0,) * nd)

    def batched(shape):
        nd = len(shape)
        return pl.BlockSpec((1,) + shape, lambda b, nd=nd: (b,) + (0,) * nd)

    out, scores = pl.pallas_call(
        _dstagnn_fused_kernel,
        out_shape=(jax.ShapeDtypeStruct((Bsz, C, TN), f32),
                   jax.ShapeDtypeStruct((Bsz, N_HEADS, T, T), f32)),
        grid=(Bsz,),
        in_specs=[
            batched((T, N)), batched((1, TN)), batched((N_HEADS, T, T)),
            shared((P16_ROWS, N)), shared((N, 2 * HDK + HDV)),
            shared((P32_ROWS, P32_COLS)), shared((P48_ROWS, K * N)),
            shared((2 * C, GTUW_COLS)), shared((FCK_ROWS, TN)),
        ],
        out_specs=(batched((C, TN)), batched((N_HEADS, T, T))),
        compiler_params=pltpu.CompilerParams(
            dimension_semantics=("parallel",)),
    )(x_tn, x_flat, res_sq, p16, wqkv, p32c, p48, gtuw, fck)

    x_residual = out.reshape(Bsz, C, T, N).transpose(0, 3, 1, 2)  # (B, N, C, T)
    return x_residual, scores[:, None]                            # (B,1,H,T,T)


# ------------------------- deterministic parameters -------------------------
def init_params(key):
    ks = jax.random.split(key, 24)

    def unif(k, shape, fan_in):
        s = 1.0 / math.sqrt(fan_in)
        return jax.random.uniform(k, shape, jnp.float32, -s, s)

    N, T, H, dk, dv = N_VERT, T_STEPS, N_HEADS, D_K, D_V
    K, C, dm, F = K_CHEB, C_FILT, D_MODEL, NUM_OF_D
    p = {}
    p["pos_T"] = jax.random.normal(ks[0], (T, N), jnp.float32)
    p["lnT_g"] = jnp.ones((1, N), jnp.float32)
    p["lnT_b"] = jnp.zeros((1, N), jnp.float32)
    p["WQ_T"] = unif(ks[1], (N, H * dk), N)
    p["WK_T"] = unif(ks[2], (N, H * dk), N)
    p["WV_T"] = unif(ks[3], (N, H * dv), N)
    p["fcT_T"] = unif(ks[4], (H * dv, N), H * dv)
    p["wpreT"] = unif(ks[5], (T, dm), T * F)              # pre_conv weight (transposed)
    p["bpre"] = unif(ks[6], (1, dm), T * F)
    p["pos_S"] = jax.random.normal(ks[7], (N, dm), jnp.float32)
    p["lnS_g"] = jnp.ones((1, dm), jnp.float32)
    p["lnS_b"] = jnp.zeros((1, dm), jnp.float32)
    p["WQ_S"] = unif(ks[8], (dm, K * dk), dm)
    p["WK_S"] = unif(ks[9], (dm, K * dk), dm)

    # chebyshev polynomials of a deterministic random graph laplacian
    a = jax.random.uniform(ks[10], (N, N), jnp.float32)
    a = 0.5 * (a + a.T) * (1.0 - jnp.eye(N))
    dinv = jnp.diag(1.0 / jnp.sqrt(jnp.sum(a, axis=1) + 1e-6))
    lap = jnp.eye(N) - dinv @ a @ dinv
    lt = lap - jnp.eye(N)                                  # lambda_max ~= 2
    chebs = [jnp.eye(N), lt]
    for _ in range(2, K):
        chebs.append(2.0 * lt @ chebs[-1] - chebs[-2])
    p["cheb"] = jnp.stack(chebs[:K]).astype(jnp.float32)
    p["adj_pa"] = jax.random.uniform(ks[11], (N, N), jnp.float32)
    p["mask"] = 0.1 * jax.random.normal(ks[12], (K, N, N), jnp.float32)
    p["Theta"] = unif(ks[13], (K, F, C), F)

    p["w3"] = unif(ks[14], (2 * C, C, 3), C * 3)
    p["b3"] = unif(ks[15], (2 * C, 1), C * 3)
    p["w5"] = unif(ks[16], (2 * C, C, 5), C * 5)
    p["b5"] = unif(ks[17], (2 * C, 1), C * 5)
    p["w7"] = unif(ks[18], (2 * C, C, 7), C * 7)
    p["b7"] = unif(ks[19], (2 * C, 1), C * 7)
    p["wfc"] = unif(ks[20], (T, 3 * T - 12), 3 * T - 12)
    p["bfc"] = unif(ks[21], (T,), 3 * T - 12)
    p["wres"] = unif(ks[22], (C, 1), 1)
    p["bres"] = unif(ks[23], (C, 1), 1)
    p["lnF_g"] = jnp.ones((C, 1), jnp.float32)
    p["lnF_b"] = jnp.zeros((C, 1), jnp.float32)
    return p


# ----------------------------- pure-JAX reference ----------------------------
def reference_forward(x, res_att, p):
    Bsz, N, F, T = x.shape
    H, dk, dv, K, C = N_HEADS, D_K, D_V, K_CHEB, C_FILT
    xperm = jnp.transpose(x, (0, 2, 3, 1))                               # (B,F,T,N)
    temx = _ln_last(xperm + p["pos_T"][None, None], p["lnT_g"][0], p["lnT_b"][0])
    q = (temx @ p["WQ_T"]).reshape(Bsz, F, T, H, dk).transpose(0, 1, 3, 2, 4)
    k = (temx @ p["WK_T"]).reshape(Bsz, F, T, H, dk).transpose(0, 1, 3, 2, 4)
    v = (temx @ p["WV_T"]).reshape(Bsz, F, T, H, dv).transpose(0, 1, 3, 2, 4)
    scores = jnp.einsum("bfhtd,bfhsd->bfhts", q, k) / math.sqrt(dk) + res_att
    attn = jax.nn.softmax(scores, axis=3)
    ctx = jnp.einsum("bfhts,bfhsd->bfhtd", attn, v)
    ctx = ctx.transpose(0, 1, 3, 2, 4).reshape(Bsz, F, T, H * dv)
    tat = _ln_last(ctx @ p["fcT_T"] + temx, 1.0, 0.0)
    x_tat = jnp.einsum("btn,tm->bnm", tat[:, 0], p["wpreT"]) + p["bpre"][0]
    semx = _ln_last(x_tat + p["pos_S"][None], p["lnS_g"][0], p["lnS_b"][0])
    qs = (semx @ p["WQ_S"]).reshape(Bsz, N, K, dk).transpose(0, 2, 1, 3)
    ks_ = (semx @ p["WK_S"]).reshape(Bsz, N, K, dk).transpose(0, 2, 1, 3)
    stat = jnp.einsum("bknd,bkmd->bknm", qs, ks_) / math.sqrt(dk)
    outs = []
    for t in range(T):
        gs = x[:, :, :, t]
        out_t = jnp.zeros((Bsz, N, C), jnp.float32)
        for kk in range(K):
            spa = stat[:, kk] + p["adj_pa"][None] * p["mask"][kk][None]
            spa = jax.nn.softmax(spa, axis=1)
            tk_at = p["cheb"][kk][None] * spa
            rhs = jnp.einsum("bij,bif->bjf", tk_at, gs)
            out_t = out_t + jnp.einsum("bjf,fc->bjc", rhs, p["Theta"][kk])
        outs.append(out_t[..., None])
    spatial_gcn = jax.nn.relu(jnp.concatenate(outs, axis=-1))            # (B,N,C,T)
    X = jnp.transpose(spatial_gcn, (0, 2, 1, 3))                         # (B,C,N,T)

    def gtu(w, b, ksize):
        Tout = T - ksize + 1
        acc = jnp.zeros((Bsz, 2 * C, N, Tout), jnp.float32) + b[:, 0][None, :, None, None]
        for dt in range(ksize):
            acc = acc + jnp.einsum("oc,bcnt->bont", w[:, :, dt], X[:, :, :, dt:dt + Tout])
        return jnp.tanh(acc[:, :C]) * jax.nn.sigmoid(acc[:, C:])

    cat = jnp.concatenate([gtu(p["w3"], p["b3"], 3),
                           gtu(p["w5"], p["b5"], 5),
                           gtu(p["w7"], p["b7"], 7)], axis=-1)
    tc = jnp.einsum("bcnj,tj->bcnt", cat, p["wfc"]) + p["bfc"][None, None, None, :]
    tco = jax.nn.relu(tc)
    xres = (p["wres"][:, 0][None, :, None, None] * x[:, :, 0, :][:, None]
            + p["bres"][:, 0][None, :, None, None])
    z = jax.nn.relu(xres + tco)
    zn = _ln_last(jnp.transpose(z, (0, 3, 2, 1)), p["lnF_g"][:, 0], p["lnF_b"][:, 0])
    x_residual = jnp.transpose(zn, (0, 2, 3, 1))
    return x_residual, scores


# ----------------------------------- main ------------------------------------
if __name__ == "__main__":
    key = jax.random.PRNGKey(0)
    kx, kr, kp = jax.random.split(key, 3)
    params = init_params(kp)
    x = jax.random.normal(kx, (B, N_VERT, NUM_OF_D, T_STEPS), jnp.float32)
    res_att = 0.1 * jax.random.normal(
        kr, (B, NUM_OF_D, N_HEADS, T_STEPS, T_STEPS), jnp.float32)

    fwd = jax.jit(dstagnn_block_forward)
    x_residual, re_at = fwd(x, res_att, params)
    jax.block_until_ready((x_residual, re_at))

    assert x_residual.shape == (B, N_VERT, C_FILT, T_STEPS)
    assert re_at.shape == (B, NUM_OF_D, N_HEADS, T_STEPS, T_STEPS)

    ref_out, ref_att = reference_forward(x, res_att, params)
    out_np, att_np = np.asarray(x_residual), np.asarray(re_at)
    ref_out_np, ref_att_np = np.asarray(ref_out), np.asarray(ref_att)
    assert np.isfinite(out_np).all() and np.isfinite(att_np).all()
    if not (np.allclose(out_np, ref_out_np, rtol=5e-2, atol=5e-2)
            and np.allclose(att_np, ref_att_np, rtol=5e-2, atol=5e-2)):
        raise SystemExit(
            "mismatch vs reference: max|d_out|=%g max|d_att|=%g"
            % (np.abs(out_np - ref_out_np).max(), np.abs(att_np - ref_att_np).max()))
    print("KERNEL_OK")
</pallas_src>

<mosaic_0001>
module attributes {stable_mosaic.version = 11 : i64} {
  func.func @_dstagnn_fused_kernel(%arg0: i32, %arg1: memref<1x12x16xf32, #tpu.memory_space<vmem>>, %arg2: memref<1x1x192xf32, #tpu.memory_space<vmem>>, %arg3: memref<1x4x12x12xf32, #tpu.memory_space<vmem>>, %arg4: memref<48x16xf32, #tpu.memory_space<vmem>>, %arg5: memref<16x96xf32, #tpu.memory_space<vmem>>, %arg6: memref<32x39xf32, #tpu.memory_space<vmem>>, %arg7: memref<64x48xf32, #tpu.memory_space<vmem>>, %arg8: memref<64x483xf32, #tpu.memory_space<vmem>>, %arg9: memref<392x192xf32, #tpu.memory_space<vmem>>, %arg10: memref<1x32x192xf32, #tpu.memory_space<vmem>>, %arg11: memref<1x4x12x12xf32, #tpu.memory_space<vmem>>) attributes {dimension_semantics = [#tpu.dimension_semantics<parallel>], iteration_bounds = array<i64: 2>, scalar_prefetch = 0 : i64, scratch_operands = 0 : i64, tpu.core_type = #tpu.core_type<tc>, window_params = [{transform_indices = @transform_0, window_bounds = array<i64: 1, 12, 16>}, {transform_indices = @transform_1, window_bounds = array<i64: 1, 1, 192>}, {transform_indices = @transform_2, window_bounds = array<i64: 1, 4, 12, 12>}, {pipeline_mode = #tpu.pipeline_mode<synchronous>, transform_indices = @transform_3, window_bounds = array<i64: 48, 16>}, {pipeline_mode = #tpu.pipeline_mode<synchronous>, transform_indices = @transform_4, window_bounds = array<i64: 16, 96>}, {pipeline_mode = #tpu.pipeline_mode<synchronous>, transform_indices = @transform_5, window_bounds = array<i64: 32, 39>}, {pipeline_mode = #tpu.pipeline_mode<synchronous>, transform_indices = @transform_6, window_bounds = array<i64: 64, 48>}, {pipeline_mode = #tpu.pipeline_mode<synchronous>, transform_indices = @transform_7, window_bounds = array<i64: 64, 483>}, {pipeline_mode = #tpu.pipeline_mode<synchronous>, transform_indices = @transform_8, window_bounds = array<i64: 392, 192>}, {transform_indices = @transform_9, window_bounds = array<i64: 1, 32, 192>}, {transform_indices = @transform_10, window_bounds = array<i64: 1, 4, 12, 12>}]} {
    %c0 = arith.constant 0 : index
    %c0_0 = arith.constant 0 : index
    %c0_1 = arith.constant 0 : index
    %0 = vector.load %arg1[%c0, %c0_0, %c0_1] : memref<1x12x16xf32, #tpu.memory_space<vmem>>, vector<1x12x16xf32>
    %1 = vector.shape_cast %0 : vector<1x12x16xf32> to vector<12x16xf32>
    %c32 = arith.constant 32 : index
    %c0_2 = arith.constant 0 : index
    %2 = vector.load %arg4[%c32, %c0_2] : memref<48x16xf32, #tpu.memory_space<vmem>>, vector<12x16xf32>
    %3 = arith.addf %1, %2 : vector<12x16xf32>
    %c44 = arith.constant 44 : index
    %c0_3 = arith.constant 0 : index
    %4 = vector.load %arg4[%c44, %c0_3] : memref<48x16xf32, #tpu.memory_space<vmem>>, vector<1x16xf32>
    %c45 = arith.constant 45 : index
    %c0_4 = arith.constant 0 : index
    %5 = vector.load %arg4[%c45, %c0_4] : memref<48x16xf32, #tpu.memory_space<vmem>>, vector<1x16xf32>
    %cst = arith.constant dense<0.000000e+00> : vector<12xf32>
    %6 = vector.multi_reduction <add>, %3, %cst [1] : vector<12x16xf32> to vector<12xf32>
    %7 = vector.shape_cast %6 : vector<12xf32> to vector<12x1xf32>
    %cst_5 = arith.constant 1.600000e+01 : f32
    %8 = vector.broadcast %cst_5 : f32 to vector<12x1xf32>
    %9 = arith.divf %7, %8 : vector<12x1xf32>
    %10 = vector.broadcast %9 : vector<12x1xf32> to vector<12x16xf32>
    %11 = arith.subf %3, %10 : vector<12x16xf32>
    %12 = arith.mulf %11, %11 : vector<12x16xf32>
    %cst_6 = arith.constant dense<0.000000e+00> : vector<12xf32>
    %13 = vector.multi_reduction <add>, %12, %cst_6 [1] : vector<12x16xf32> to vector<12xf32>
    %14 = vector.shape_cast %13 : vector<12xf32> to vector<12x1xf32>
    %cst_7 = arith.constant 1.600000e+01 : f32
    %15 = vector.broadcast %cst_7 : f32 to vector<12x1xf32>
    %16 = arith.divf %14, %15 : vector<12x1xf32>
    %17 = vector.broadcast %9 : vector<12x1xf32> to vector<12x16xf32>
    %18 = arith.subf %3, %17 : vector<12x16xf32>
    %cst_8 = arith.constant 9.99999974E-6 : f32
    %19 = vector.broadcast %cst_8 : f32 to vector<12x1xf32>
    %20 = arith.addf %16, %19 : vector<12x1xf32>
    %21 = math.rsqrt %20 : vector<12x1xf32>
    %22 = vector.broadcast %21 : vector<12x1xf32> to vector<12x16xf32>
    %23 = arith.mulf %18, %22 : vector<12x16xf32>
    %24 = vector.broadcast %4 : vector<1x16xf32> to vector<12x16xf32>
    %25 = arith.mulf %23, %24 : vector<12x16xf32>
    %26 = vector.broadcast %5 : vector<1x16xf32> to vector<12x16xf32>
    %27 = arith.addf %25, %26 : vector<12x16xf32>
    %c0_9 = arith.constant 0 : index
    %c0_10 = arith.constant 0 : index
    %28 = vector.load %arg5[%c0_9, %c0_10] : memref<16x96xf32, #tpu.memory_space<vmem>>, vector<16x96xf32>
    %cst_11 = arith.constant dense<0.000000e+00> : vector<12x96xf32>
    %29 = tpu.matmul %27, %28, %cst_11 {dimension_numbers = #tpu.dot_dimension_numbers<[1], [0], [0], [1], [0, 0, 1, 1], [], []>} : vector<12x16xf32>, vector<16x96xf32>, vector<12x96xf32> -> vector<12x96xf32>
    %30 = vector.extract_strided_slice %29 {offsets = [0, 0], sizes = [12, 8], strides = [1, 1]} : vector<12x96xf32> to vector<12x8xf32>
    %31 = vector.extract_strided_slice %29 {offsets = [0, 32], sizes = [12, 8], strides = [1, 1]} : vector<12x96xf32> to vector<12x8xf32>
    %32 = vector.extract_strided_slice %29 {offsets = [0, 64], sizes = [12, 8], strides = [1, 1]} : vector<12x96xf32> to vector<12x8xf32>
    %cst_12 = arith.constant dense<0.000000e+00> : vector<12x12xf32>
    %33 = tpu.matmul %30, %31, %cst_12 {dimension_numbers = #tpu.dot_dimension_numbers<[1], [1], [0], [0], [0, 0, 1, 0], [], []>} : vector<12x8xf32>, vector<12x8xf32>, vector<12x12xf32> -> vector<12x12xf32>
    %cst_13 = arith.constant 0.353553385 : f32
    %34 = vector.broadcast %cst_13 : f32 to vector<12x12xf32>
    %35 = arith.mulf %33, %34 : vector<12x12xf32>
    %c0_14 = arith.constant 0 : index
    %c0_15 = arith.constant 0 : index
    %c0_16 = arith.constant 0 : index
    %c0_17 = arith.constant 0 : index
    %36 = vector.load %arg3[%c0_14, %c0_15, %c0_16, %c0_17] : memref<1x4x12x12xf32, #tpu.memory_space<vmem>>, vector<1x1x12x12xf32>
    %37 = vector.shape_cast %36 : vector<1x1x12x12xf32> to vector<12x12xf32>
    %38 = arith.addf %35, %37 : vector<12x12xf32>
    %c0_18 = arith.constant 0 : index
    %c0_19 = arith.constant 0 : index
    %c0_20 = arith.constant 0 : index
    %c0_21 = arith.constant 0 : index
    %39 = vector.load %arg11[%c0_18, %c0_19, %c0_20, %c0_21] : memref<1x4x12x12xf32, #tpu.memory_space<vmem>>, vector<1x1x12x12xf32>
    %40 = vector.shape_cast %39 : vector<1x1x12x12xf32> to vector<12x12xf32>
    %41 = vector.shape_cast %38 : vector<12x12xf32> to vector<1x1x12x12xf32>
    tpu.vector_store %arg11[%c0_18, %c0_19, %c0_20, %c0_21], %41 {strides = array<i32>} : memref<1x4x12x12xf32, #tpu.memory_space<vmem>>, vector<1x1x12x12xf32>,
    %cst_22 = arith.constant dense<0xFF800000> : vector<12xf32>
    %42 = vector.multi_reduction <maximumf>, %38, %cst_22 [0] : vector<12x12xf32> to vector<12xf32>
    %43 = vector.shape_cast %42 : vector<12xf32> to vector<1x12xf32>
    %44 = vector.broadcast %43 : vector<1x12xf32> to vector<12x12xf32>
    %45 = arith.subf %38, %44 : vector<12x12xf32>
    %46 = math.exp %45 : vector<12x12xf32>
    %cst_23 = arith.constant dense<0.000000e+00> : vector<12xf32>
    %47 = vector.multi_reduction <add>, %46, %cst_23 [0] : vector<12x12xf32> to vector<12xf32>
    %48 = vector.shape_cast %47 : vector<12xf32> to vector<1x12xf32>
    %49 = tpu.reciprocal %48 {approx = true} : vector<1x12xf32> -> vector<1x12xf32>
    %50 = vector.broadcast %49 : vector<1x12xf32> to vector<12x12xf32>
    %51 = arith.mulf %46, %50 : vector<12x12xf32>
    %cst_24 = arith.constant dense<0.000000e+00> : vector<12x8xf32>
    %52 = tpu.matmul %51, %32, %cst_24 {dimension_numbers = #tpu.dot_dimension_numbers<[1], [0], [0], [1], [0, 0, 1, 1], [], []>} : vector<12x12xf32>, vector<12x8xf32>, vector<12x8xf32> -> vector<12x8xf32>
    %53 = vector.extract_strided_slice %29 {offsets = [0, 8], sizes = [12, 8], strides = [1, 1]} : vector<12x96xf32> to vector<12x8xf32>
    %54 = vector.extract_strided_slice %29 {offsets = [0, 40], sizes = [12, 8], strides = [1, 1]} : vector<12x96xf32> to vector<12x8xf32>
    %55 = vector.extract_strided_slice %29 {offsets = [0, 72], sizes = [12, 8], strides = [1, 1]} : vector<12x96xf32> to vector<12x8xf32>
    %cst_25 = arith.constant dense<0.000000e+00> : vector<12x12xf32>
    %56 = tpu.matmul %53, %54, %cst_25 {dimension_numbers = #tpu.dot_dimension_numbers<[1], [1], [0], [0], [0, 0, 1, 0], [], []>} : vector<12x8xf32>, vector<12x8xf32>, vector<12x12xf32> -> vector<12x12xf32>
    %cst_26 = arith.constant 0.353553385 : f32
    %57 = vector.broadcast %cst_26 : f32 to vector<12x12xf32>
    %58 = arith.mulf %56, %57 : vector<12x12xf32>
    %c0_27 = arith.constant 0 : index
    %c1 = arith.constant 1 : index
    %c0_28 = arith.constant 0 : index
    %c0_29 = arith.constant 0 : index
    %59 = vector.load %arg3[%c0_27, %c1, %c0_28, %c0_29] : memref<1x4x12x12xf32, #tpu.memory_space<vmem>>, vector<1x1x12x12xf32>
    %60 = vector.shape_cast %59 : vector<1x1x12x12xf32> to vector<12x12xf32>
    %61 = arith.addf %58, %60 : vector<12x12xf32>
    %c0_30 = arith.constant 0 : index
    %c1_31 = arith.constant 1 : index
    %c0_32 = arith.constant 0 : index
    %c0_33 = arith.constant 0 : index
    %62 = vector.load %arg11[%c0_30, %c1_31, %c0_32, %c0_33] : memref<1x4x12x12xf32, #tpu.memory_space<vmem>>, vector<1x1x12x12xf32>
    %63 = vector.shape_cast %62 : vector<1x1x12x12xf32> to vector<12x12xf32>
    %64 = vector.shape_cast %61 : vector<12x12xf32> to vector<1x1x12x12xf32>
    tpu.vector_store %arg11[%c0_30, %c1_31, %c0_32, %c0_33], %64 {strides = array<i32>} : memref<1x4x12x12xf32, #tpu.memory_space<vmem>>, vector<1x1x12x12xf32>,
    %cst_34 = arith.constant dense<0xFF800000> : vector<12xf32>
    %65 = vector.multi_reduction <maximumf>, %61, %cst_34 [0] : vector<12x12xf32> to vector<12xf32>
    %66 = vector.shape_cast %65 : vector<12xf32> to vector<1x12xf32>
    %67 = vector.broadcast %66 : vector<1x12xf32> to vector<12x12xf32>
    %68 = arith.subf %61, %67 : vector<12x12xf32>
    %69 = math.exp %68 : vector<12x12xf32>
    %cst_35 = arith.constant dense<0.000000e+00> : vector<12xf32>
    %70 = vector.multi_reduction <add>, %69, %cst_35 [0] : vector<12x12xf32> to vector<12xf32>
    %71 = vector.shape_cast %70 : vector<12xf32> to vector<1x12xf32>
    %72 = tpu.reciprocal %71 {approx = true} : vector<1x12xf32> -> vector<1x12xf32>
    %73 = vector.broadcast %72 : vector<1x12xf32> to vector<12x12xf32>
    %74 = arith.mulf %69, %73 : vector<12x12xf32>
    %cst_36 = arith.constant dense<0.000000e+00> : vector<12x8xf32>
    %75 = tpu.matmul %74, %55, %cst_36 {dimension_numbers = #tpu.dot_dimension_numbers<[1], [0], [0], [1], [0, 0, 1, 1], [], []>} : vector<12x12xf32>, vector<12x8xf32>, vector<12x8xf32> -> vector<12x8xf32>
    %76 = vector.extract_strided_slice %29 {offsets = [0, 16], sizes = [12, 8], strides = [1, 1]} : vector<12x96xf32> to vector<12x8xf32>
    %77 = vector.extract_strided_slice %29 {offsets = [0, 48], sizes = [12, 8], strides = [1, 1]} : vector<12x96xf32> to vector<12x8xf32>
    %78 = vector.extract_strided_slice %29 {offsets = [0, 80], sizes = [12, 8], strides = [1, 1]} : vector<12x96xf32> to vector<12x8xf32>
    %cst_37 = arith.constant dense<0.000000e+00> : vector<12x12xf32>
    %79 = tpu.matmul %76, %77, %cst_37 {dimension_numbers = #tpu.dot_dimension_numbers<[1], [1], [0], [0], [0, 0, 1, 0], [], []>} : vector<12x8xf32>, vector<12x8xf32>, vector<12x12xf32> -> vector<12x12xf32>
    %cst_38 = arith.constant 0.353553385 : f32
    %80 = vector.broadcast %cst_38 : f32 to vector<12x12xf32>
    %81 = arith.mulf %79, %80 : vector<12x12xf32>
    %c0_39 = arith.constant 0 : index
    %c2 = arith.constant 2 : index
    %c0_40 = arith.constant 0 : index
    %c0_41 = arith.constant 0 : index
    %82 = vector.load %arg3[%c0_39, %c2, %c0_40, %c0_41] : memref<1x4x12x12xf32, #tpu.memory_space<vmem>>, vector<1x1x12x12xf32>
    %83 = vector.shape_cast %82 : vector<1x1x12x12xf32> to vector<12x12xf32>
    %84 = arith.addf %81, %83 : vector<12x12xf32>
    %c0_42 = arith.constant 0 : index
    %c2_43 = arith.constant 2 : index
    %c0_44 = arith.constant 0 : index
    %c0_45 = arith.constant 0 : index
    %85 = vector.load %arg11[%c0_42, %c2_43, %c0_44, %c0_45] : memref<1x4x12x12xf32, #tpu.memory_space<vmem>>, vector<1x1x12x12xf32>
    %86 = vector.shape_cast %85 : vector<1x1x12x12xf32> to vector<12x12xf32>
    %87 = vector.shape_cast %84 : vector<12x12xf32> to vector<1x1x12x12xf32>
    tpu.vector_store %arg11[%c0_42, %c2_43, %c0_44, %c0_45], %87 {strides = array<i32>} : memref<1x4x12x12xf32, #tpu.memory_space<vmem>>, vector<1x1x12x12xf32>,
    %cst_46 = arith.constant dense<0xFF800000> : vector<12xf32>
    %88 = vector.multi_reduction <maximumf>, %84, %cst_46 [0] : vector<12x12xf32> to vector<12xf32>
    %89 = vector.shape_cast %88 : vector<12xf32> to vector<1x12xf32>
    %90 = vector.broadcast %89 : vector<1x12xf32> to vector<12x12xf32>
    %91 = arith.subf %84, %90 : vector<12x12xf32>
    %92 = math.exp %91 : vector<12x12xf32>
    %cst_47 = arith.constant dense<0.000000e+00> : vector<12xf32>
    %93 = vector.multi_reduction <add>, %92, %cst_47 [0] : vector<12x12xf32> to vector<12xf32>
    %94 = vector.shape_cast %93 : vector<12xf32> to vector<1x12xf32>
    %95 = tpu.reciprocal %94 {approx = true} : vector<1x12xf32> -> vector<1x12xf32>
    %96 = vector.broadcast %95 : vector<1x12xf32> to vector<12x12xf32>
    %97 = arith.mulf %92, %96 : vector<12x12xf32>
    %cst_48 = arith.constant dense<0.000000e+00> : vector<12x8xf32>
    %98 = tpu.matmul %97, %78, %cst_48 {dimension_numbers = #tpu.dot_dimension_numbers<[1], [0], [0], [1], [0, 0, 1, 1], [], []>} : vector<12x12xf32>, vector<12x8xf32>, vector<12x8xf32> -> vector<12x8xf32>
    %99 = vector.extract_strided_slice %29 {offsets = [0, 24], sizes = [12, 8], strides = [1, 1]} : vector<12x96xf32> to vector<12x8xf32>
    %100 = vector.extract_strided_slice %29 {offsets = [0, 56], sizes = [12, 8], strides = [1, 1]} : vector<12x96xf32> to vector<12x8xf32>
    %101 = vector.extract_strided_slice %29 {offsets = [0, 88], sizes = [12, 8], strides = [1, 1]} : vector<12x96xf32> to vector<12x8xf32>
    %cst_49 = arith.constant dense<0.000000e+00> : vector<12x12xf32>
    %102 = tpu.matmul %99, %100, %cst_49 {dimension_numbers = #tpu.dot_dimension_numbers<[1], [1], [0], [0], [0, 0, 1, 0], [], []>} : vector<12x8xf32>, vector<12x8xf32>, vector<12x12xf32> -> vector<12x12xf32>
    %cst_50 = arith.constant 0.353553385 : f32
    %103 = vector.broadcast %cst_50 : f32 to vector<12x12xf32>
    %104 = arith.mulf %102, %103 : vector<12x12xf32>
    %c0_51 = arith.constant 0 : index
    %c3 = arith.constant 3 : index
    %c0_52 = arith.constant 0 : index
    %c0_53 = arith.constant 0 : index
    %105 = vector.load %arg3[%c0_51, %c3, %c0_52, %c0_53] : memref<1x4x12x12xf32, #tpu.memory_space<vmem>>, vector<1x1x12x12xf32>
    %106 = vector.shape_cast %105 : vector<1x1x12x12xf32> to vector<12x12xf32>
    %107 = arith.addf %104, %106 : vector<12x12xf32>
    %c0_54 = arith.constant 0 : index
    %c3_55 = arith.constant 3 : index
    %c0_56 = arith.constant 0 : index
    %c0_57 = arith.constant 0 : index
    %108 = vector.load %arg11[%c0_54, %c3_55, %c0_56, %c0_57] : memref<1x4x12x12xf32, #tpu.memory_space<vmem>>, vector<1x1x12x12xf32>
    %109 = vector.shape_cast %108 : vector<1x1x12x12xf32> to vector<12x12xf32>
    %110 = vector.shape_cast %107 : vector<12x12xf32> to vector<1x1x12x12xf32>
    tpu.vector_store %arg11[%c0_54, %c3_55, %c0_56, %c0_57], %110 {strides = array<i32>} : memref<1x4x12x12xf32, #tpu.memory_space<vmem>>, vector<1x1x12x12xf32>,
    %cst_58 = arith.constant dense<0xFF800000> : vector<12xf32>
    %111 = vector.multi_reduction <maximumf>, %107, %cst_58 [0] : vector<12x12xf32> to vector<12xf32>
    %112 = vector.shape_cast %111 : vector<12xf32> to vector<1x12xf32>
    %113 = vector.broadcast %112 : vector<1x12xf32> to vector<12x12xf32>
    %114 = arith.subf %107, %113 : vector<12x12xf32>
    %115 = math.exp %114 : vector<12x12xf32>
    %cst_59 = arith.constant dense<0.000000e+00> : vector<12xf32>
    %116 = vector.multi_reduction <add>, %115, %cst_59 [0] : vector<12x12xf32> to vector<12xf32>
    %117 = vector.shape_cast %116 : vector<12xf32> to vector<1x12xf32>
    %118 = tpu.reciprocal %117 {approx = true} : vector<1x12xf32> -> vector<1x12xf32>
    %119 = vector.broadcast %118 : vector<1x12xf32> to vector<12x12xf32>
    %120 = arith.mulf %115, %119 : vector<12x12xf32>
    %cst_60 = arith.constant dense<0.000000e+00> : vector<12x8xf32>
    %121 = tpu.matmul %120, %101, %cst_60 {dimension_numbers = #tpu.dot_dimension_numbers<[1], [0], [0], [1], [0, 0, 1, 1], [], []>} : vector<12x12xf32>, vector<12x8xf32>, vector<12x8xf32> -> vector<12x8xf32>
    %122 = tpu.concatenate %52, %75, %98, %121 in 1 : vector<12x8xf32>, vector<12x8xf32>, vector<12x8xf32>, vector<12x8xf32> -> vector<12x32xf32>
    %c0_61 = arith.constant 0 : index
    %c0_62 = arith.constant 0 : index
    %123 = vector.load %arg4[%c0_61, %c0_62] : memref<48x16xf32, #tpu.memory_space<vmem>>, vector<32x16xf32>
    %cst_63 = arith.constant dense<0.000000e+00> : vector<12x16xf32>
    %124 = tpu.matmul %122, %123, %cst_63 {dimension_numbers = #tpu.dot_dimension_numbers<[1], [0], [0], [1], [0, 0, 1, 1], [], []>} : vector<12x32xf32>, vector<32x16xf32>, vector<12x16xf32> -> vector<12x16xf32>
    %125 = arith.addf %124, %27 : vector<12x16xf32>
    %cst_64 = arith.constant dense<0.000000e+00> : vector<12xf32>
    %126 = vector.multi_reduction <add>, %125, %cst_64 [1] : vector<12x16xf32> to vector<12xf32>
    %127 = vector.shape_cast %126 : vector<12xf32> to vector<12x1xf32>
    %cst_65 = arith.constant 1.600000e+01 : f32
    %128 = vector.broadcast %cst_65 : f32 to vector<12x1xf32>
    %129 = arith.divf %127, %128 : vector<12x1xf32>
    %130 = vector.broadcast %129 : vector<12x1xf32> to vector<12x16xf32>
    %131 = arith.subf %125, %130 : vector<12x16xf32>
    %132 = arith.mulf %131, %131 : vector<12x16xf32>
    %cst_66 = arith.constant dense<0.000000e+00> : vector<12xf32>
    %133 = vector.multi_reduction <add>, %132, %cst_66 [1] : vector<12x16xf32> to vector<12xf32>
    %134 = vector.shape_cast %133 : vector<12xf32> to vector<12x1xf32>
    %cst_67 = arith.constant 1.600000e+01 : f32
    %135 = vector.broadcast %cst_67 : f32 to vector<12x1xf32>
    %136 = arith.divf %134, %135 : vector<12x1xf32>
    %137 = vector.broadcast %129 : vector<12x1xf32> to vector<12x16xf32>
    %138 = arith.subf %125, %137 : vector<12x16xf32>
    %cst_68 = arith.constant 9.99999974E-6 : f32
    %139 = vector.broadcast %cst_68 : f32 to vector<12x1xf32>
    %140 = arith.addf %136, %139 : vector<12x1xf32>
    %141 = math.rsqrt %140 : vector<12x1xf32>
    %142 = vector.broadcast %141 : vector<12x1xf32> to vector<12x16xf32>
    %143 = arith.mulf %138, %142 : vector<12x16xf32>
    %cst_69 = arith.constant 1.000000e+00 : f32
    %144 = vector.broadcast %cst_69 : f32 to vector<12x16xf32>
    %145 = arith.mulf %143, %144 : vector<12x16xf32>
    %cst_70 = arith.constant 0.000000e+00 : f32
    %146 = vector.broadcast %cst_70 : f32 to vector<12x16xf32>
    %147 = arith.addf %145, %146 : vector<12x16xf32>
    %c16 = arith.constant 16 : index
    %c0_71 = arith.constant 0 : index
    %148 = vector.load %arg6[%c16, %c0_71] : memref<32x39xf32, #tpu.memory_space<vmem>>, vector<12x32xf32>
    %cst_72 = arith.constant dense<0.000000e+00> : vector<16x32xf32>
    %149 = tpu.matmul %147, %148, %cst_72 {dimension_numbers = #tpu.dot_dimension_numbers<[0], [0], [1], [1], [0, 1, 1, 1], [], []>} : vector<12x16xf32>, vector<12x32xf32>, vector<16x32xf32> -> vector<16x32xf32>
    %c28 = arith.constant 28 : index
    %c0_73 = arith.constant 0 : index
    %150 = vector.load %arg6[%c28, %c0_73] : memref<32x39xf32, #tpu.memory_space<vmem>>, vector<1x32xf32>
    %151 = vector.broadcast %150 : vector<1x32xf32> to vector<16x32xf32>
    %152 = arith.addf %149, %151 : vector<16x32xf32>
    %c0_74 = arith.constant 0 : index
    %c0_75 = arith.constant 0 : index
    %153 = vector.load %arg6[%c0_74, %c0_75] : memref<32x39xf32, #tpu.memory_space<vmem>>, vector<16x32xf32>
    %154 = arith.addf %152, %153 : vector<16x32xf32>
    %c29 = arith.constant 29 : index
    %c0_76 = arith.constant 0 : index
    %155 = vector.load %arg6[%c29, %c0_76] : memref<32x39xf32, #tpu.memory_space<vmem>>, vector<1x32xf32>
    %c30 = arith.constant 30 : index
    %c0_77 = arith.constant 0 : index
    %156 = vector.load %arg6[%c30, %c0_77] : memref<32x39xf32, #tpu.memory_space<vmem>>, vector<1x32xf32>
    %cst_78 = arith.constant dense<0.000000e+00> : vector<16xf32>
    %157 = vector.multi_reduction <add>, %154, %cst_78 [1] : vector<16x32xf32> to vector<16xf32>
    %158 = vector.shape_cast %157 : vector<16xf32> to vector<16x1xf32>
    %cst_79 = arith.constant 3.200000e+01 : f32
    %159 = vector.broadcast %cst_79 : f32 to vector<16x1xf32>
    %160 = arith.divf %158, %159 : vector<16x1xf32>
    %161 = vector.broadcast %160 : vector<16x1xf32> to vector<16x32xf32>
    %162 = arith.subf %154, %161 : vector<16x32xf32>
    %163 = arith.mulf %162, %162 : vector<16x32xf32>
    %cst_80 = arith.constant dense<0.000000e+00> : vector<16xf32>
    %164 = vector.multi_reduction <add>, %163, %cst_80 [1] : vector<16x32xf32> to vector<16xf32>
    %165 = vector.shape_cast %164 : vector<16xf32> to vector<16x1xf32>
    %cst_81 = arith.constant 3.200000e+01 : f32
    %166 = vector.broadcast %cst_81 : f32 to vector<16x1xf32>
    %167 = arith.divf %165, %166 : vector<16x1xf32>
    %168 = vector.broadcast %160 : vector<16x1xf32> to vector<16x32xf32>
    %169 = arith.subf %154, %168 : vector<16x32xf32>
    %cst_82 = arith.constant 9.99999974E-6 : f32
    %170 = vector.broadcast %cst_82 : f32 to vector<16x1xf32>
    %171 = arith.addf %167, %170 : vector<16x1xf32>
    %172 = math.rsqrt %171 : vector<16x1xf32>
    %173 = vector.broadcast %172 : vector<16x1xf32> to vector<16x32xf32>
    %174 = arith.mulf %169, %173 : vector<16x32xf32>
    %175 = vector.broadcast %155 : vector<1x32xf32> to vector<16x32xf32>
    %176 = arith.mulf %174, %175 : vector<16x32xf32>
    %177 = vector.broadcast %156 : vector<1x32xf32> to vector<16x32xf32>
    %178 = arith.addf %176, %177 : vector<16x32xf32>
    %c0_83 = arith.constant 0 : index
    %c0_84 = arith.constant 0 : index
    %179 = vector.load %arg7[%c0_83, %c0_84] : memref<64x48xf32, #tpu.memory_space<vmem>>, vector<32x48xf32>
    %cst_85 = arith.constant dense<0.000000e+00> : vector<16x48xf32>
    %180 = tpu.matmul %178, %179, %cst_85 {dimension_numbers = #tpu.dot_dimension_numbers<[1], [0], [0], [1], [0, 0, 1, 1], [], []>} : vector<16x32xf32>, vector<32x48xf32>, vector<16x48xf32> -> vector<16x48xf32>
    %c0_86 = arith.constant 0 : index
    %c32_87 = arith.constant 32 : index
    %181 = vector.load %arg6[%c0_86, %c32_87] : memref<32x39xf32, #tpu.memory_space<vmem>>, vector<32x3xf32>
    %cst_88 = arith.constant 0.000000e+00 : f32
    %182 = vector.broadcast %cst_88 : f32 to vector<32x192xf32>
    %183 = vector.extract_strided_slice %180 {offsets = [0, 0], sizes = [16, 8], strides = [1, 1]} : vector<16x48xf32> to vector<16x8xf32>
    %184 = vector.extract_strided_slice %180 {offsets = [0, 24], sizes = [16, 8], strides = [1, 1]} : vector<16x48xf32> to vector<16x8xf32>
    %cst_89 = arith.constant dense<0.000000e+00> : vector<16x16xf32>
    %185 = tpu.matmul %183, %184, %cst_89 {dimension_numbers = #tpu.dot_dimension_numbers<[1], [1], [0], [0], [0, 0, 1, 0], [], []>} : vector<16x8xf32>, vector<16x8xf32>, vector<16x16xf32> -> vector<16x16xf32>
    %cst_90 = arith.constant 0.353553385 : f32
    %186 = vector.broadcast %cst_90 : f32 to vector<16x16xf32>
    %187 = arith.mulf %185, %186 : vector<16x16xf32>
    %c32_91 = arith.constant 32 : index
    %c0_92 = arith.constant 0 : index
    %188 = vector.load %arg7[%c32_91, %c0_92] : memref<64x48xf32, #tpu.memory_space<vmem>>, vector<16x16xf32>
    %189 = arith.addf %187, %188 : vector<16x16xf32>
    %cst_93 = arith.constant dense<0xFF800000> : vector<16xf32>
    %190 = vector.multi_reduction <maximumf>, %189, %cst_93 [0] : vector<16x16xf32> to vector<16xf32>
    %191 = vector.shape_cast %190 : vector<16xf32> to vector<1x16xf32>
    %192 = vector.broadcast %191 : vector<1x16xf32> to vector<16x16xf32>
    %193 = arith.subf %189, %192 : vector<16x16xf32>
    %194 = math.exp %193 : vector<16x16xf32>
    %cst_94 = arith.constant dense<0.000000e+00> : vector<16xf32>
    %195 = vector.multi_reduction <add>, %194, %cst_94 [0] : vector<16x16xf32> to vector<16xf32>
    %196 = vector.shape_cast %195 : vector<16xf32> to vector<1x16xf32>
    %197 = tpu.reciprocal %196 {approx = true} : vector<1x16xf32> -> vector<1x16xf32>
    %198 = vector.broadcast %197 : vector<1x16xf32> to vector<16x16xf32>
    %199 = arith.mulf %194, %198 : vector<16x16xf32>
    %c48 = arith.constant 48 : index
    %c0_95 = arith.constant 0 : index
    %200 = vector.load %arg7[%c48, %c0_95] : memref<64x48xf32, #tpu.memory_space<vmem>>, vector<16x16xf32>
    %201 = arith.mulf %200, %199 : vector<16x16xf32>
    %cst_96 = arith.constant dense<0.000000e+00> : vector<12x16xf32>
    %202 = tpu.matmul %1, %201, %cst_96 {dimension_numbers = #tpu.dot_dimension_numbers<[1], [0], [0], [1], [0, 0, 1, 1], [], []>} : vector<12x16xf32>, vector<16x16xf32>, vector<12x16xf32> -> vector<12x16xf32>
    %203 = vector.extract_strided_slice %181 {offsets = [0, 0], sizes = [32, 1], strides = [1, 1]} : vector<32x3xf32> to vector<32x1xf32>
    %204 = vector.extract_strided_slice %202 {offsets = [0, 0], sizes = [1, 16], strides = [1, 1]} : vector<12x16xf32> to vector<1x16xf32>
    %205 = vector.extract_strided_slice %202 {offsets = [1, 0], sizes = [1, 16], strides = [1, 1]} : vector<12x16xf32> to vector<1x16xf32>
    %206 = vector.extract_strided_slice %202 {offsets = [2, 0], sizes = [1, 16], strides = [1, 1]} : vector<12x16xf32> to vector<1x16xf32>
    %207 = vector.extract_strided_slice %202 {offsets = [3, 0], sizes = [1, 16], strides = [1, 1]} : vector<12x16xf32> to vector<1x16xf32>
    %208 = vector.extract_strided_slice %202 {offsets = [4, 0], sizes = [1, 16], strides = [1, 1]} : vector<12x16xf32> to vector<1x16xf32>
    %209 = vector.extract_strided_slice %202 {offsets = [5, 0], sizes = [1, 16], strides = [1, 1]} : vector<12x16xf32> to vector<1x16xf32>
    %210 = vector.extract_strided_slice %202 {offsets = [6, 0], sizes = [1, 16], strides = [1, 1]} : vector<12x16xf32> to vector<1x16xf32>
    %211 = vector.extract_strided_slice %202 {offsets = [7, 0], sizes = [1, 16], strides = [1, 1]} : vector<12x16xf32> to vector<1x16xf32>
    %212 = vector.extract_strided_slice %202 {offsets = [8, 0], sizes = [1, 16], strides = [1, 1]} : vector<12x16xf32> to vector<1x16xf32>
    %213 = vector.extract_strided_slice %202 {offsets = [9, 0], sizes = [1, 16], strides = [1, 1]} : vector<12x16xf32> to vector<1x16xf32>
    %214 = vector.extract_strided_slice %202 {offsets = [10, 0], sizes = [1, 16], strides = [1, 1]} : vector<12x16xf32> to vector<1x16xf32>
    %215 = vector.extract_strided_slice %202 {offsets = [11, 0], sizes = [1, 16], strides = [1, 1]} : vector<12x16xf32> to vector<1x16xf32>
    %216 = tpu.concatenate %204, %205, %206, %207, %208, %209, %210, %211, %212, %213, %214, %215 in 1 : vector<1x16xf32>, vector<1x16xf32>, vector<1x16xf32>, vector<1x16xf32>, vector<1x16xf32>, vector<1x16xf32>, vector<1x16xf32>, vector<1x16xf32>, vector<1x16xf32>, vector<1x16xf32>, vector<1x16xf32>, vector<1x16xf32> -> vector<1x192xf32>
    %217 = vector.broadcast %203 : vector<32x1xf32> to vector<32x192xf32>
    %218 = vector.broadcast %216 : vector<1x192xf32> to vector<32x192xf32>
    %219 = arith.mulf %217, %218 : vector<32x192xf32>
    %220 = arith.addf %182, %219 : vector<32x192xf32>
    %221 = vector.extract_strided_slice %180 {offsets = [0, 8], sizes = [16, 8], strides = [1, 1]} : vector<16x48xf32> to vector<16x8xf32>
    %222 = vector.extract_strided_slice %180 {offsets = [0, 32], sizes = [16, 8], strides = [1, 1]} : vector<16x48xf32> to vector<16x8xf32>
    %cst_97 = arith.constant dense<0.000000e+00> : vector<16x16xf32>
    %223 = tpu.matmul %221, %222, %cst_97 {dimension_numbers = #tpu.dot_dimension_numbers<[1], [1], [0], [0], [0, 0, 1, 0], [], []>} : vector<16x8xf32>, vector<16x8xf32>, vector<16x16xf32> -> vector<16x16xf32>
    %cst_98 = arith.constant 0.353553385 : f32
    %224 = vector.broadcast %cst_98 : f32 to vector<16x16xf32>
    %225 = arith.mulf %223, %224 : vector<16x16xf32>
    %c32_99 = arith.constant 32 : index
    %c16_100 = arith.constant 16 : index
    %226 = vector.load %arg7[%c32_99, %c16_100] : memref<64x48xf32, #tpu.memory_space<vmem>>, vector<16x16xf32>
    %227 = arith.addf %225, %226 : vector<16x16xf32>
    %cst_101 = arith.constant dense<0xFF800000> : vector<16xf32>
    %228 = vector.multi_reduction <maximumf>, %227, %cst_101 [0] : vector<16x16xf32> to vector<16xf32>
    %229 = vector.shape_cast %228 : vector<16xf32> to vector<1x16xf32>
    %230 = vector.broadcast %229 : vector<1x16xf32> to vector<16x16xf32>
    %231 = arith.subf %227, %230 : vector<16x16xf32>
    %232 = math.exp %231 : vector<16x16xf32>
    %cst_102 = arith.constant dense<0.000000e+00> : vector<16xf32>
    %233 = vector.multi_reduction <add>, %232, %cst_102 [0] : vector<16x16xf32> to vector<16xf32>
    %234 = vector.shape_cast %233 : vector<16xf32> to vector<1x16xf32>
    %235 = tpu.reciprocal %234 {approx = true} : vector<1x16xf32> -> vector<1x16xf32>
    %236 = vector.broadcast %235 : vector<1x16xf32> to vector<16x16xf32>
    %237 = arith.mulf %232, %236 : vector<16x16xf32>
    %c48_103 = arith.constant 48 : index
    %c16_104 = arith.constant 16 : index
    %238 = vector.load %arg7[%c48_103, %c16_104] : memref<64x48xf32, #tpu.memory_space<vmem>>, vector<16x16xf32>
    %239 = arith.mulf %238, %237 : vector<16x16xf32>
    %cst_105 = arith.constant dense<0.000000e+00> : vector<12x16xf32>
    %240 = tpu.matmul %1, %239, %cst_105 {dimension_numbers = #tpu.dot_dimension_numbers<[1], [0], [0], [1], [0, 0, 1, 1], [], []>} : vector<12x16xf32>, vector<16x16xf32>, vector<12x16xf32> -> vector<12x16xf32>
    %241 = vector.extract_strided_slice %181 {offsets = [0, 1], sizes = [32, 1], strides = [1, 1]} : vector<32x3xf32> to vector<32x1xf32>
    %242 = vector.extract_strided_slice %240 {offsets = [0, 0], sizes = [1, 16], strides = [1, 1]} : vector<12x16xf32> to vector<1x16xf32>
    %243 = vector.extract_strided_slice %240 {offsets = [1, 0], sizes = [1, 16], strides = [1, 1]} : vector<12x16xf32> to vector<1x16xf32>
    %244 = vector.extract_strided_slice %240 {offsets = [2, 0], sizes = [1, 16], strides = [1, 1]} : vector<12x16xf32> to vector<1x16xf32>
    %245 = vector.extract_strided_slice %240 {offsets = [3, 0], sizes = [1, 16], strides = [1, 1]} : vector<12x16xf32> to vector<1x16xf32>
    %246 = vector.extract_strided_slice %240 {offsets = [4, 0], sizes = [1, 16], strides = [1, 1]} : vector<12x16xf32> to vector<1x16xf32>
    %247 = vector.extract_strided_slice %240 {offsets = [5, 0], sizes = [1, 16], strides = [1, 1]} : vector<12x16xf32> to vector<1x16xf32>
    %248 = vector.extract_strided_slice %240 {offsets = [6, 0], sizes = [1, 16], strides = [1, 1]} : vector<12x16xf32> to vector<1x16xf32>
    %249 = vector.extract_strided_slice %240 {offsets = [7, 0], sizes = [1, 16], strides = [1, 1]} : vector<12x16xf32> to vector<1x16xf32>
    %250 = vector.extract_strided_slice %240 {offsets = [8, 0], sizes = [1, 16], strides = [1, 1]} : vector<12x16xf32> to vector<1x16xf32>
    %251 = vector.extract_strided_slice %240 {offsets = [9, 0], sizes = [1, 16], strides = [1, 1]} : vector<12x16xf32> to vector<1x16xf32>
    %252 = vector.extract_strided_slice %240 {offsets = [10, 0], sizes = [1, 16], strides = [1, 1]} : vector<12x16xf32> to vector<1x16xf32>
    %253 = vector.extract_strided_slice %240 {offsets = [11, 0], sizes = [1, 16], strides = [1, 1]} : vector<12x16xf32> to vector<1x16xf32>
    %254 = tpu.concatenate %242, %243, %244, %245, %246, %247, %248, %249, %250, %251, %252, %253 in 1 : vector<1x16xf32>, vector<1x16xf32>, vector<1x16xf32>, vector<1x16xf32>, vector<1x16xf32>, vector<1x16xf32>, vector<1x16xf32>, vector<1x16xf32>, vector<1x16xf32>, vector<1x16xf32>, vector<1x16xf32>, vector<1x16xf32> -> vector<1x192xf32>
    %255 = vector.broadcast %241 : vector<32x1xf32> to vector<32x192xf32>
    %256 = vector.broadcast %254 : vector<1x192xf32> to vector<32x192xf32>
    %257 = arith.mulf %255, %256 : vector<32x192xf32>
    %258 = arith.addf %220, %257 : vector<32x192xf32>
    %259 = vector.extract_strided_slice %180 {offsets = [0, 16], sizes = [16, 8], strides = [1, 1]} : vector<16x48xf32> to vector<16x8xf32>
    %260 = vector.extract_strided_slice %180 {offsets = [0, 40], sizes = [16, 8], strides = [1, 1]} : vector<16x48xf32> to vector<16x8xf32>
    %cst_106 = arith.constant dense<0.000000e+00> : vector<16x16xf32>
    %261 = tpu.matmul %259, %260, %cst_106 {dimension_numbers = #tpu.dot_dimension_numbers<[1], [1], [0], [0], [0, 0, 1, 0], [], []>} : vector<16x8xf32>, vector<16x8xf32>, vector<16x16xf32> -> vector<16x16xf32>
    %cst_107 = arith.constant 0.353553385 : f32
    %262 = vector.broadcast %cst_107 : f32 to vector<16x16xf32>
    %263 = arith.mulf %261, %262 : vector<16x16xf32>
    %c32_108 = arith.constant 32 : index
    %c32_109 = arith.constant 32 : index
    %264 = vector.load %arg7[%c32_108, %c32_109] : memref<64x48xf32, #tpu.memory_space<vmem>>, vector<16x16xf32>
    %265 = arith.addf %263, %264 : vector<16x16xf32>
    %cst_110 = arith.constant dense<0xFF800000> : vector<16xf32>
    %266 = vector.multi_reduction <maximumf>, %265, %cst_110 [0] : vector<16x16xf32> to vector<16xf32>
    %267 = vector.shape_cast %266 : vector<16xf32> to vector<1x16xf32>
    %268 = vector.broadcast %267 : vector<1x16xf32> to vector<16x16xf32>
    %269 = arith.subf %265, %268 : vector<16x16xf32>
    %270 = math.exp %269 : vector<16x16xf32>
    %cst_111 = arith.constant dense<0.000000e+00> : vector<16xf32>
    %271 = vector.multi_reduction <add>, %270, %cst_111 [0] : vector<16x16xf32> to vector<16xf32>
    %272 = vector.shape_cast %271 : vector<16xf32> to vector<1x16xf32>
    %273 = tpu.reciprocal %272 {approx = true} : vector<1x16xf32> -> vector<1x16xf32>
    %274 = vector.broadcast %273 : vector<1x16xf32> to vector<16x16xf32>
    %275 = arith.mulf %270, %274 : vector<16x16xf32>
    %c48_112 = arith.constant 48 : index
    %c32_113 = arith.constant 32 : index
    %276 = vector.load %arg7[%c48_112, %c32_113] : memref<64x48xf32, #tpu.memory_space<vmem>>, vector<16x16xf32>
    %277 = arith.mulf %276, %275 : vector<16x16xf32>
    %cst_114 = arith.constant dense<0.000000e+00> : vector<12x16xf32>
    %278 = tpu.matmul %1, %277, %cst_114 {dimension_numbers = #tpu.dot_dimension_numbers<[1], [0], [0], [1], [0, 0, 1, 1], [], []>} : vector<12x16xf32>, vector<16x16xf32>, vector<12x16xf32> -> vector<12x16xf32>
    %279 = vector.extract_strided_slice %181 {offsets = [0, 2], sizes = [32, 1], strides = [1, 1]} : vector<32x3xf32> to vector<32x1xf32>
    %280 = vector.extract_strided_slice %278 {offsets = [0, 0], sizes = [1, 16], strides = [1, 1]} : vector<12x16xf32> to vector<1x16xf32>
    %281 = vector.extract_strided_slice %278 {offsets = [1, 0], sizes = [1, 16], strides = [1, 1]} : vector<12x16xf32> to vector<1x16xf32>
    %282 = vector.extract_strided_slice %278 {offsets = [2, 0], sizes = [1, 16], strides = [1, 1]} : vector<12x16xf32> to vector<1x16xf32>
    %283 = vector.extract_strided_slice %278 {offsets = [3, 0], sizes = [1, 16], strides = [1, 1]} : vector<12x16xf32> to vector<1x16xf32>
    %284 = vector.extract_strided_slice %278 {offsets = [4, 0], sizes = [1, 16], strides = [1, 1]} : vector<12x16xf32> to vector<1x16xf32>
    %285 = vector.extract_strided_slice %278 {offsets = [5, 0], sizes = [1, 16], strides = [1, 1]} : vector<12x16xf32> to vector<1x16xf32>
    %286 = vector.extract_strided_slice %278 {offsets = [6, 0], sizes = [1, 16], strides = [1, 1]} : vector<12x16xf32> to vector<1x16xf32>
    %287 = vector.extract_strided_slice %278 {offsets = [7, 0], sizes = [1, 16], strides = [1, 1]} : vector<12x16xf32> to vector<1x16xf32>
    %288 = vector.extract_strided_slice %278 {offsets = [8, 0], sizes = [1, 16], strides = [1, 1]} : vector<12x16xf32> to vector<1x16xf32>
    %289 = vector.extract_strided_slice %278 {offsets = [9, 0], sizes = [1, 16], strides = [1, 1]} : vector<12x16xf32> to vector<1x16xf32>
    %290 = vector.extract_strided_slice %278 {offsets = [10, 0], sizes = [1, 16], strides = [1, 1]} : vector<12x16xf32> to vector<1x16xf32>
    %291 = vector.extract_strided_slice %278 {offsets = [11, 0], sizes = [1, 16], strides = [1, 1]} : vector<12x16xf32> to vector<1x16xf32>
    %292 = tpu.concatenate %280, %281, %282, %283, %284, %285, %286, %287, %288, %289, %290, %291 in 1 : vector<1x16xf32>, vector<1x16xf32>, vector<1x16xf32>, vector<1x16xf32>, vector<1x16xf32>, vector<1x16xf32>, vector<1x16xf32>, vector<1x16xf32>, vector<1x16xf32>, vector<1x16xf32>, vector<1x16xf32>, vector<1x16xf32> -> vector<1x192xf32>
    %293 = vector.broadcast %279 : vector<32x1xf32> to vector<32x192xf32>
    %294 = vector.broadcast %292 : vector<1x192xf32> to vector<32x192xf32>
    %295 = arith.mulf %293, %294 : vector<32x192xf32>
    %296 = arith.addf %258, %295 : vector<32x192xf32>
    %cst_115 = arith.constant 0.000000e+00 : f32
    %297 = vector.broadcast %cst_115 : f32 to vector<32x192xf32>
    %298 = arith.maximumf %296, %297 : vector<32x192xf32>
    %299 = vector.extract_strided_slice %298 {offsets = [0, 0], sizes = [32, 160], strides = [1, 1]} : vector<32x192xf32> to vector<32x160xf32>
    %300 = vector.extract_strided_slice %298 {offsets = [0, 16], sizes = [32, 160], strides = [1, 1]} : vector<32x192xf32> to vector<32x160xf32>
    %301 = vector.extract_strided_slice %298 {offsets = [0, 32], sizes = [32, 160], strides = [1, 1]} : vector<32x192xf32> to vector<32x160xf32>
    %302 = tpu.concatenate %299, %300, %301 in 0 : vector<32x160xf32>, vector<32x160xf32>, vector<32x160xf32> -> vector<96x160xf32>
    %c0_116 = arith.constant 0 : index
    %c0_117 = arith.constant 0 : index
    %303 = vector.load %arg8[%c0_116, %c0_117] : memref<64x483xf32, #tpu.memory_space<vmem>>, vector<64x96xf32>
    %cst_118 = arith.constant dense<0.000000e+00> : vector<64x160xf32>
    %304 = tpu.matmul %303, %302, %cst_118 {dimension_numbers = #tpu.dot_dimension_numbers<[1], [0], [0], [1], [0, 0, 1, 1], [], []>} : vector<64x96xf32>, vector<96x160xf32>, vector<64x160xf32> -> vector<64x160xf32>
    %c0_119 = arith.constant 0 : index
    %c480 = arith.constant 480 : index
    %305 = vector.load %arg8[%c0_119, %c480] : memref<64x483xf32, #tpu.memory_space<vmem>>, vector<64x1xf32>
    %306 = vector.broadcast %305 : vector<64x1xf32> to vector<64x160xf32>
    %307 = arith.addf %304, %306 : vector<64x160xf32>
    %308 = vector.extract_strided_slice %307 {offsets = [0, 0], sizes = [32, 160], strides = [1, 1]} : vector<64x160xf32> to vector<32x160xf32>
    %309 = math.tanh %308 : vector<32x160xf32>
    %310 = vector.extract_strided_slice %307 {offsets = [32, 0], sizes = [32, 160], strides = [1, 1]} : vector<64x160xf32> to vector<32x160xf32>
    %311 = arith.negf %310 : vector<32x160xf32>
    %312 = math.exp %311 : vector<32x160xf32>
    %cst_120 = arith.constant 1.000000e+00 : f32
    %313 = vector.broadcast %cst_120 : f32 to vector<32x160xf32>
    %314 = arith.addf %313, %312 : vector<32x160xf32>
    %315 = arith.divf %313, %314 : vector<32x160xf32>
    %316 = arith.mulf %309, %315 : vector<32x160xf32>
    %317 = vector.extract_strided_slice %298 {offsets = [0, 0], sizes = [32, 128], strides = [1, 1]} : vector<32x192xf32> to vector<32x128xf32>
    %318 = vector.extract_strided_slice %298 {offsets = [0, 16], sizes = [32, 128], strides = [1, 1]} : vector<32x192xf32> to vector<32x128xf32>
    %319 = vector.extract_strided_slice %298 {offsets = [0, 32], sizes = [32, 128], strides = [1, 1]} : vector<32x192xf32> to vector<32x128xf32>
    %320 = vector.extract_strided_slice %298 {offsets = [0, 48], sizes = [32, 128], strides = [1, 1]} : vector<32x192xf32> to vector<32x128xf32>
    %321 = vector.extract_strided_slice %298 {offsets = [0, 64], sizes = [32, 128], strides = [1, 1]} : vector<32x192xf32> to vector<32x128xf32>
    %322 = tpu.concatenate %317, %318, %319, %320, %321 in 0 : vector<32x128xf32>, vector<32x128xf32>, vector<32x128xf32>, vector<32x128xf32>, vector<32x128xf32> -> vector<160x128xf32>
    %c0_121 = arith.constant 0 : index
    %c96 = arith.constant 96 : index
    %323 = vector.load %arg8[%c0_121, %c96] : memref<64x483xf32, #tpu.memory_space<vmem>>, vector<64x160xf32>
    %cst_122 = arith.constant dense<0.000000e+00> : vector<64x128xf32>
    %324 = tpu.matmul %323, %322, %cst_122 {dimension_numbers = #tpu.dot_dimension_numbers<[1], [0], [0], [1], [0, 0, 1, 1], [], []>} : vector<64x160xf32>, vector<160x128xf32>, vector<64x128xf32> -> vector<64x128xf32>
    %c0_123 = arith.constant 0 : index
    %c481 = arith.constant 481 : index
    %325 = vector.load %arg8[%c0_123, %c481] : memref<64x483xf32, #tpu.memory_space<vmem>>, vector<64x1xf32>
    %326 = vector.broadcast %325 : vector<64x1xf32> to vector<64x128xf32>
    %327 = arith.addf %324, %326 : vector<64x128xf32>
    %328 = vector.extract_strided_slice %327 {offsets = [0, 0], sizes = [32, 128], strides = [1, 1]} : vector<64x128xf32> to vector<32x128xf32>
    %329 = math.tanh %328 : vector<32x128xf32>
    %330 = vector.extract_strided_slice %327 {offsets = [32, 0], sizes = [32, 128], strides = [1, 1]} : vector<64x128xf32> to vector<32x128xf32>
    %331 = arith.negf %330 : vector<32x128xf32>
    %332 = math.exp %331 : vector<32x128xf32>
    %cst_124 = arith.constant 1.000000e+00 : f32
    %333 = vector.broadcast %cst_124 : f32 to vector<32x128xf32>
    %334 = arith.addf %333, %332 : vector<32x128xf32>
    %335 = arith.divf %333, %334 : vector<32x128xf32>
    %336 = arith.mulf %329, %335 : vector<32x128xf32>
    %337 = vector.extract_strided_slice %298 {offsets = [0, 0], sizes = [32, 96], strides = [1, 1]} : vector<32x192xf32> to vector<32x96xf32>
    %338 = vector.extract_strided_slice %298 {offsets = [0, 16], sizes = [32, 96], strides = [1, 1]} : vector<32x192xf32> to vector<32x96xf32>
    %339 = vector.extract_strided_slice %298 {offsets = [0, 32], sizes = [32, 96], strides = [1, 1]} : vector<32x192xf32> to vector<32x96xf32>
    %340 = vector.extract_strided_slice %298 {offsets = [0, 48], sizes = [32, 96], strides = [1, 1]} : vector<32x192xf32> to vector<32x96xf32>
    %341 = vector.extract_strided_slice %298 {offsets = [0, 64], sizes = [32, 96], strides = [1, 1]} : vector<32x192xf32> to vector<32x96xf32>
    %342 = vector.extract_strided_slice %298 {offsets = [0, 80], sizes = [32, 96], strides = [1, 1]} : vector<32x192xf32> to vector<32x96xf32>
    %343 = vector.extract_strided_slice %298 {offsets = [0, 96], sizes = [32, 96], strides = [1, 1]} : vector<32x192xf32> to vector<32x96xf32>
    %344 = tpu.concatenate %337, %338, %339, %340, %341, %342, %343 in 0 : vector<32x96xf32>, vector<32x96xf32>, vector<32x96xf32>, vector<32x96xf32>, vector<32x96xf32>, vector<32x96xf32>, vector<32x96xf32> -> vector<224x96xf32>
    %c0_125 = arith.constant 0 : index
    %c256 = arith.constant 256 : index
    %345 = vector.load %arg8[%c0_125, %c256] : memref<64x483xf32, #tpu.memory_space<vmem>>, vector<64x224xf32>
    %cst_126 = arith.constant dense<0.000000e+00> : vector<64x96xf32>
    %346 = tpu.matmul %345, %344, %cst_126 {dimension_numbers = #tpu.dot_dimension_numbers<[1], [0], [0], [1], [0, 0, 1, 1], [], []>} : vector<64x224xf32>, vector<224x96xf32>, vector<64x96xf32> -> vector<64x96xf32>
    %c0_127 = arith.constant 0 : index
    %c482 = arith.constant 482 : index
    %347 = vector.load %arg8[%c0_127, %c482] : memref<64x483xf32, #tpu.memory_space<vmem>>, vector<64x1xf32>
    %348 = vector.broadcast %347 : vector<64x1xf32> to vector<64x96xf32>
    %349 = arith.addf %346, %348 : vector<64x96xf32>
    %350 = vector.extract_strided_slice %349 {offsets = [0, 0], sizes = [32, 96], strides = [1, 1]} : vector<64x96xf32> to vector<32x96xf32>
    %351 = math.tanh %350 : vector<32x96xf32>
    %352 = vector.extract_strided_slice %349 {offsets = [32, 0], sizes = [32, 96], strides = [1, 1]} : vector<64x96xf32> to vector<32x96xf32>
    %353 = arith.negf %352 : vector<32x96xf32>
    %354 = math.exp %353 : vector<32x96xf32>
    %cst_128 = arith.constant 1.000000e+00 : f32
    %355 = vector.broadcast %cst_128 : f32 to vector<32x96xf32>
    %356 = arith.addf %355, %354 : vector<32x96xf32>
    %357 = arith.divf %355, %356 : vector<32x96xf32>
    %358 = arith.mulf %351, %357 : vector<32x96xf32>
    %359 = tpu.concatenate %316, %336, %358 in 1 : vector<32x160xf32>, vector<32x128xf32>, vector<32x96xf32> -> vector<32x384xf32>
    %c0_129 = arith.constant 0 : index
    %c0_130 = arith.constant 0 : index
    %360 = vector.load %arg9[%c0_129, %c0_130] : memref<392x192xf32, #tpu.memory_space<vmem>>, vector<384x192xf32>
    %cst_131 = arith.constant dense<0.000000e+00> : vector<32x192xf32>
    %361 = tpu.matmul %359, %360, %cst_131 {dimension_numbers = #tpu.dot_dimension_numbers<[1], [0], [0], [1], [0, 0, 1, 1], [], []>} : vector<32x384xf32>, vector<384x192xf32>, vector<32x192xf32> -> vector<32x192xf32>
    %c384 = arith.constant 384 : index
    %c0_132 = arith.constant 0 : index
    %362 = vector.load %arg9[%c384, %c0_132] : memref<392x192xf32, #tpu.memory_space<vmem>>, vector<1x192xf32>
    %363 = vector.broadcast %362 : vector<1x192xf32> to vector<32x192xf32>
    %364 = arith.addf %361, %363 : vector<32x192xf32>
    %cst_133 = arith.constant 0.000000e+00 : f32
    %365 = vector.broadcast %cst_133 : f32 to vector<32x192xf32>
    %366 = arith.maximumf %364, %365 : vector<32x192xf32>
    %c0_134 = arith.constant 0 : index
    %c0_135 = arith.constant 0 : index
    %c0_136 = arith.constant 0 : index
    %367 = vector.load %arg2[%c0_134, %c0_135, %c0_136] : memref<1x1x192xf32, #tpu.memory_space<vmem>>, vector<1x1x192xf32>
    %368 = vector.shape_cast %367 : vector<1x1x192xf32> to vector<1x192xf32>
    %c0_137 = arith.constant 0 : index
    %c35 = arith.constant 35 : index
    %369 = vector.load %arg6[%c0_137, %c35] : memref<32x39xf32, #tpu.memory_space<vmem>>, vector<32x1xf32>
    %c0_138 = arith.constant 0 : index
    %c36 = arith.constant 36 : index
    %370 = vector.load %arg6[%c0_138, %c36] : memref<32x39xf32, #tpu.memory_space<vmem>>, vector<32x1xf32>
    %371 = vector.broadcast %369 : vector<32x1xf32> to vector<32x192xf32>
    %372 = vector.broadcast %368 : vector<1x192xf32> to vector<32x192xf32>
    %373 = arith.mulf %371, %372 : vector<32x192xf32>
    %374 = vector.broadcast %370 : vector<32x1xf32> to vector<32x192xf32>
    %375 = arith.addf %373, %374 : vector<32x192xf32>
    %376 = arith.addf %375, %366 : vector<32x192xf32>
    %cst_139 = arith.constant 0.000000e+00 : f32
    %377 = vector.broadcast %cst_139 : f32 to vector<32x192xf32>
    %378 = arith.maximumf %376, %377 : vector<32x192xf32>
    %cst_140 = arith.constant dense<0.000000e+00> : vector<192xf32>
    %379 = vector.multi_reduction <add>, %378, %cst_140 [0] : vector<32x192xf32> to vector<192xf32>
    %380 = vector.shape_cast %379 : vector<192xf32> to vector<1x192xf32>
    %cst_141 = arith.constant 3.200000e+01 : f32
    %381 = vector.broadcast %cst_141 : f32 to vector<1x192xf32>
    %382 = arith.divf %380, %381 : vector<1x192xf32>
    %383 = vector.broadcast %382 : vector<1x192xf32> to vector<32x192xf32>
    %384 = arith.subf %378, %383 : vector<32x192xf32>
    %385 = arith.mulf %384, %384 : vector<32x192xf32>
    %cst_142 = arith.constant dense<0.000000e+00> : vector<192xf32>
    %386 = vector.multi_reduction <add>, %385, %cst_142 [0] : vector<32x192xf32> to vector<192xf32>
    %387 = vector.shape_cast %386 : vector<192xf32> to vector<1x192xf32>
    %cst_143 = arith.constant 3.200000e+01 : f32
    %388 = vector.broadcast %cst_143 : f32 to vector<1x192xf32>
    %389 = arith.divf %387, %388 : vector<1x192xf32>
    %390 = vector.broadcast %382 : vector<1x192xf32> to vector<32x192xf32>
    %391 = arith.subf %378, %390 : vector<32x192xf32>
    %cst_144 = arith.constant 9.99999974E-6 : f32
    %392 = vector.broadcast %cst_144 : f32 to vector<1x192xf32>
    %393 = arith.addf %389, %392 : vector<1x192xf32>
    %394 = math.rsqrt %393 : vector<1x192xf32>
    %395 = vector.broadcast %394 : vector<1x192xf32> to vector<32x192xf32>
    %396 = arith.mulf %391, %395 : vector<32x192xf32>
    %c0_145 = arith.constant 0 : index
    %c37 = arith.constant 37 : index
    %397 = vector.load %arg6[%c0_145, %c37] : memref<32x39xf32, #tpu.memory_space<vmem>>, vector<32x1xf32>
    %398 = vector.broadcast %397 : vector<32x1xf32> to vector<32x192xf32>
    %399 = arith.mulf %396, %398 : vector<32x192xf32>
    %c0_146 = arith.constant 0 : index
    %c38 = arith.constant 38 : index
    %400 = vector.load %arg6[%c0_146, %c38] : memref<32x39xf32, #tpu.memory_space<vmem>>, vector<32x1xf32>
    %401 = vector.broadcast %400 : vector<32x1xf32> to vector<32x192xf32>
    %402 = arith.addf %399, %401 : vector<32x192xf32>
    %c0_147 = arith.constant 0 : index
    %c0_148 = arith.constant 0 : index
    %c0_149 = arith.constant 0 : index
    %403 = vector.load %arg10[%c0_147, %c0_148, %c0_149] : memref<1x32x192xf32, #tpu.memory_space<vmem>>, vector<1x32x192xf32>
    %404 = vector.shape_cast %403 : vector<1x32x192xf32> to vector<32x192xf32>
    %405 = vector.shape_cast %402 : vector<32x192xf32> to vector<1x32x192xf32>
    tpu.vector_store %arg10[%c0_147, %c0_148, %c0_149], %405 {strides = array<i32>} : memref<1x32x192xf32, #tpu.memory_space<vmem>>, vector<1x32x192xf32>,
    return
  }
  func.func @transform_0(%arg0: i32) -> (i32, i32, i32) {
    %c0_i32 = arith.constant 0 : i32
    %c0_i32_0 = arith.constant 0 : i32
    %c0_i32_1 = arith.constant 0 : i32
    return %arg0, %c0_i32, %c0_i32_0 : i32, i32, i32
  }
  func.func @transform_1(%arg0: i32) -> (i32, i32, i32) {
    %c0_i32 = arith.constant 0 : i32
    %c0_i32_0 = arith.constant 0 : i32
    %c0_i32_1 = arith.constant 0 : i32
    return %arg0, %c0_i32, %c0_i32_0 : i32, i32, i32
  }
  func.func @transform_2(%arg0: i32) -> (i32, i32, i32, i32) {
    %c0_i32 = arith.constant 0 : i32
    %c0_i32_0 = arith.constant 0 : i32
    %c0_i32_1 = arith.constant 0 : i32
    %c0_i32_2 = arith.constant 0 : i32
    return %arg0, %c0_i32, %c0_i32_0, %c0_i32_1 : i32, i32, i32, i32
  }
  func.func @transform_3(%arg0: i32) -> (i32, i32) {
    %c0_i32 = arith.constant 0 : i32
    %c0_i32_0 = arith.constant 0 : i32
    %c0_i32_1 = arith.constant 0 : i32
    return %c0_i32, %c0_i32_0 : i32, i32
  }
  func.func @transform_4(%arg0: i32) -> (i32, i32) {
    %c0_i32 = arith.constant 0 : i32
    %c0_i32_0 = arith.constant 0 : i32
    %c0_i32_1 = arith.constant 0 : i32
    return %c0_i32, %c0_i32_0 : i32, i32
  }
  func.func @transform_5(%arg0: i32) -> (i32, i32) {
    %c0_i32 = arith.constant 0 : i32
    %c0_i32_0 = arith.constant 0 : i32
    %c0_i32_1 = arith.constant 0 : i32
    return %c0_i32, %c0_i32_0 : i32, i32
  }
  func.func @transform_6(%arg0: i32) -> (i32, i32) {
    %c0_i32 = arith.constant 0 : i32
    %c0_i32_0 = arith.constant 0 : i32
    %c0_i32_1 = arith.constant 0 : i32
    return %c0_i32, %c0_i32_0 : i32, i32
  }
  func.func @transform_7(%arg0: i32) -> (i32, i32) {
    %c0_i32 = arith.constant 0 : i32
    %c0_i32_0 = arith.constant 0 : i32
    %c0_i32_1 = arith.constant 0 : i32
    return %c0_i32, %c0_i32_0 : i32, i32
  }
  func.func @transform_8(%arg0: i32) -> (i32, i32) {
    %c0_i32 = arith.constant 0 : i32
    %c0_i32_0 = arith.constant 0 : i32
    %c0_i32_1 = arith.constant 0 : i32
    return %c0_i32, %c0_i32_0 : i32, i32
  }
  func.func @transform_9(%arg0: i32) -> (i32, i32, i32) {
    %c0_i32 = arith.constant 0 : i32
    %c0_i32_0 = arith.constant 0 : i32
    %c0_i32_1 = arith.constant 0 : i32
    return %arg0, %c0_i32, %c0_i32_0 : i32, i32, i32
  }
  func.func @transform_10(%arg0: i32) -> (i32, i32, i32, i32) {
    %c0_i32 = arith.constant 0 : i32
    %c0_i32_0 = arith.constant 0 : i32
    %c0_i32_1 = arith.constant 0 : i32
    %c0_i32_2 = arith.constant 0 : i32
    return %arg0, %c0_i32, %c0_i32_0, %c0_i32_1 : i32, i32, i32, i32
  }
}

</mosaic_0001>

<bundles_post_ra>
// kernel: dstagnn_block_forward.1
= control target key start
LH: loop header
LB: loop body
LE: loop exit
PB: predicated region body
PF: predicated region fallthrough
CT: control target
= control target key end

     0   :  { %s5467_s13 = smov 0   ;;  %s6932_s0 = inlined_call_operand.vmem [shape: f32[2,12,16], index: 0, kind: input, shape index: {}]   ;;  %s6933_s1 = inlined_call_operand.vmem [shape: f32[2,1,192], index: 1, kind: input, shape index: {}]   ;;  %s6934_s2 = inlined_call_operand.vmem [shape: f32[2,4,12,12], index: 2, kind: input, shape index: {}]   ;;  %s6935_s3 = inlined_call_operand.vmem [shape: f32[48,16], index: 3, kind: input, shape index: {}]   ;;  %s6936_s4 = inlined_call_operand.vmem [shape: f32[16,96], index: 4, kind: input, shape index: {}]   ;;  %s6937_s5 = inlined_call_operand.vmem [shape: f32[32,39], index: 5, kind: input, shape index: {}]   ;;  %s6938_s6 = inlined_call_operand.vmem [shape: f32[64,48], index: 6, kind: input, shape index: {}]   ;;  %s6939_s7 = inlined_call_operand.vmem [shape: f32[64,483], index: 7, kind: input, shape index: {}]   ;;  %s6940_s8 = inlined_call_operand.vmem [shape: f32[392,192], index: 8, kind: input, shape index: {}]   ;;  %s6941_s9 = inlined_call_operand.vmem [shape: f32[2,32,192], index: 9, kind: output, shape index: {0}]   ;;  %s6942_s10 = inlined_call_operand.vmem [shape: f32[2,4,12,12], index: 10, kind: output, shape index: {1}]  }
   0x1 LB: > { %s4290_s14 = sadd.s32 4294967295, %s5382_s13   ;;  %p4294_p0 = scmp.ge.s32.totalorder %s5382_s13, 1  ;;  %s5382_s13 = sphi %s5467_s13, %s21_s13  }
   0x2   : > { %p334_p1 = scmp.lt.s32.totalorder %s5382_s13, 3 }
   0x4   : > { %p335_p2 = pnand %p4294_p0, %p334_p1 }
   0x5   : > { %p386_p3 = scmp.lt.s32.totalorder (!%p335_p2), %s4290_s14, 1  ;;  %v412_v0 = vld [vmem:[%s6935_s3 + $0x20] sm:$0xff] (!%p335_p2)  ;;  %v413_v1 = vld [vmem:[%s6935_s3 + $0x28] sm:$0xf] (!%p335_p2)  ;;  %vm418_vm0 = vcmask (!%p335_p2), 130048   ;;  %vm422_vm1 = vcmask (!%p335_p2), 125952  }
   0x6   : > { %338 = sbr.rel (%p335_p2) target bundleno = 5971 (0x1753), region = 56  ;;  %v459_v18 = vld [vmem:[%s6936_s4] sm:$0xff] (!%p335_p2)  ;;  %v460_v19 = vld [vmem:[%s6936_s4 + $0x8] sm:$0xff] (!%p335_p2)  ;;  %vm548_vm2 = vcmask (!%p335_p2), 64512   ;;  %s5384_s11 = smov (!%p335_p2), 64   ;;  %vm680_vm3 = vcmask (!%p335_p2), 1043456  }
   0x7   : > { %v4633_v20 = vpack.c.bf16 (!%p335_p2), %v460_v19, %v459_v18  ;;  %v4304_v28 = vld [vmem:[%s6935_s3 + $0x2c] ss:$0 sm:$0xff] (!%p335_p2)  ;;  %v4305_v30 = vld [vmem:[%s6935_s3 + $0x2d] ss:$0 sm:$0xff] (!%p335_p2)  ;;  %s5385_s12 = smov (!%p335_p2), 96   ;;  %s5387_s16 = smov (!%p335_p2), 120   ;;  %vm5532_vm4 = vmpackc.low (!%p335_p2), %vm548_vm2, %vm548_vm2 }
   0x8   : > { %s6943_s17 = smov (!%p335_p2), 80   ;;  %s5389_s18 = smov (!%p335_p2), 56   ;;  %vm5395_vm5 = vmmov (!%p335_p2), 1   ;;  %vm640_vm7 = vcmask (!%p335_p2), 93184   ;;  %vm638_vm8 = vcmask (!%p335_p2), 97280   ;;  %vm1434_vm9 = vcmask (!%p335_p2), 195584  }
   0x9   : > { %4634 = vmatprep.subr.bf16.mxu0 (!%p335_p2), %v4633_v20  ;;  %s5390_s19 = smov (!%p335_p2), 112   ;;  %s5391_s20 = smov (!%p335_p2), 72   ;;  %vm5536_vm6 = vmpackc.low (!%p335_p2), %vm680_vm3, %vm5395_vm5  ;;  %vm1441_vm10 = vcmask (!%p335_p2), 261120   ;;  %vm2059_vm11 = vcmask (!%p335_p2), 392192   ;;  %vm2061_vm12 = vcmask (!%p335_p2), 523264   ;;  %vm2063_vm13 = vcmask (!%p335_p2), 654336  }
   0xa   : > { %4636 = vmatpush3.bf16.msra.mxu0 (!%p335_p2), %v4633_v20  ;;  %s5392_s21 = smov (!%p335_p2), 48   ;;  %s5393_s23 = smov (!%p335_p2), 104   ;;  %vm2067_vm14 = vcmask (!%p335_p2), 916480   ;;  %vm2065_vm15 = vcmask (!%p335_p2), 785408  }
   0xb   : > { %s5394_s24 = smov (!%p335_p2), 40   ;;  %s5398_s26 = smov (!%p335_p2), 24  }
   0xd   : > { %s6951_s14 = smov (!%p386_p3, %s4290_s14), 1 }
   0xe   : > { %s4419_s15 = sshll.u32 %s6951_s14, 4  ;;  %s5568_s25 = sshll.u32 %s6951_s14, 6 }
   0xf   : > { %s5487_s22 = scalar_lea.vmem %s6932_s0, %s4419_s15  ;;  %s5386_s15 = smov 88  }
  0x10   : > { %v5490_v2 = vld [vmem:[%s5487_s22] sm:$0xff]  ;;  %v411_v3 = vld [vmem:[%s5487_s22 + $0x8] sm:$0xf]  ;;  %s5574_s28 = scalar_lea.vmem %s6934_s2, %s5568_s25  ;;  %s404_s30 = scalar_lea.vmem %s6941_s9, %s5568_s25 }
  0x11   : > { %v414_v4 = vadd.f32 %v412_v0, %v5490_v2  ;;  %v415_v5 = vadd.f32 %v413_v1, %v411_v3  ;;  %v635_v1 = vld [vmem:[%s5574_s28 + $0x8] sm:$0xf] }
  0x13   : > { %v419_v6 = vsel %vm418_vm0, %v414_v4, 0.0  ;;  %v423_v7 = vsel %vm422_vm1, %v415_v5, 0.0 }
  0x14   : > { %420 = vadd.xlane.f32.xlu0 %v419_v6 }
  0x18   : > { %424 = vadd.xlane.f32.xlu0 %v423_v7 }
  0xa1   : > { %v421_v8 = vpop.xlane.xlu0 %420 }
  0xa2   : > { %v427_v9 = vmul.f32 0.0625, %v421_v8 }
  0xa4   : > { %v429_v10 = vsub.f32 %v414_v4, %v427_v9 }
  0xa5   : > { %v425_v11 = vpop.xlane.xlu0 %424 }
  0xa6   : > { %v428_v12 = vmul.f32 0.0625, %v425_v11  ;;  %v431_v13 = vmul.f32 %v429_v10, %v429_v10 }
  0xa8   : > { %v430_v14 = vsub.f32 %v415_v5, %v428_v12  ;;  %v433_v15 = vsel %vm418_vm0, %v431_v13, 0.0  ;;  %v634_v5 = vld [vmem:[%s5574_s28] sm:$0xff] }
  0xa9   : > { %434 = vadd.xlane.f32.xlu1 %v433_v15 }
  0xaa   : > { %v432_v16 = vmul.f32 %v430_v14, %v430_v14 }
  0xac   : > { %v436_v17 = vsel %vm422_vm1, %v432_v16, 0.0 }
  0xad   : > { %437 = vadd.xlane.f32.xlu1 %v436_v17 }
 0x136   : > { %v435_v21 = vpop.xlane.xlu1 %434 }
 0x137   : > { %v439_v22 = vmul.f32 0.0625, %v435_v21 }
 0x139   : > { %v441_v23 = vadd.f32 1e-05, %v439_v22 }
 0x13a   : > { %v438_v24 = vpop.xlane.xlu1 %437 }
 0x13b   : > { %5216 = vrsqrt.f32 %v441_v23  ;;  %v440_v25 = vmul.f32 0.0625, %v438_v24 }
 0x13d   : > { %v442_v26 = vadd.f32 1e-05, %v440_v25 }
 0x13f   : > { %5218 = vrsqrt.f32 %v442_v26 }
 0x145   : > { %v5217_v27 = vpop.eup %5216 }
 0x146   : > { %v445_v29 = vmul.f32 %v5217_v27, %v429_v10 }
 0x148   : > { %v451_v31 = vmul.f32 %v4304_v28, %v445_v29 }
 0x149   : > { %v5219_v32 = vpop.eup %5218 }
 0x14a   : > { %v446_v33 = vmul.f32 %v5219_v32, %v430_v14  ;;  %v5510_v34 = vadd.f32 %v4305_v30, %v451_v31 }
 0x14c   : > { %v452_v35 = vmul.f32 %v4304_v28, %v446_v33  ;;  %4503 = vmatprep.mubr.msk.f32.mxu0 %vm418_vm0, %v5510_v34 }
 0x14e   : > { %v5514_v36 = vadd.f32 %v4305_v30, %v452_v35 }
 0x150   : > { %4504 = vmatmul.mubr.msk.f32.vlgmr.msra.gmra.mrb[0].mxu0 %vm418_vm0, %v5514_v36 }
 0x223   : > { %v4505_v37 = vpop.f32.mrb[0].mxu0 }
 0x224   : > { %v533_v38 = vpop.f32.mrb[1].mxu0 }
 0x225   : > { %4510 = vmatprep.mubr.msk.f32.mxu1 %vm548_vm2, %v533_v38  ;;  %v4986_v39 = vpack.i.bf16 %v4505_v37, %v533_v38 }
 0x227   : > { %4987 = vrot.lane.b32.xlu1 %v4986_v39, %s5384_s11  ;;  %4982 = vrot.lane.b32.xlu0 %v4986_v39, %s5385_s12 }
 0x22b   : > { %4992 = vrot.lane.b32.xlu1 %v4986_v39, %s5386_s15  ;;  %760 = vrot.lane.b32.xlu0 %v4505_v37, %s5387_s16 }
 0x22f   : > { %758 = vrot.lane.b32.xlu1 %v533_v38, %s5387_s16  ;;  %5002 = vrot.lane.b32.xlu0 %v4986_v39, %s6943_s17  ;;  %s4297_s17 = sshll.u32 %s6951_s14, 1 }
 0x233   : > { %4997 = vrot.lane.b32.xlu1 %v4986_v39, %s5389_s18  ;;  %976 = vrot.lane.b32.xlu0 %v4505_v37, %s5390_s19  ;;  %s5582_s18 = scalar_lea.vmem %s6942_s10, %s5568_s25 }
 0x237   : > { %974 = vrot.lane.b32.xlu1 %v533_v38, %s5390_s19  ;;  %5012 = vrot.lane.b32.xlu0 %v4986_v39, %s5391_s20  ;;  %s5396_s20 = smov 8  }
 0x23b   : > { %5007 = vrot.lane.b32.xlu1 %v4986_v39, %s5392_s21  ;;  %1192 = vrot.lane.b32.xlu0 %v4505_v37, %s5393_s23 }
 0x23f   : > { %1190 = vrot.lane.b32.xlu1 %v533_v38, %s5393_s23 }
 0x243   : > { %5017 = vrot.lane.b32.xlu1 %v4986_v39, %s5394_s24  ;;  %s5397_s24 = smov 16  }
 0x299   : > { %v4988_v40 = vpop.permute.xlu1 %4987  ;;  %v4983_v41 = vpop.permute.xlu0 %4982 }
 0x29a   : > { %v4990_v42 = vunpack.i.h.bf16 %v4988_v40  ;;  %v4989_v43 = vunpack.i.l.bf16 %v4988_v40  ;;  %v4985_v45 = vunpack.i.h.bf16 %v4983_v41  ;;  %v4984_v46 = vunpack.i.l.bf16 %v4983_v41 }
 0x29c   : > { %v4643_v48 = vpack.c.bf16 %v4990_v42, %v4989_v43  ;;  %v4637_v49 = vpack.c.bf16 %v4985_v45, %v4984_v46 }
 0x29d   : > { %v4993_v50 = vpop.permute.xlu1 %4992  ;;  %v5540_v51 = vpop.permute.xlu0 %760 }
 0x29e   : > { %v4995_v52 = vunpack.i.h.bf16 %v4993_v50  ;;  %v4994_v53 = vunpack.i.l.bf16 %v4993_v50  ;;  %4639 = vmatprep.subr.msk.bf16.mxu1 %vm5532_vm4, %v4637_v49  ;;  %4645 = vmatprep.subr.msk.bf16.mxu0 %vm5536_vm6, %v4643_v48 }
 0x29f   : > { %4642 = vmatpush3.bf16.xpose.msk.msra.mxu1 %vm5532_vm4, %v4637_v49  ;;  %4648 = vmatpush3.bf16.msk.msra.mxu0 %vm5536_vm6, %v4643_v48 }
 0x2a0   : > { %v5550_v54 = vpack.c.bf16 %v4995_v52, %v4994_v53 }
 0x2a1   : > { %v5552_v55 = vpop.permute.xlu1 %758  ;;  %v5003_v56 = vpop.permute.xlu0 %5002 }
 0x2a2   : > { %4651 = vmatprep.subr.msk.bf16.mxu0 %vm5532_vm4, %v5550_v54  ;;  %v5005_v58 = vunpack.i.h.bf16 %v5003_v56  ;;  %v5004_v59 = vunpack.i.l.bf16 %v5003_v56 }
 0x2a4   : > { %v5558_v63 = vpack.c.bf16 %v5005_v58, %v5004_v59 }
 0x2a5   : > { %v4998_v57 = vpop.permute.xlu1 %4997 }
 0x2a6   : > { %v5000_v60 = vunpack.i.h.bf16 %v4998_v57  ;;  %v4999_v61 = vunpack.i.l.bf16 %v4998_v57  ;;  %4511 = vmatmul.mubr.msk.f32.vlgmr.msra.gmra.mrb[0].mxu1 %vm548_vm2, %v4505_v37  ;;  %v5594_v37 = vpop.permute.xlu0 %976  ;;  %v4319_v57 = vld [vmem:[%s5574_s28 + $0x10] sm:$0xff] }
 0x2a8   : > { %v4655_v62 = vpack.c.bf16 %v5000_v60, %v4999_v61 }
 0x2a9   : > { %v5592_v33 = vpop.permute.xlu1 %974 }
 0x2aa   : > { %4657 = vmatprep.subr.msk.bf16.mxu1 %vm5536_vm6, %v4655_v62  ;;  %v5013_v45 = vpop.permute.xlu0 %5012 }
 0x2ab   : > { %4660 = vmatpush3.bf16.msk.msra.mxu1 %vm5536_vm6, %v4655_v62  ;;  %v5015_v46 = vunpack.i.h.bf16 %v5013_v45  ;;  %v5014_v48 = vunpack.i.l.bf16 %v5013_v45 }
 0x2ac   : > { %4663 = vmatprep.subr.msk.bf16.mxu1 %vm5532_vm4, %v5558_v63 }
 0x2ad   : > { %v5008_v35 = vpop.permute.xlu1 %5007  ;;  %v5605_v49 = vpack.c.bf16 %v5015_v46, %v5014_v48 }
 0x2ae   : > { %v5010_v39 = vunpack.i.h.bf16 %v5008_v35  ;;  %v5009_v40 = vunpack.i.l.bf16 %v5008_v35 }
 0x2b0   : > { %v4667_v43 = vpack.c.bf16 %v5010_v39, %v5009_v40 }
 0x379   : > { %v4512_v0 = vpop.f32.mrb[0].mxu1 }
 0x37a   : > { %v633_v3 = vmul.f32 0.35355338, %v4512_v0  ;;  %v623_v4 = vpop.f32.mrb[1].mxu1 }
 0x37b   : > { %v632_v6 = vmul.f32 0.35355338, %v623_v4 }
 0x37c   : > { %v637_v7 = vadd.f32 %v635_v1, %v633_v3 }
 0x37d   : > { %v636_v8 = vadd.f32 %v634_v5, %v632_v6 }
 0x37e   : > { %641 = vst.msk [vmem:[%s5582_s18 + $0x8] sm:$0xf] %vm640_vm7, %v637_v7  ;;  %v643_v9 = vsel %vm640_vm7, %v637_v7, -inf }
 0x37f   : > { %639 = vst.msk [vmem:[%s5582_s18] sm:$0xff] %vm638_vm8, %v636_v8  ;;  %v642_v10 = vsel %vm638_vm8, %v636_v8, -inf }
 0x380   : > { %v644_v11 = vmax.f32 %v642_v10, %v643_v9 }
 0x382   : > { %v645_v12 = vrot.slane %v644_v11, 4 }
 0x384   : > { %v646_v13 = vmax.f32 %v644_v11, %v645_v12 }
 0x386   : > { %v647_v14 = vrot.slane %v646_v13, 2 }
 0x388   : > { %v648_v15 = vmax.f32 %v646_v13, %v647_v14 }
 0x38a   : > { %v649_v16 = vrot.slane %v648_v15, 1 }
 0x38c   : > { %v650_v17 = vmax.f32 %v648_v15, %v649_v16 }
 0x38e   : > { %v651_v18 = vsub.f32 %v636_v8, %v650_v17  ;;  %v652_v19 = vsub.f32 %v637_v7, %v650_v17 }
 0x390   : > { %v653_v20 = vmul.f32 1.442695, %v651_v18  ;;  %v655_v21 = vmul.f32 1.442695, %v652_v19 }
 0x392   : > { %5220 = vpow2.f32 %v653_v20 }
 0x393   : > { %5222 = vpow2.f32 %v655_v21 }
 0x39c   : > { %v5221_v22 = vpop.eup %5220 }
 0x39d   : > { %v5223_v23 = vpop.eup %5222  ;;  %v657_v24 = vsel %vm638_vm8, %v5221_v22, 0.0 }
 0x39e   : > { %v658_v25 = vsel %vm640_vm7, %v5223_v23, 0.0 }
 0x39f   : > { %v659_v26 = vadd.f32 %v658_v25, %v657_v24 }
 0x3a1   : > { %v660_v27 = vrot.slane %v659_v26, 4 }
 0x3a3   : > { %v661_v28 = vadd.f32 %v660_v27, %v659_v26 }
 0x3a5   : > { %v662_v29 = vrot.slane %v661_v28, 2 }
 0x3a7   : > { %v663_v30 = vadd.f32 %v662_v29, %v661_v28 }
 0x3a9   : > { %v664_v31 = vrot.slane %v663_v30, 1 }
 0x3ab   : > { %v665_v32 = vadd.f32 %v664_v31, %v663_v30 }
 0x3ad   : > { %5224 = vrcp.f32 %v665_v32  ;;  %v4331_v32 = vld [vmem:[%s5574_s28 + $0x28] sm:$0xf] }
 0x3b7   : > { %v5225_v38 = vpop.eup %5224 }
 0x3b8   : > { %v667_v41 = vmul.f32 %v5225_v38, %v5221_v22  ;;  %v668_v42 = vmul.f32 %v5225_v38, %v5223_v23  ;;  %v5628_v22 = vpop.permute.xlu1 %1190  ;;  %v4330_v38 = vld [vmem:[%s5574_s28 + $0x20] sm:$0xff] }
 0x3ba   : > { %4517 = vmatprep.mubr.msk.f32.mxu0 %vm638_vm8, %v667_v41 }
 0x3bb   : > { %4518 = vmatmul.mubr.msk.f32.vlgmr.msra.gmra.mrb[2].mxu0 %vm638_vm8, %v668_v42 }
 0x3bc   : > { %4654 = vmatpush3.bf16.xpose.msk.msra.mxu0 %vm5532_vm4, %v5550_v54  ;;  %4524 = vmatprep.mubr.msk.f32.mxu0 %vm548_vm2, %v5552_v55  ;;  %v4320_v54 = vld [vmem:[%s5574_s28 + $0x18] sm:$0xf]  ;;  %v5018_v23 = vpop.permute.xlu1 %5017 }
 0x3bd   : > { %4669 = vmatprep.subr.msk.bf16.mxu0 %vm5536_vm6, %v4667_v43  ;;  %v5020_v25 = vunpack.i.h.bf16 %v5018_v23  ;;  %v5019_v26 = vunpack.i.l.bf16 %v5018_v23 }
 0x3bf   : > { %v4679_v29 = vpack.c.bf16 %v5020_v25, %v5019_v26 }
 0x3c3   : > { %4525 = vmatmul.mubr.msk.f32.vlgmr.msra.gmra.mrb[4].mxu0 %vm548_vm2, %v5540_v51 }
 0x3c4   : > { %4672 = vmatpush3.bf16.msk.msra.mxu0 %vm5536_vm6, %v4667_v43 }
 0x3c5   : > { %4675 = vmatprep.subr.msk.bf16.mxu0 %vm5532_vm4, %v5605_v49 }
 0x48e   : > { %v5614_v50 = vpop.f32.mrb[2].mxu0 }
 0x48f   : > { %v5616_v52 = vpop.f32.mrb[3].mxu0 }
 0x496   : > { %v4526_v53 = vpop.f32.mrb[4].mxu0 }
 0x497   : > { %v850_v55 = vmul.f32 0.35355338, %v4526_v53  ;;  %v840_v56 = vpop.f32.mrb[5].mxu0 }
 0x498   : > { %v849_v58 = vmul.f32 0.35355338, %v840_v56 }
 0x499   : > { %v855_v59 = vadd.f32 %v4320_v54, %v850_v55 }
 0x49a   : > { %v854_v60 = vadd.f32 %v4319_v57, %v849_v58 }
 0x49b   : > { %4322 = vst.msk [vmem:[%s5582_s18 + $0x18] sm:$0xf] %vm640_vm7, %v855_v59  ;;  %v860_v51 = vsel %vm640_vm7, %v855_v59, -inf }
 0x49c   : > { %4321 = vst.msk [vmem:[%s5582_s18 + $0x10] sm:$0xff] %vm638_vm8, %v854_v60  ;;  %v859_v61 = vsel %vm638_vm8, %v854_v60, -inf }
 0x49d   : > { %v861_v62 = vmax.f32 %v859_v61, %v860_v51 }
 0x49f   : > { %v862_v0 = vrot.slane %v861_v62, 4 }
 0x4a1   : > { %v863_v1 = vmax.f32 %v861_v62, %v862_v0 }
 0x4a3   : > { %v864_v3 = vrot.slane %v863_v1, 2 }
 0x4a5   : > { %v865_v4 = vmax.f32 %v863_v1, %v864_v3 }
 0x4a7   : > { %v866_v5 = vrot.slane %v865_v4, 1 }
 0x4a9   : > { %v867_v6 = vmax.f32 %v865_v4, %v866_v5 }
 0x4ab   : > { %v868_v7 = vsub.f32 %v854_v60, %v867_v6  ;;  %v869_v8 = vsub.f32 %v855_v59, %v867_v6 }
 0x4ad   : > { %v870_v9 = vmul.f32 1.442695, %v868_v7  ;;  %v872_v10 = vmul.f32 1.442695, %v869_v8 }
 0x4af   : > { %5226 = vpow2.f32 %v870_v9 }
 0x4b0   : > { %5228 = vpow2.f32 %v872_v10 }
 0x4b9   : > { %v5227_v11 = vpop.eup %5226 }
 0x4ba   : > { %v5229_v12 = vpop.eup %5228  ;;  %v874_v13 = vsel %vm638_vm8, %v5227_v11, 0.0 }
 0x4bb   : > { %v875_v14 = vsel %vm640_vm7, %v5229_v12, 0.0 }
 0x4bc   : > { %v876_v15 = vadd.f32 %v875_v14, %v874_v13 }
 0x4be   : > { %v877_v16 = vrot.slane %v876_v15, 4 }
 0x4c0   : > { %v878_v17 = vadd.f32 %v877_v16, %v876_v15  ;;  %v4342_v15 = vld [vmem:[%s5574_s28 + $0x38] sm:$0xf] }
 0x4c2   : > { %v879_v18 = vrot.slane %v878_v17, 2 }
 0x4c4   : > { %v880_v19 = vadd.f32 %v879_v18, %v878_v17 }
 0x4c6   : > { %v881_v20 = vrot.slane %v880_v19, 1 }
 0x4c8   : > { %v882_v21 = vadd.f32 %v881_v20, %v880_v19 }
 0x4ca   : > { %5230 = vrcp.f32 %v882_v21 }
 0x4d4   : > { %v5231_v24 = vpop.eup %5230 }
 0x4d5   : > { %v884_v27 = vmul.f32 %v5231_v24, %v5227_v11  ;;  %v885_v28 = vmul.f32 %v5231_v24, %v5229_v12  ;;  %v1193_v11 = vpop.permute.xlu0 %1192 }
 0x4d7   : > { %4531 = vmatprep.mubr.msk.f32.mxu1 %vm638_vm8, %v884_v27 }
 0x4d8   : > { %4532 = vmatmul.mubr.msk.f32.vlgmr.msra.gmra.mrb[2].mxu1 %vm638_vm8, %v885_v28 }
 0x4d9   : > { %4666 = vmatpush3.bf16.xpose.msk.msra.mxu1 %vm5532_vm4, %v5558_v63  ;;  %4538 = vmatprep.mubr.msk.f32.mxu1 %vm548_vm2, %v5592_v33 }
 0x4da   : > { %4681 = vmatprep.subr.msk.bf16.mxu1 %vm5536_vm6, %v4679_v29 }
 0x4e0   : > { %4539 = vmatmul.mubr.msk.f32.vlgmr.msra.gmra.mrb[4].mxu1 %vm548_vm2, %v5594_v37 }
 0x4e1   : > { %4684 = vmatpush3.bf16.msk.msra.mxu1 %vm5536_vm6, %v4679_v29 }
 0x5ab   : > { %v4533_v30 = vpop.f32.mrb[2].mxu1 }
 0x5ac   : > { %1410 = vrot.lane.b32.xlu1 %v4533_v30, %s5396_s20  ;;  %v965_v31 = vpop.f32.mrb[3].mxu1 }
 0x5ad   : > { %1408 = vrot.lane.b32.xlu0 %v965_v31, %s5396_s20 }
 0x5b3   : > { %v4540_v63 = vpop.f32.mrb[4].mxu1 }
 0x5b4   : > { %v1066_v35 = vmul.f32 0.35355338, %v4540_v63  ;;  %v1056_v33 = vpop.f32.mrb[5].mxu1 }
 0x5b5   : > { %v1065_v39 = vmul.f32 0.35355338, %v1056_v33 }
 0x5b6   : > { %v1071_v40 = vadd.f32 %v4331_v32, %v1066_v35 }
 0x5b7   : > { %v1070_v41 = vadd.f32 %v4330_v38, %v1065_v39 }
 0x5b8   : > { %4333 = vst.msk [vmem:[%s5582_s18 + $0x28] sm:$0xf] %vm640_vm7, %v1071_v40  ;;  %v1076_v37 = vsel %vm640_vm7, %v1071_v40, -inf }
 0x5b9   : > { %4332 = vst.msk [vmem:[%s5582_s18 + $0x20] sm:$0xff] %vm638_vm8, %v1070_v41  ;;  %v1075_v42 = vsel %vm638_vm8, %v1070_v41, -inf }
 0x5ba   : > { %v1077_v43 = vmax.f32 %v1075_v42, %v1076_v37 }
 0x5bc   : > { %v1078_v45 = vrot.slane %v1077_v43, 4 }
 0x5be   : > { %v1079_v46 = vmax.f32 %v1077_v43, %v1078_v45 }
 0x5c0   : > { %v1080_v48 = vrot.slane %v1079_v46, 2 }
 0x5c2   : > { %v1081_v53 = vmax.f32 %v1079_v46, %v1080_v48 }
 0x5c4   : > { %v1082_v54 = vrot.slane %v1081_v53, 1 }
 0x5c6   : > { %v1083_v55 = vmax.f32 %v1081_v53, %v1082_v54 }
 0x5c8   : > { %v1084_v56 = vsub.f32 %v1070_v41, %v1083_v55  ;;  %v1085_v57 = vsub.f32 %v1071_v40, %v1083_v55  ;;  %v1437_v55 = vld [vmem:[%s6935_s3] sm:$0xff] }
 0x5ca   : > { %v1086_v58 = vmul.f32 1.442695, %v1084_v56  ;;  %v1088_v59 = vmul.f32 1.442695, %v1085_v57  ;;  %v1438_v56 = vld [vmem:[%s6935_s3 + $0x8] sm:$0xff]  ;;  %v1439_v57 = vld [vmem:[%s6935_s3 + $0x10] sm:$0xff] }
 0x5cc   : > { %5232 = vpow2.f32 %v1086_v58  ;;  %v4685_v58 = vpack.c.bf16 %v1438_v56, %v1437_v55 }
 0x5cd   : > { %5234 = vpow2.f32 %v1088_v59  ;;  %v1440_v59 = vld [vmem:[%s6935_s3 + $0x18] sm:$0xff] }
 0x5ce   : > { %4686 = vmatprep.subr.bf16.mxu1 %v4685_v58 }
 0x5d6   : > { %v5233_v60 = vpop.eup %5232 }
 0x5d7   : > { %v5235_v51 = vpop.eup %5234  ;;  %v1090_v61 = vsel %vm638_vm8, %v5233_v60, 0.0 }
 0x5d8   : > { %v1091_v62 = vsel %vm640_vm7, %v5235_v51, 0.0 }
 0x5d9   : > { %v1092_v0 = vadd.f32 %v1091_v62, %v1090_v61 }
 0x5db   : > { %v1093_v1 = vrot.slane %v1092_v0, 4 }
 0x5dd   : > { %v1094_v3 = vadd.f32 %v1093_v1, %v1092_v0 }
 0x5df   : > { %v1095_v4 = vrot.slane %v1094_v3, 2 }
 0x5e1   : > { %v1096_v5 = vadd.f32 %v1095_v4, %v1094_v3 }
 0x5e3   : > { %v1097_v6 = vrot.slane %v1096_v5, 1 }
 0x5e5   : > { %v1098_v7 = vadd.f32 %v1097_v6, %v1096_v5 }
 0x5e7   : > { %5236 = vrcp.f32 %v1098_v7 }
 0x5f1   : > { %v5237_v8 = vpop.eup %5236 }
 0x5f2   : > { %v1100_v9 = vmul.f32 %v5237_v8, %v5233_v60  ;;  %v1101_v10 = vmul.f32 %v5237_v8, %v5235_v51  ;;  %v4689_v60 = vpack.c.bf16 %v1440_v59, %v1439_v57 }
 0x5f4   : > { %4545 = vmatprep.mubr.msk.f32.mxu0 %vm638_vm8, %v1100_v9 }
 0x5f5   : > { %4546 = vmatmul.mubr.msk.f32.vlgmr.msra.gmra.mrb[6].mxu0 %vm638_vm8, %v1101_v10 }
 0x5f6   : > { %4678 = vmatpush3.bf16.xpose.msk.msra.mxu0 %vm5532_vm4, %v5605_v49  ;;  %4552 = vmatprep.mubr.msk.f32.mxu0 %vm548_vm2, %v5628_v22  ;;  %v4341_v49 = vld [vmem:[%s5574_s28 + $0x30] sm:$0xff] }
 0x5fd   : > { %4553 = vmatmul.mubr.msk.f32.vlgmr.msra.gmra.mrb[8].mxu0 %vm548_vm2, %v1193_v11 }
 0x61e   : > { %v1411_v62 = vpop.permute.xlu1 %1410 }
 0x61f   : > { %v1409_v0 = vpop.permute.xlu0 %1408  ;;  %v1431_v6 = vsel %vm548_vm2, %v5614_v50, %v1411_v62 }
 0x620   : > { %v1430_v4 = vsel %vm548_vm2, %v5616_v52, %v1409_v0 }
 0x6c8   : > { %v4547_v12 = vpop.f32.mrb[6].mxu0 }
 0x6c9   : > { %1418 = vrot.lane.b32.xlu1 %v4547_v12, %s5397_s24  ;;  %v1181_v13 = vpop.f32.mrb[7].mxu0 }
 0x6ca   : > { %1416 = vrot.lane.b32.xlu0 %v1181_v13, %s5397_s24 }
 0x6d0   : > { %v4554_v14 = vpop.f32.mrb[8].mxu0 }
 0x6d1   : > { %v1282_v16 = vmul.f32 0.35355338, %v4554_v14  ;;  %v1272_v17 = vpop.f32.mrb[9].mxu0 }
 0x6d2   : > { %v1281_v18 = vmul.f32 0.35355338, %v1272_v17 }
 0x6d3   : > { %v1287_v19 = vadd.f32 %v4342_v15, %v1282_v16 }
 0x6d4   : > { %v1286_v20 = vadd.f32 %v4341_v49, %v1281_v18 }
 0x6d5   : > { %4344 = vst.msk [vmem:[%s5582_s18 + $0x38] sm:$0xf] %vm640_vm7, %v1287_v19  ;;  %v1292_v21 = vsel %vm640_vm7, %v1287_v19, -inf }
 0x6d6   : > { %4343 = vst.msk [vmem:[%s5582_s18 + $0x30] sm:$0xff] %vm638_vm8, %v1286_v20  ;;  %v1291_v22 = vsel %vm638_vm8, %v1286_v20, -inf }
 0x6d7   : > { %v1293_v23 = vmax.f32 %v1291_v22, %v1292_v21 }
 0x6d9   : > { %v1294_v24 = vrot.slane %v1293_v23, 4 }
 0x6db   : > { %v1295_v25 = vmax.f32 %v1293_v23, %v1294_v24 }
 0x6dd   : > { %v1296_v26 = vrot.slane %v1295_v25, 2 }
 0x6df   : > { %v1297_v27 = vmax.f32 %v1295_v25, %v1296_v26 }
 0x6e1   : > { %v1298_v28 = vrot.slane %v1297_v27, 1 }
 0x6e3   : > { %v1299_v29 = vmax.f32 %v1297_v27, %v1298_v28 }
 0x6e5   : > { %v1300_v30 = vsub.f32 %v1286_v20, %v1299_v29  ;;  %v1301_v31 = vsub.f32 %v1287_v19, %v1299_v29 }
 0x6e7   : > { %v1302_v63 = vmul.f32 1.442695, %v1300_v30  ;;  %v1304_v32 = vmul.f32 1.442695, %v1301_v31  ;;  %v5704_v31 = vld [vmem:[%s6937_s5 + $0x10] sm:$0xff] }
 0x6e9   : > { %5238 = vpow2.f32 %v1302_v63  ;;  %v1552_v63 = vld [vmem:[%s6937_s5 + $0x18] sm:$0xf] }
 0x6ea   : > { %5240 = vpow2.f32 %v1304_v32  ;;  %v4693_v32 = vpack.c.bf16 %v1552_v63, %v5704_v31 }
 0x6ec   : > { %4695 = vmatprep.subr.msk.bf16.mxu0 %vm5536_vm6, %v4693_v32 }
 0x6ed   : > { %4698 = vmatpush3.bf16.msk.msra.mxu0 %vm5536_vm6, %v4693_v32 }
 0x6f3   : > { %v5239_v35 = vpop.eup %5238 }
 0x6f4   : > { %v5241_v33 = vpop.eup %5240  ;;  %v1306_v38 = vsel %vm638_vm8, %v5239_v35, 0.0 }
 0x6f5   : > { %v1307_v39 = vsel %vm640_vm7, %v5241_v33, 0.0 }
 0x6f6   : > { %v1308_v40 = vadd.f32 %v1307_v39, %v1306_v38 }
 0x6f8   : > { %v1309_v41 = vrot.slane %v1308_v40, 4 }
 0x6fa   : > { %v1310_v37 = vadd.f32 %v1309_v41, %v1308_v40  ;;  %v4350_v40 = vld [vmem:[%s6937_s5 + $0x1c] ss:$0 sm:$0xff] }
 0x6fc   : > { %v1311_v42 = vrot.slane %v1310_v37, 2 }
 0x6fe   : > { %v1312_v43 = vadd.f32 %v1311_v42, %v1310_v37  ;;  %v5722_v42 = vld [vmem:[%s6937_s5] sm:$0xff] }
 0x700   : > { %v1313_v45 = vrot.slane %v1312_v43, 1 }
 0x702   : > { %v1314_v46 = vadd.f32 %v1313_v45, %v1312_v43  ;;  %v5727_v45 = vld [vmem:[%s6937_s5 + $0x8] sm:$0xff] }
 0x704   : > { %5242 = vrcp.f32 %v1314_v46 }
 0x70e   : > { %v5243_v48 = vpop.eup %5242 }
 0x70f   : > { %v1316_v53 = vmul.f32 %v5243_v48, %v5239_v35  ;;  %v1317_v54 = vmul.f32 %v5243_v48, %v5241_v33 }
 0x711   : > { %4559 = vmatprep.mubr.msk.f32.mxu1 %vm638_vm8, %v1316_v53 }
 0x712   : > { %4560 = vmatmul.mubr.msk.f32.vlgmr.msra.gmra.mrb[6].mxu1 %vm638_vm8, %v1317_v54 }
 0x713   : > { %4688 = vmatpush3.bf16.msra.mxu1 %v4685_v58 }
 0x714   : > { %4690 = vmatprep.subr.bf16.mxu1 %v4689_v60 }
 0x717   : > { %4692 = vmatpush3.bf16.msra.mxu1 %v4689_v60 }
 0x73b   : > { %v1419_v1 = vpop.permute.xlu1 %1418 }
 0x73c   : > { %v1417_v3 = vpop.permute.xlu0 %1416  ;;  %v1433_v9 = vsel %vm418_vm0, %v1431_v6, %v1419_v1  ;;  %v1719_v1 = vld [vmem:[%s6938_s6] sm:$0xff]  ;;  %v1722_v6 = vld [vmem:[%s6938_s6 + $0x18] sm:$0xff] }
 0x73d   : > { %v1432_v7 = vsel %vm418_vm0, %v1430_v4, %v1417_v3  ;;  %v1720_v3 = vld [vmem:[%s6938_s6 + $0x8] sm:$0xff]  ;;  %v1721_v4 = vld [vmem:[%s6938_s6 + $0x10] sm:$0xff] }
 0x7e5   : > { %v4561_v51 = vpop.f32.mrb[6].mxu1 }
 0x7e6   : > { %1426 = vrot.lane.b32.xlu1 %v4561_v51, %s5398_s26  ;;  %v1397_v61 = vpop.f32.mrb[7].mxu1 }
 0x7e7   : > { %1424 = vrot.lane.b32.xlu0 %v1397_v61, %s5398_s26 }
 0x858   : > { %v1427_v5 = vpop.permute.xlu1 %1426 }
 0x859   : > { %v1425_v8 = vpop.permute.xlu0 %1424  ;;  %v1436_v11 = vsel %vm1434_vm9, %v1433_v9, %v1427_v5  ;;  %v4699_v5 = vpack.c.bf16 %v1720_v3, %v1719_v1 }
 0x85a   : > { %v1435_v10 = vsel %vm1434_vm9, %v1432_v7, %v1425_v8  ;;  %v4703_v7 = vpack.c.bf16 %v1722_v6, %v1721_v4 }
 0x85b   : > { %4570 = vmatprep.mubr.msk.f32.mxu1 %vm1441_vm10, %v1435_v10  ;;  %4700 = vmatprep.subr.bf16.mxu0 %v4699_v5 }
 0x85c   : > { %4571 = vmatmul.mubr.msk.f32.vlgmr.msra.gmra.mrb[8].mxu1 %vm1441_vm10, %v1436_v11 }
 0x92f   : > { %v4572_v12 = vpop.f32.mrb[8].mxu1 }
 0x930   : > { %v1520_v13 = vadd.f32 %v4572_v12, %v5514_v36  ;;  %v1514_v52 = vpop.f32.mrb[9].mxu1 }
 0x931   : > { %v1515_v14 = vadd.f32 %v1514_v52, %v5510_v34 }
 0x932   : > { %v1526_v15 = vsel %vm422_vm1, %v1520_v13, 0.0 }
 0x933   : > { %1527 = vadd.xlane.f32.xlu1 %v1526_v15  ;;  %v1523_v50 = vsel %vm418_vm0, %v1515_v14, 0.0 }
 0x934   : > { %1524 = vadd.xlane.f32.xlu0 %v1523_v50  ;;  %v4355_v50 = vld [vmem:[%s6937_s5 + $0x1e] ss:$0 sm:$0xff] }
 0x9c0   : > { %v1528_v16 = vpop.xlane.xlu1 %1527 }
 0x9c1   : > { %v1530_v17 = vmul.f32 0.0625, %v1528_v16  ;;  %v1525_v49 = vpop.xlane.xlu0 %1524 }
 0x9c2   : > { %v1529_v18 = vmul.f32 0.0625, %v1525_v49 }
 0x9c3   : > { %v1532_v19 = vsub.f32 %v1520_v13, %v1530_v17 }
 0x9c4   : > { %v1531_v20 = vsub.f32 %v1515_v14, %v1529_v18  ;;  %v4354_v14 = vld [vmem:[%s6937_s5 + $0x1d] ss:$0 sm:$0xff] }
 0x9c5   : > { %v1534_v23 = vmul.f32 %v1532_v19, %v1532_v19 }
 0x9c6   : > { %v1533_v21 = vmul.f32 %v1531_v20, %v1531_v20 }
 0x9c7   : > { %v1538_v36 = vsel %vm422_vm1, %v1534_v23, 0.0 }
 0x9c8   : > { %v1535_v22 = vsel %vm418_vm0, %v1533_v21, 0.0 }
 0x9c9   : > { %1536 = vadd.xlane.f32.xlu0 %v1535_v22 }
 0x9cd   : > { %1539 = vadd.xlane.f32.xlu0 %v1538_v36  ;;  %v5774_v36 = vld [vmem:[%s6938_s6 + $0x28] sm:$0xff] }
 0xa56   : > { %v1537_v34 = vpop.xlane.xlu0 %1536 }
 0xa57   : > { %v1541_v24 = vmul.f32 0.0625, %v1537_v34  ;;  %v5785_v34 = vld [vmem:[%s6938_s6 + $0x20] sm:$0xff] }
 0xa59   : > { %v1543_v25 = vadd.f32 1e-05, %v1541_v24 }
 0xa5a   : > { %v1540_v26 = vpop.xlane.xlu0 %1539 }
 0xa5b   : > { %5244 = vrsqrt.f32 %v1543_v25  ;;  %v1542_v27 = vmul.f32 0.0625, %v1540_v26 }
 0xa5d   : > { %v1544_v28 = vadd.f32 1e-05, %v1542_v27 }
 0xa5f   : > { %5246 = vrsqrt.f32 %v1544_v28 }
 0xa65   : > { %v5245_v29 = vpop.eup %5244 }
 0xa66   : > { %v1547_v30 = vmul.f32 %v5245_v29, %v1531_v20 }
 0xa68   : > { %1558 = vxpose.xlu0.b32.start [1/2] (short) (narrow) %v1547_v30, 16 }
 0xa69   : > { %v5247_v35 = vpop.eup %5246 }
 0xa6a   : > { %v1548_v33 = vmul.f32 %v5247_v35, %v1532_v19 }
 0xa6c   : > { %1559 = vxpose.xlu0.b32.end [2/2] (short) (narrow) %v1548_v33, 16 }
 0xa95   : > { %2213 = vrot.lane.b32.xlu0 %v5774_v36, %s5390_s19 }
 0xae8   : > { %v1574_v38 = vpop.trf.xlu0 }
 0xae9   : > { %4577 = vmatprep.mubr.msk.f32.mxu0 %vm638_vm8, %v1574_v38 }
 0xaec   : > { %v1575_v39 = vpop.trf.xlu0 }
 0xaed   : > { %4578 = vmatmul.mubr.msk.f32.vlgmr.msra.gmra.mrb[10].mxu0 %vm638_vm8, %v1575_v39 }
 0xaee   : > { %4702 = vmatpush3.bf16.msra.mxu0 %v4699_v5 }
 0xaef   : > { %4704 = vmatprep.subr.bf16.mxu0 %v4703_v7 }
 0xaf2   : > { %4706 = vmatpush3.bf16.msra.mxu0 %v4703_v7 }
 0xbc0   : > { %v4579_v41 = vpop.f32.mrb[10].mxu0 }
 0xbc1   : > { %v1665_v37 = vpop.f32.mrb[11].mxu0  ;;  %v1671_v47 = vadd.f32 %v4579_v41, %v4350_v40 }
 0xbc2   : > { %v1666_v43 = vadd.f32 %v4350_v40, %v1665_v37 }
 0xbc3   : > { %v1677_v53 = vadd.f32 %v5727_v45, %v1671_v47 }
 0xbc4   : > { %v1676_v46 = vadd.f32 %v5722_v42, %v1666_v43 }
 0xbc5   : > { %v1683_v54 = vsel %vm1441_vm10, %v1677_v53, 0.0 }
 0xbc6   : > { %v1680_v48 = vsel %vm1441_vm10, %v1676_v46, 0.0 }
 0xbc7   : > { %1681 = vadd.xlane.f32.xlu1 %v1680_v48 }
 0xbcb   : > { %1684 = vadd.xlane.f32.xlu1 %v1683_v54 }
 0xc54   : > { %v1682_v55 = vpop.xlane.xlu1 %1681 }
 0xc55   : > { %v1687_v56 = vmul.f32 0.03125, %v1682_v55 }
 0xc57   : > { %v1689_v57 = vsub.f32 %v1676_v46, %v1687_v56 }
 0xc58   : > { %v1685_v58 = vpop.xlane.xlu1 %1684 }
 0xc59   : > { %v1688_v59 = vmul.f32 0.03125, %v1685_v58  ;;  %v1691_v60 = vmul.f32 %v1689_v57, %v1689_v57 }
 0xc5b   : > { %v1690_v51 = vsub.f32 %v1677_v53, %v1688_v59  ;;  %v1693_v61 = vsel %vm1441_vm10, %v1691_v60, 0.0  ;;  %v2214_v53 = vpop.permute.xlu0 %2213 }
 0xc5c   : > { %1694 = vadd.xlane.f32.xlu1 %v1693_v61 }
 0xc5d   : > { %v1692_v62 = vmul.f32 %v1690_v51, %v1690_v51 }
 0xc5f   : > { %v1696_v0 = vsel %vm1441_vm10, %v1692_v62, 0.0 }
 0xc60   : > { %1697 = vadd.xlane.f32.xlu1 %v1696_v0 }
 0xce9   : > { %v1695_v8 = vpop.xlane.xlu1 %1694 }
 0xcea   : > { %v1699_v9 = vmul.f32 0.03125, %v1695_v8 }
 0xcec   : > { %v1701_v10 = vadd.f32 1e-05, %v1699_v9 }
 0xced   : > { %v1698_v11 = vpop.xlane.xlu1 %1697 }
 0xcee   : > { %5248 = vrsqrt.f32 %v1701_v10  ;;  %v1700_v12 = vmul.f32 0.03125, %v1698_v11 }
 0xcf0   : > { %v1702_v13 = vadd.f32 1e-05, %v1700_v12 }
 0xcf2   : > { %5250 = vrsqrt.f32 %v1702_v13 }
 0xcf8   : > { %v5249_v52 = vpop.eup %5248 }
 0xcf9   : > { %v1705_v15 = vmul.f32 %v5249_v52, %v1689_v57 }
 0xcfb   : > { %v1711_v16 = vmul.f32 %v4354_v14, %v1705_v15 }
 0xcfc   : > { %v5251_v17 = vpop.eup %5250 }
 0xcfd   : > { %v1706_v49 = vmul.f32 %v5251_v17, %v1690_v51  ;;  %v1717_v18 = vadd.f32 %v4355_v50, %v1711_v16 }
 0xcff   : > { %v1712_v19 = vmul.f32 %v4354_v14, %v1706_v49  ;;  %4588 = vmatprep.mubr.msk.f32.mxu0 %vm1441_vm10, %v1717_v18 }
 0xd01   : > { %v1718_v20 = vadd.f32 %v4355_v50, %v1712_v19 }
 0xd03   : > { %4589 = vmatmul.mubr.msk.f32.vlgmr.msra.gmra.mrb[12].mxu0 %vm1441_vm10, %v1718_v20 }
 0xd04   : > { %4602 = vmatprep.mubr.msk.f32.mxu0 %vm418_vm0, %v5490_v2 }
 0xdd6   : > { %v5757_v21 = vpop.f32.mrb[12].mxu0 }
 0xdd7   : > { %v5759_v22 = vpop.f32.mrb[13].mxu0 }
 0xdd8   : > { %4595 = vmatprep.mubr.msk.f32.mxu1 %vm548_vm2, %v5759_v22  ;;  %v5765_v23 = vpack.i.bf16 %v5757_v21, %v5759_v22 }
 0xdda   : > { %5022 = vrot.lane.b32.xlu1 %v5765_v23, %s5393_s23  ;;  %s394_s23 = scalar_lea.vmem %s6933_s1, %s4297_s17 }
 0xdde   : > { %5027 = vrot.lane.b32.xlu1 %v5765_v23, %s5385_s12 }
 0xde2   : > { %2116 = vrot.lane.b32.xlu1 %v5759_v22, %s5387_s16 }
 0xde6   : > { %2118 = vrot.lane.b32.xlu1 %v5757_v21, %s5387_s16 }
 0xdea   : > { %2211 = vrot.lane.b32.xlu1 %v5785_v34, %s5390_s19 }
 0xe4c   : > { %v5023_v24 = vpop.permute.xlu1 %5022 }
 0xe4d   : > { %v5025_v25 = vunpack.i.h.bf16 %v5023_v24  ;;  %v5024_v26 = vunpack.i.l.bf16 %v5023_v24 }
 0xe4f   : > { %v4707_v27 = vpack.c.bf16 %v5025_v25, %v5024_v26 }
 0xe50   : > { %v5028_v28 = vpop.permute.xlu1 %5027 }
 0xe51   : > { %v5030_v29 = vunpack.i.h.bf16 %v5028_v28  ;;  %v5029_v30 = vunpack.i.l.bf16 %v5028_v28  ;;  %4709 = vmatprep.subr.msk.bf16.mxu1 %vm5532_vm4, %v4707_v27 }
 0xe52   : > { %4712 = vmatpush3.bf16.xpose.msk.msra.mxu1 %vm5532_vm4, %v4707_v27 }
 0xe53   : > { %v4717_v63 = vpack.c.bf16 %v5030_v29, %v5029_v30 }
 0xe54   : > { %v2117_v32 = vpop.permute.xlu1 %2116 }
 0xe55   : > { %4719 = vmatprep.subr.msk.bf16.mxu1 %vm5532_vm4, %v4717_v63 }
 0xe58   : > { %v2119_v35 = vpop.permute.xlu1 %2118 }
 0xe59   : > { %4596 = vmatmul.mubr.msk.f32.vlgmr.msra.gmra.mrb[10].mxu1 %vm548_vm2, %v5757_v21 }
 0xe5a   : > { %4722 = vmatpush3.bf16.xpose.msk.msra.mxu1 %vm5532_vm4, %v4717_v63  ;;  %4609 = vmatprep.mubr.msk.f32.mxu1 %vm548_vm2, %v2117_v32 }
 0xe5c   : > { %v2212_v57 = vpop.permute.xlu1 %2211 }
 0xe61   : > { %4610 = vmatmul.mubr.msk.f32.vlgmr.msra.gmra.mrb[12].mxu1 %vm548_vm2, %v2119_v35 }
 0xe62   : > { %4630 = vmatprep.mubr.msk.f32.mxu1 %vm418_vm0, %v5490_v2 }
 0xf2c   : > { %v4597_v33 = vpop.f32.mrb[10].mxu1 }
 0xf2d   : > { %v1898_v38 = vmul.f32 0.35355338, %v4597_v33  ;;  %v1888_v39 = vpop.f32.mrb[11].mxu1 }
 0xf2e   : > { %v1897_v40 = vmul.f32 0.35355338, %v1888_v39 }
 0xf2f   : > { %v1902_v41 = vadd.f32 %v5774_v36, %v1898_v38 }
 0xf30   : > { %v1901_v37 = vadd.f32 %v5785_v34, %v1897_v40 }
 0xf31   : > { %v1904_v47 = vsel %vm418_vm0, %v1902_v41, -inf }
 0xf32   : > { %v1903_v43 = vsel %vm418_vm0, %v1901_v37, -inf }
 0xf33   : > { %v1905_v46 = vmax.f32 %v1903_v43, %v1904_v47 }
 0xf34   : > { %v4611_v48 = vpop.f32.mrb[12].mxu1 }
 0xf35   : > { %v1906_v54 = vrot.slane %v1905_v46, 4  ;;  %v2208_v55 = vmul.f32 0.35355338, %v4611_v48  ;;  %v2198_v56 = vpop.f32.mrb[13].mxu1  ;;  %v5821_v48 = vld [vmem:[%s6938_s6 + $0x38] sm:$0xff] }
 0xf36   : > { %v2207_v2 = vmul.f32 0.35355338, %v2198_v56 }
 0xf37   : > { %v1907_v58 = vmax.f32 %v1905_v46, %v1906_v54  ;;  %v2218_v59 = vadd.f32 %v2214_v53, %v2208_v55  ;;  %v5816_v46 = vld [vmem:[%s6938_s6 + $0x30] sm:$0xff] }
 0xf38   : > { %v2217_v60 = vadd.f32 %v2212_v57, %v2207_v2 }
 0xf39   : > { %v1908_v51 = vrot.slane %v1907_v58, 2  ;;  %v2220_v61 = vsel %vm418_vm0, %v2218_v59, -inf }
 0xf3a   : > { %v2219_v62 = vsel %vm418_vm0, %v2217_v60, -inf }
 0xf3b   : > { %v1909_v0 = vmax.f32 %v1907_v58, %v1908_v51  ;;  %v2221_v1 = vmax.f32 %v2219_v62, %v2220_v61  ;;  %v5371_v51 = vld [vmem:[%s5487_s22] sm:$0xff] }
 0xf3d   : > { %v1910_v3 = vrot.slane %v1909_v0, 1  ;;  %v2222_v4 = vrot.slane %v2221_v1, 4 }
 0xf3f   : > { %v1911_v5 = vmax.f32 %v1909_v0, %v1910_v3  ;;  %v2223_v6 = vmax.f32 %v2221_v1, %v2222_v4  ;;  %v5399_v4 = vmov 32  }
 0xf40   : > { %5047 = vset.pattern.permute.xlu0 %v5399_v4  ;;  %5046 = vset.pattern.permute.xlu1 %v5399_v4 }
 0xf41   : > { %v1912_v7 = vsub.f32 %v1901_v37, %v1911_v5  ;;  %v1913_v8 = vsub.f32 %v1902_v41, %v1911_v5  ;;  %v2224_v9 = vrot.slane %v2223_v6, 2 }
 0xf43   : > { %v1914_v10 = vmul.f32 1.442695, %v1912_v7  ;;  %v1916_v11 = vmul.f32 1.442695, %v1913_v8  ;;  %v2225_v12 = vmax.f32 %v2223_v6, %v2224_v9 }
 0xf45   : > { %5252 = vpow2.f32 %v1914_v10  ;;  %v2226_v13 = vrot.slane %v2225_v12, 1 }
 0xf46   : > { %5254 = vpow2.f32 %v1916_v11 }
 0xf47   : > { %v2227_v52 = vmax.f32 %v2225_v12, %v2226_v13 }
 0xf49   : > { %v2228_v14 = vsub.f32 %v2217_v60, %v2227_v52  ;;  %v2229_v15 = vsub.f32 %v2218_v59, %v2227_v52  ;;  %v5827_v60 = vld [vmem:[%s5487_s22 + $0x8] sm:$0xf]  ;;  %s5400_s22 = smov 32  }
 0xf4b   : > { %v2230_v50 = vmul.f32 1.442695, %v2228_v14  ;;  %v2232_v16 = vmul.f32 1.442695, %v2229_v15 }
 0xf4d   : > { %5256 = vpow2.f32 %v2230_v50 }
 0xf4e   : > { %5258 = vpow2.f32 %v2232_v16 }
 0xf4f   : > { %v5253_v17 = vpop.eup %5252 }
 0xf50   : > { %v5255_v49 = vpop.eup %5254  ;;  %v1918_v18 = vsel %vm418_vm0, %v5253_v17, 0.0 }
 0xf51   : > { %v1919_v19 = vsel %vm418_vm0, %v5255_v49, 0.0 }
 0xf52   : > { %v1920_v20 = vadd.f32 %v1919_v19, %v1918_v18 }
 0xf54   : > { %v1921_v24 = vrot.slane %v1920_v20, 4 }
 0xf56   : > { %v1922_v25 = vadd.f32 %v1921_v24, %v1920_v20 }
 0xf57   : > { %v5257_v26 = vpop.eup %5256 }
 0xf58   : > { %v5259_v27 = vpop.eup %5258  ;;  %v1923_v28 = vrot.slane %v1922_v25, 2  ;;  %v2234_v29 = vsel %vm418_vm0, %v5257_v26, 0.0 }
 0xf59   : > { %v2235_v30 = vsel %vm418_vm0, %v5259_v27, 0.0 }
 0xf5a   : > { %v2236_v63 = vadd.f32 %v2235_v30, %v2234_v29  ;;  %v1924_v32 = vadd.f32 %v1923_v28, %v1922_v25 }
 0xf5c   : > { %v2237_v35 = vrot.slane %v2236_v63, 4  ;;  %v1925_v33 = vrot.slane %v1924_v32, 1 }
 0xf5e   : > { %v2238_v38 = vadd.f32 %v2237_v35, %v2236_v63  ;;  %v1926_v39 = vadd.f32 %v1925_v33, %v1924_v32 }
 0xf60   : > { %5260 = vrcp.f32 %v1926_v39  ;;  %v2239_v40 = vrot.slane %v2238_v38, 2 }
 0xf62   : > { %v2240_v41 = vadd.f32 %v2239_v40, %v2238_v38 }
 0xf64   : > { %v2241_v37 = vrot.slane %v2240_v41, 1 }
 0xf66   : > { %v2242_v47 = vadd.f32 %v2241_v37, %v2240_v41 }
 0xf68   : > { %5262 = vrcp.f32 %v2242_v47 }
 0xf6a   : > { %v5261_v43 = vpop.eup %5260 }
 0xf6b   : > { %v1928_v53 = vmul.f32 %v5261_v43, %v5253_v17  ;;  %v1929_v54 = vmul.f32 %v5261_v43, %v5255_v49 }
 0xf6d   : > { %v1932_v55 = vmul.f32 %v5816_v46, %v1928_v53  ;;  %v1933_v56 = vmul.f32 %v5821_v48, %v1929_v54 }
 0xf6f   : > { %v4713_v57 = vpack.c.bf16 %v1933_v56, %v1932_v55 }
 0xf71   : > { %4714 = vmatprep.subr.bf16.mxu0 %v4713_v57 }
 0xf72   : > { %v5263_v2 = vpop.eup %5262  ;;  %4716 = vmatpush3.bf16.msra.mxu0 %v4713_v57 }
 0xf73   : > { %v2244_v58 = vmul.f32 %v5263_v2, %v5257_v26  ;;  %v2245_v59 = vmul.f32 %v5263_v2, %v5259_v27 }
 0xf75   : > { %2248 = vrot.lane.b32.xlu1 %v2244_v58, %s5397_s24  ;;  %4603 = vmatmul.mubr.msk.f32.vlgmr.msra.gmra.mrb[14].mxu0 %vm418_vm0, %v5827_v60 }
 0xf76   : > { %4616 = vmatprep.mubr.msk.f32.mxu0 %vm418_vm0, %v5371_v51 }
 0xf79   : > { %2250 = vrot.lane.b32.xlu1 %v2245_v59, %s5397_s24 }
 0xfe7   : > { %v2249_v61 = vpop.permute.xlu1 %2248 }
 0xfe8   : > { %v2254_v0 = vmul.f32 %v2249_v61, %v5816_v46 }
 0xfeb   : > { %v2251_v62 = vpop.permute.xlu1 %2250 }
 0xfec   : > { %v2255_v1 = vmul.f32 %v2251_v62, %v5821_v48 }
 0xfee   : > { %v5031_v3 = vpack.i.bf16 %v2255_v1, %v2254_v0 }
 0xff0   : > { %5032 = vrot.lane.b32.xlu1 %v5031_v3, %s5390_s19 }
 0xff4   : > { %5037 = vrot.lane.b32.xlu1 %v5765_v23, %s5386_s15  ;;  %s6949_s15 = smov 80  }
 0xff8   : > { %2431 = vrot.lane.b32.xlu1 %v5759_v22, %s5390_s19 }
 0xffc   : > { %2433 = vrot.lane.b32.xlu1 %v5757_v21, %s5390_s19 }
0x1000   : > { %2524 = vrot.lane.b32.xlu1 %v5785_v34, %s5385_s12 }
0x1004   : > { %2526 = vrot.lane.b32.xlu1 %v5774_v36, %s5385_s12 }
0x1048   : > { %v5849_v5 = vpop.f32.mrb[14].mxu0 }
0x1049   : > { %v5851_v23 = vpop.f32.mrb[15].mxu0  ;;  %v2053_v29 = vrot.slane %v5849_v5, 3 }
0x104a   : > { %v2016_v22 = vrot.slane %v5851_v23, 1  ;;  %v2020_v6 = vrot.slane %v5851_v23, 2  ;;  %v2024_v21 = vrot.slane %v5851_v23, 3  ;;  %v2032_v16 = vrot.slane %v5851_v23, 5 }
0x104c   : > { %2017 = vrot.lane.b32.xlu0 %v2016_v22, %s5397_s24  ;;  %v5891_v22 = vld [vmem:[%s6937_s5 + $0x18] sm:$0xff] }
0x1050   : > { %2021 = vrot.lane.b32.xlu0 %v2020_v6, %s5400_s22  ;;  %v5401_v6 = vmov 33  }
0x1054   : > { %2025 = vrot.lane.b32.xlu0 %v2024_v21, %s5392_s21  ;;  %v5402_v21 = vmov 34  }
0x1058   : > { %2079 = vperm.xlu0 %5047, %v5727_v45  }
0x1062   : > { %v5033_v36 = vpop.permute.xlu1 %5032 }
0x1063   : > { %v5035_v34 = vunpack.i.h.bf16 %v5033_v36  ;;  %v5034_v7 = vunpack.i.l.bf16 %v5033_v36 }
0x1065   : > { %v4723_v8 = vpack.c.bf16 %v5035_v34, %v5034_v7 }
0x1066   : > { %v5038_v9 = vpop.permute.xlu1 %5037 }
0x1067   : > { %v5040_v10 = vunpack.i.h.bf16 %v5038_v9  ;;  %v5039_v11 = vunpack.i.l.bf16 %v5038_v9  ;;  %4724 = vmatprep.subr.bf16.mxu0 %v4723_v8 }
0x1068   : > { %4726 = vmatpush3.bf16.msra.mxu0 %v4723_v8 }
0x1069   : > { %v4727_v12 = vpack.c.bf16 %v5040_v10, %v5039_v11 }
0x106a   : > { %v2432_v13 = vpop.permute.xlu1 %2431 }
0x106b   : > { %4617 = vmatmul.mubr.msk.f32.vlgmr.msra.gmra.mrb[16].mxu0 %vm418_vm0, %v5827_v60  ;;  %4729 = vmatprep.subr.msk.bf16.mxu0 %vm5532_vm4, %v4727_v12 }
0x106c   : > { %4623 = vmatprep.mubr.msk.f32.mxu0 %vm548_vm2, %v2432_v13  ;;  %v2036_v13 = vrot.slane %v5851_v23, 6 }
0x106e   : > { %v2434_v52 = vpop.permute.xlu1 %2433 }
0x1071   : > { %4732 = vmatpush3.bf16.xpose.msk.msra.mxu0 %vm5532_vm4, %v4727_v12 }
0x1072   : > { %v2525_v17 = vpop.permute.xlu1 %2524 }
0x1076   : > { %v2527_v18 = vpop.permute.xlu1 %2526 }
0x1078   : > { %4624 = vmatmul.mubr.msk.f32.vlgmr.msra.gmra.mrb[18].mxu0 %vm548_vm2, %v2434_v52  ;;  %v2049_v52 = vrot.slane %v5849_v5, 2 }
0x113e   : > { %v5868_v14 = vpop.f32.mrb[16].mxu0 }
0x113f   : > { %v5870_v15 = vpop.f32.mrb[17].mxu0  ;;  %v2369_v12 = vrot.slane %v5868_v14, 1 }
0x1140   : > { %v2352_v50 = vrot.slane %v5870_v15, 4  ;;  %v2356_v49 = vrot.slane %v5870_v15, 5  ;;  %v2360_v24 = vrot.slane %v5870_v15, 6  ;;  %v2340_v10 = vrot.slane %v5870_v15, 1 }
0x1141   : > { %v2344_v11 = vrot.slane %v5870_v15, 2 }
0x1142   : > { %2353 = vrot.lane.b32.xlu0 %v2352_v50, %s5384_s11  ;;  %v2373_v50 = vrot.slane %v5868_v14, 2 }
0x1146   : > { %2033 = vrot.lane.b32.xlu0 %v2032_v16, %s6949_s15  ;;  %v2040_v16 = vrot.slane %v5851_v23, 7 }
0x114a   : > { %2357 = vrot.lane.b32.xlu0 %v2356_v49, %s6949_s15 }
0x114b   : > { %v4625_v44 = vpop.f32.mrb[18].mxu0 }
0x114c   : > { %v2523_v19 = vmul.f32 0.35355338, %v4625_v44  ;;  %v2513_v20 = vpop.f32.mrb[19].mxu0 }
0x114d   : > { %v2522_v25 = vmul.f32 0.35355338, %v2513_v20 }
0x114e   : > { %v2531_v26 = vadd.f32 %v2527_v18, %v2523_v19  ;;  %2361 = vrot.lane.b32.xlu0 %v2360_v24, %s5385_s12  ;;  %v2018_v19 = vpop.permute.xlu0 %2017 }
0x114f   : > { %v2530_v27 = vadd.f32 %v2525_v17, %v2522_v25 }
0x1150   : > { %v2533_v28 = vsel %vm418_vm0, %v2531_v26, -inf }
0x1151   : > { %v2532_v30 = vsel %vm418_vm0, %v2530_v27, -inf }
0x1152   : > { %v2534_v63 = vmax.f32 %v2532_v30, %v2533_v28  ;;  %2054 = vrot.lane.b32.xlu0 %v2053_v29, %s5392_s21  ;;  %v2022_v24 = vpop.permute.xlu0 %2021 }
0x1154   : > { %v2535_v32 = vrot.slane %v2534_v63, 4 }
0x1156   : > { %v2536_v35 = vmax.f32 %v2534_v63, %v2535_v32  ;;  %2089 = vperm.xlu0 %5047, %v5891_v22  }
0x1158   : > { %v2537_v33 = vrot.slane %v2536_v35, 2 }
0x115a   : > { %v2538_v38 = vmax.f32 %v2536_v35, %v2537_v33  ;;  %5051 = vset.pattern.permute.xlu0 %v5401_v6 }
0x115b   : > { %2396 = vperm.xlu0 %5051, %v5727_v45  }
0x115c   : > { %v2539_v39 = vrot.slane %v2538_v38, 1 }
0x115e   : > { %v2540_v40 = vmax.f32 %v2538_v38, %v2539_v39 }
0x115f   : > { %2400 = vperm.xlu0 %5051, %v5704_v31  }
0x1160   : > { %v2541_v41 = vsub.f32 %v2530_v27, %v2540_v40  ;;  %v2542_v37 = vsub.f32 %v2531_v26, %v2540_v40  ;;  %v2026_v27 = vpop.permute.xlu0 %2025 }
0x1162   : > { %v2543_v47 = vmul.f32 1.442695, %v2541_v41  ;;  %v2545_v43 = vmul.f32 1.442695, %v2542_v37  ;;  %v2057_v37 = vsel %vm418_vm0, %v5851_v23, %v2018_v19 }
0x1163   : > { %5052 = vset.pattern.permute.xlu0 %v5402_v21 }
0x1164   : > { %5264 = vpow2.f32 %v2543_v47  ;;  %2709 = vperm.xlu0 %5052, %v5727_v45   ;;  %v2348_v45 = vrot.slane %v5870_v15, 3  ;;  %v5934_v29 = vpop.permute.xlu0 %2079 }
0x1165   : > { %5266 = vpow2.f32 %v2545_v43  ;;  %v2058_v43 = vsel %vm1441_vm10, %v2057_v37, %v2022_v24 }
0x116e   : > { %v5265_v53 = vpop.eup %5264 }
0x116f   : > { %v5267_v54 = vpop.eup %5266  ;;  %v2547_v55 = vsel %vm418_vm0, %v5265_v53, 0.0 }
0x1170   : > { %v2548_v56 = vsel %vm418_vm0, %v5267_v54, 0.0 }
0x1171   : > { %v2549_v57 = vadd.f32 %v2548_v56, %v2547_v55  ;;  %v2092_v56 = vlaneseq }
0x1173   : > { %v2550_v2 = vrot.slane %v2549_v57, 4 }
0x1175   : > { %v2551_v58 = vadd.f32 %v2550_v2, %v2549_v57  ;;  %v2060_v57 = vsel %vm2059_vm11, %v2058_v43, %v2026_v27 }
0x1177   : > { %v2552_v59 = vrot.slane %v2551_v58, 2 }
0x1179   : > { %v2553_v51 = vadd.f32 %v2552_v59, %v2551_v58 }
0x117b   : > { %v2554_v61 = vrot.slane %v2553_v51, 1 }
0x117d   : > { %v2555_v62 = vadd.f32 %v2554_v61, %v2553_v51  ;;  %v5949_v61 = vshrl.u32 %v2092_v56, 7 }
0x117f   : > { %5268 = vrcp.f32 %v2555_v62 }
0x1189   : > { %v5269_v0 = vpop.eup %5268 }
0x118a   : > { %v2557_v1 = vmul.f32 %v5269_v0, %v5265_v53  ;;  %v2558_v3 = vmul.f32 %v5269_v0, %v5267_v54 }
0x118c   : > { %2561 = vrot.lane.b32.xlu1 %v2557_v1, %s5400_s22 }
0x1190   : > { %2563 = vrot.lane.b32.xlu1 %v2558_v3, %s5400_s22 }
0x11b4   : > { %v2354_v63 = vpop.permute.xlu0 %2353 }
0x11b8   : > { %v2034_v33 = vpop.permute.xlu0 %2033 }
0x11bc   : > { %v2358_v39 = vpop.permute.xlu0 %2357 }
0x11c0   : > { %v2362_v41 = vpop.permute.xlu0 %2361 }
0x11c4   : > { %v2055_v53 = vpop.permute.xlu0 %2054 }
0x11fe   : > { %v2562_v36 = vpop.permute.xlu1 %2561 }
0x11ff   : > { %v2567_v7 = vmul.f32 %v2562_v36, %v5816_v46  ;;  %v2028_v46 = vrot.slane %v5851_v23, 4  ;;  %v2090_v23 = vpop.permute.xlu0 %2089  ;;  %v5958_v36 = vsub.s32 0, %v5949_v61 }
0x1202   : > { %v2564_v34 = vpop.permute.xlu1 %2563 }
0x1203   : > { %v2568_v8 = vmul.f32 %v2564_v34, %v5821_v48  ;;  %v2045_v48 = vrot.slane %v5849_v5, 1  ;;  %v2397_v1 = vpop.permute.xlu0 %2396 }
0x1205   : > { %v5041_v9 = vpack.i.bf16 %v2568_v8, %v2567_v7 }
0x1207   : > { %5042 = vrot.lane.b32.xlu1 %v5041_v9, %s5385_s12 }
0x120b   : > { %2341 = vrot.lane.b32.xlu1 %v2340_v10, %s5397_s24 }
0x120f   : > { %2345 = vrot.lane.b32.xlu1 %v2344_v11, %s5400_s22 }
0x1213   : > { %2074 = vperm.xlu1 %5046, %v5722_v42  }
0x1217   : > { %2349 = vrot.lane.b32.xlu1 %v2348_v45, %s5392_s21 }
0x1218   : > { %5048 = vset.pattern.permute.xlu1 %v5401_v6 }
0x121b   : > { %2392 = vperm.xlu1 %5048, %v5722_v42  }
0x121f   : > { %2029 = vrot.lane.b32.xlu1 %v2028_v46, %s5384_s11 }
0x1220   : > { %5049 = vset.pattern.permute.xlu1 %v5402_v21 }
0x1223   : > { %2046 = vrot.lane.b32.xlu1 %v2045_v48, %s5397_s24 }
0x1227   : > { %2370 = vrot.lane.b32.xlu1 %v2369_v12, %s5397_s24 }
0x122b   : > { %2705 = vperm.xlu1 %5049, %v5722_v42   ;;  %v2364_v42 = vrot.slane %v5870_v15, 7 }
0x122f   : > { %2037 = vrot.lane.b32.xlu1 %v2036_v13, %s5385_s12 }
0x1230   : > { %5050 = vset.pattern.permute.xlu1 %v5399_v4  ;;  %v2377_v4 = vrot.slane %v5868_v14, 3 }
0x1233   : > { %2050 = vrot.lane.b32.xlu1 %v2049_v52, %s5400_s22 }
0x1237   : > { %2374 = vrot.lane.b32.xlu1 %v2373_v50, %s5400_s22 }
0x123b   : > { %2041 = vrot.lane.b32.xlu1 %v2040_v16, %s5390_s19 }
0x123f   : > { %2084 = vperm.xlu1 %5050, %v5704_v31  }
0x1243   : > { %2365 = vrot.lane.b32.xlu1 %v2364_v42, %s5390_s19 }
0x1244   : > { %5053 = vset.pattern.permute.xlu1 %v5401_v6 }
0x1247   : > { %2378 = vrot.lane.b32.xlu1 %v2377_v4, %s5392_s21 }
0x124b   : > { %2404 = vperm.xlu1 %5053, %v5891_v22  }
0x124f   : > { %5054 = vset.pattern.permute.xlu1 %v5402_v21 }
0x1279   : > { %v5043_v17 = vpop.permute.xlu1 %5042 }
0x127a   : > { %v5045_v49 = vunpack.i.h.bf16 %v5043_v17  ;;  %v5044_v44 = vunpack.i.l.bf16 %v5043_v17 }
0x127c   : > { %v4733_v18 = vpack.c.bf16 %v5045_v49, %v5044_v44 }
0x127d   : > { %v2342_v20 = vpop.permute.xlu1 %2341 }
0x127e   : > { %4734 = vmatprep.subr.bf16.mxu1 %v4733_v18  ;;  %v2381_v55 = vsel %vm418_vm0, %v5870_v15, %v2342_v20 }
0x127f   : > { %4736 = vmatpush3.bf16.msra.mxu1 %v4733_v18 }
0x1281   : > { %v2346_v25 = vpop.permute.xlu1 %2345 }
0x1282   : > { %4631 = vmatmul.mubr.msk.f32.vlgmr.msra.gmra.mrb[14].mxu1 %vm418_vm0, %v5827_v60  ;;  %v2382_v2 = vsel %vm1441_vm10, %v2381_v55, %v2346_v25 }
0x1292   : > { %v5932_v26 = vpop.permute.xlu1 %2074 }
0x1296   : > { %v2350_v28 = vpop.permute.xlu1 %2349 }
0x1297   : > { %v2383_v58 = vsel %vm2059_vm11, %v2382_v2, %v2350_v28 }
0x1298   : > { %v2384_v62 = vsel %vm2061_vm12, %v2383_v58, %v2354_v63 }
0x1299   : > { %v2385_v7 = vsel %vm2063_vm13, %v2384_v62, %v2358_v39 }
0x129a   : > { %v5936_v30 = vpop.permute.xlu1 %2392  ;;  %v2386_v11 = vsel %vm2065_vm15, %v2385_v7, %v2362_v41 }
0x129e   : > { %v2030_v32 = vpop.permute.xlu1 %2029 }
0x129f   : > { %v2062_v59 = vsel %vm2061_vm12, %v2060_v57, %v2030_v32 }
0x12a0   : > { %v2064_v15 = vsel %vm2063_vm13, %v2062_v59, %v2034_v33 }
0x12a2   : > { %v2047_v35 = vpop.permute.xlu1 %2046 }
0x12a3   : > { %v2069_v3 = vsel %vm418_vm0, %v5849_v5, %v2047_v35  ;;  %v2401_v5 = vpop.permute.xlu0 %2400 }
0x12a6   : > { %v2371_v38 = vpop.permute.xlu1 %2370 }
0x12a7   : > { %v2388_v46 = vsel %vm418_vm0, %v5868_v14, %v2371_v38 }
0x12aa   : > { %v5938_v40 = vpop.permute.xlu1 %2705 }
0x12ae   : > { %v2038_v60 = vpop.permute.xlu1 %2037 }
0x12af   : > { %v2066_v0 = vsel %vm2065_vm15, %v2064_v15, %v2038_v60  ;;  %v2710_v15 = vpop.permute.xlu0 %2709 }
0x12b2   : > { %v2051_v47 = vpop.permute.xlu1 %2050 }
0x12b3   : > { %v2070_v34 = vsel %vm1441_vm10, %v2069_v3, %v2051_v47 }
0x12b4   : > { %v2071_v9 = vsel %vm2059_vm11, %v2070_v34, %v2055_v53 }
0x12b5   : > { %v2099_v12 = vrot.slane %v2071_v9, %v5958_v36 }
0x12b6   : > { %v2375_v54 = vpop.permute.xlu1 %2374 }
0x12b7   : > { %v2389_v13 = vsel %vm1441_vm10, %v2388_v46, %v2375_v54  ;;  %v2101_v24 = vmul.f32 %v2099_v12, %v5932_v26  ;;  %v2103_v25 = vmul.f32 %v2099_v12, %v5934_v29  ;;  %v2107_v33 = vmul.f32 %v2099_v12, %v2090_v23 }
0x12ba   : > { %v2042_v51 = vpop.permute.xlu1 %2041 }
0x12bb   : > { %v2068_v6 = vsel %vm2067_vm14, %v2066_v0, %v2042_v51  ;;  %v5403_v51 = vmov 0.0|0.0  }
0x12bc   : > { %v2095_v8 = vrot.slane %v2068_v6, %v5958_v36  ;;  %4761 = vmatprep.subr.bf16.mxu0 %v5403_v51 }
0x12be   : > { %v2085_v21 = vpop.permute.xlu1 %2084  ;;  %v2100_v52 = vmul.f32 %v2095_v8, %v5932_v26  ;;  %v2102_v50 = vmul.f32 %v2095_v8, %v5934_v29  ;;  %v2106_v38 = vmul.f32 %v2095_v8, %v2090_v23 }
0x12bf   : > { %v2104_v16 = vmul.f32 %v2095_v8, %v2085_v21  ;;  %v2105_v27 = vmul.f32 %v2099_v12, %v2085_v21 }
0x12c2   : > { %v2366_v10 = vpop.permute.xlu1 %2365 }
0x12c3   : > { %v2387_v45 = vsel %vm2067_vm14, %v2386_v11, %v2366_v10 }
0x12c4   : > { %v2410_v48 = vrot.slane %v2387_v45, %v5958_v36 }
0x12c6   : > { %v2415_v42 = vmul.f32 %v2410_v48, %v5936_v30  ;;  %v2417_v4 = vmul.f32 %v2410_v48, %v2397_v1  ;;  %v2419_v17 = vmul.f32 %v2410_v48, %v2401_v5  ;;  %v2379_v49 = vpop.permute.xlu1 %2378 }
0x12c7   : > { %v2390_v44 = vsel %vm2059_vm11, %v2389_v13, %v2379_v49 }
0x12c8   : > { %v5975_v18 = vadd.f32 %v2415_v42, %v2100_v52  ;;  %v5977_v14 = vadd.f32 %v2417_v4, %v2102_v50  ;;  %v5979_v19 = vadd.f32 %v2419_v17, %v2104_v16  ;;  %v2414_v20 = vrot.slane %v2390_v44, %v5958_v36 }
0x12ca   : > { %v2416_v28 = vmul.f32 %v2414_v20, %v5936_v30  ;;  %v2418_v63 = vmul.f32 %v2414_v20, %v2397_v1  ;;  %v2405_v32 = vpop.permute.xlu1 %2404  ;;  %v2420_v35 = vmul.f32 %v2414_v20, %v2401_v5 }
0x12cb   : > { %v2421_v39 = vmul.f32 %v2410_v48, %v2405_v32  ;;  %v2422_v60 = vmul.f32 %v2414_v20, %v2405_v32 }
0x12cc   : > { %v2424_v41 = vadd.f32 %v2416_v28, %v2101_v24  ;;  %v2426_v37 = vadd.f32 %v2418_v63, %v2103_v25  ;;  %v5985_v47 = vadd.f32 %v2420_v35, %v2105_v27 }
0x12cd   : > { %v5987_v43 = vadd.f32 %v2421_v39, %v2106_v38  ;;  %v5989_v53 = vadd.f32 %v2422_v60, %v2107_v33 }
0x1355   : > { %v4632_v26 = vpop.f32.mrb[14].mxu1 }
0x1356   : > { %v2643_v29 = vpop.f32.mrb[15].mxu1  ;;  %v2682_v54 = vrot.slane %v4632_v26, 1  ;;  %v2686_v30 = vrot.slane %v4632_v26, 2  ;;  %v2690_v57 = vrot.slane %v4632_v26, 3 }
0x1357   : > { %v2653_v55 = vrot.slane %v2643_v29, 1  ;;  %v2657_v56 = vrot.slane %v2643_v29, 2  ;;  %v2669_v2 = vrot.slane %v2643_v29, 5  ;;  %v2661_v58 = vrot.slane %v2643_v29, 3 }
0x1358   : > { %2683 = vrot.lane.b32.xlu0 %v2682_v54, %s5397_s24  ;;  %v2673_v59 = vrot.slane %v2643_v29, 6  ;;  %v2665_v23 = vrot.slane %v2643_v29, 4  ;;  %v2677_v62 = vrot.slane %v2643_v29, 7 }
0x1359   : > { %2654 = vrot.lane.b32.xlu1 %v2653_v55, %s5397_s24 }
0x135c   : > { %2687 = vrot.lane.b32.xlu0 %v2686_v30, %s5400_s22 }
0x135d   : > { %2658 = vrot.lane.b32.xlu1 %v2657_v56, %s5400_s22 }
0x1360   : > { %2691 = vrot.lane.b32.xlu0 %v2690_v57, %s5392_s21 }
0x1361   : > { %2670 = vrot.lane.b32.xlu1 %v2669_v2, %s6949_s15 }
0x1364   : > { %2662 = vrot.lane.b32.xlu0 %v2661_v58, %s5392_s21 }
0x1365   : > { %2674 = vrot.lane.b32.xlu1 %v2673_v59, %s5385_s12 }
0x1368   : > { %2666 = vrot.lane.b32.xlu0 %v2665_v23, %s5384_s11 }
0x1369   : > { %2678 = vrot.lane.b32.xlu1 %v2677_v62, %s5390_s19 }
0x136c   : > { %2717 = vperm.xlu0 %5052, %v5891_v22  }
0x136d   : > { %2713 = vperm.xlu1 %5054, %v5704_v31  }
0x13ca   : > { %v2684_v0 = vpop.permute.xlu0 %2683 }
0x13cb   : > { %v2655_v1 = vpop.permute.xlu1 %2654  ;;  %v2701_v21 = vsel %vm418_vm0, %v4632_v26, %v2684_v0  ;;  %v3124_v0 = vld [vmem:[%s6939_s7 + $0x28] sm:$0xff] }
0x13cc   : > { %v2694_v5 = vsel %vm418_vm0, %v2643_v29, %v2655_v1  ;;  %v6078_v1 = vld [vmem:[%s6939_s7 + $0x20] sm:$0xff] }
0x13ce   : > { %v2688_v3 = vpop.permute.xlu0 %2687 }
0x13cf   : > { %v2659_v6 = vpop.permute.xlu1 %2658  ;;  %v2702_v34 = vsel %vm1441_vm10, %v2701_v21, %v2688_v3  ;;  %v3126_v3 = vld [vmem:[%s6939_s7 + $0x48] sm:$0xff] }
0x13d0   : > { %v2695_v12 = vsel %vm1441_vm10, %v2694_v5, %v2659_v6  ;;  %v6089_v6 = vld [vmem:[%s6939_s7 + $0x40] sm:$0xff]  ;;  %v3128_v21 = vld [vmem:[%s6939_s7 + $0x68] sm:$0xff]  ;;  %v6152_v5 = vld [vmem:[%s6939_s7 + $0x98] sm:$0xff] }
0x13d2   : > { %v2692_v7 = vpop.permute.xlu0 %2691 }
0x13d3   : > { %v2703_v8 = vsel %vm2059_vm11, %v2702_v34, %v2692_v7  ;;  %v2671_v9 = vpop.permute.xlu1 %2670  ;;  %v6100_v34 = vld [vmem:[%s6939_s7 + $0x60] sm:$0xff]  ;;  %v3130_v7 = vld [vmem:[%s6939_s7 + $0x88] sm:$0xff] }
0x13d4   : > { %v2727_v10 = vrot.slane %v2703_v8, %v5958_v36  ;;  %v6111_v8 = vld [vmem:[%s6939_s7 + $0x80] sm:$0xff] }
0x13d6   : > { %v2729_v11 = vmul.f32 %v2727_v10, %v5938_v40  ;;  %v2731_v22 = vmul.f32 %v2727_v10, %v2710_v15  ;;  %v2663_v45 = vpop.permute.xlu0 %2662 }
0x13d7   : > { %v2675_v31 = vpop.permute.xlu1 %2674  ;;  %v2696_v50 = vsel %vm2059_vm11, %v2695_v12, %v2663_v45  ;;  %v3136_v45 = vld [vmem:[%s6939_s7 + $0xe8] sm:$0xff]  ;;  %v6174_v12 = vld [vmem:[%s6939_s7 + $0xf8] sm:$0xff] }
0x13d8   : > { %v2737_v46 = vadd.f32 %v2729_v11, %v2424_v41  ;;  %v2739_v48 = vadd.f32 %v2731_v22, %v2426_v37  ;;  %v3134_v11 = vld [vmem:[%s6939_s7 + $0xc8] sm:$0xff]  ;;  %v6133_v22 = vld [vmem:[%s6939_s7 + $0xc0] sm:$0xff] }
0x13da   : > { %v2745_v13 = vmax.f32 %v2737_v46, 0.0  ;;  %v2747_v52 = vmax.f32 %v2739_v48, 0.0  ;;  %v2667_v16 = vpop.permute.xlu0 %2666  ;;  %v6159_v46 = vld [vmem:[%s6939_s7 + $0xb8] sm:$0xff] }
0x13db   : > { %v2697_v42 = vsel %vm2061_vm12, %v2696_v50, %v2667_v16  ;;  %v2679_v49 = vpop.permute.xlu1 %2678  ;;  %v6167_v48 = vld [vmem:[%s6939_s7 + $0xd8] sm:$0xff] }
0x13dc   : > { %v2698_v4 = vsel %vm2063_vm13, %v2697_v42, %v2671_v9  ;;  %v4737_v17 = vpack.c.bf16 %v2747_v52, %v2745_v13  ;;  %v3132_v9 = vld [vmem:[%s6939_s7 + $0xa8] sm:$0xff]  ;;  %v6201_v50 = vld [vmem:[%s6939_s7 + $0x78] sm:$0xff] }
0x13dd   : > { %v2699_v44 = vsel %vm2065_vm15, %v2698_v4, %v2675_v31  ;;  %v6144_v31 = vld [vmem:[%s6939_s7 + $0xe0] sm:$0xff]  ;;  %v6207_v16 = vld [vmem:[%s6939_s7 + $0x38] sm:$0xff] }
0x13de   : > { %v2700_v20 = vsel %vm2067_vm14, %v2699_v44, %v2679_v49  ;;  %4738 = vmatprep.subr.bf16.mxu1 %v4737_v17  ;;  %v5407_v49 = vmov 96  }
0x13df   : > { %v2723_v24 = vrot.slane %v2700_v20, %v5958_v36 }
0x13e1   : > { %v2728_v25 = vmul.f32 %v2723_v24, %v5938_v40  ;;  %v2730_v27 = vmul.f32 %v2723_v24, %v2710_v15  ;;  %v6067_v15 = vld [vmem:[%s6939_s7] sm:$0xff] }
0x13e3   : > { %v2736_v28 = vadd.f32 %v2728_v25, %v5975_v18  ;;  %v2738_v63 = vadd.f32 %v2730_v27, %v5977_v14 }
0x13e5   : > { %v2744_v32 = vmax.f32 %v2736_v28, 0.0  ;;  %v2746_v35 = vmax.f32 %v2738_v63, 0.0 }
0x13e7   : > { %v5055_v33 = vpack.i.bf16 %v2745_v13, %v2744_v32  ;;  %v6020_v38 = vpack.c.bf16 %v2746_v35, %v2744_v32  ;;  %v5060_v39 = vpack.i.bf16 %v2747_v52, %v2746_v35  ;;  %v6183_v13 = vld [vmem:[%s6939_s7 + $0x18] sm:$0xff] }
0x13e8   : > { %v6192_v52 = vld [vmem:[%s6939_s7 + $0x58] sm:$0xff] }
0x13e9   : > { %5056 = vrot.lane.b32.xlu1 %v5055_v33, %s5390_s19  ;;  %4740 = vmatpush1.bf16.msra.mxu1 %v6020_v38 }
0x13ea   : > { %4763 = vmatpush1.bf16.msra.mxu0 %v6020_v38 }
0x13eb   : > { %v2718_v60 = vpop.permute.xlu0 %2717  ;;  %4764 = vmatprep.subr.bf16.mxu0 %v5403_v51 }
0x13ec   : > { %v2734_v40 = vmul.f32 %v2723_v24, %v2718_v60  ;;  %v2735_v41 = vmul.f32 %v2727_v10, %v2718_v60  ;;  %v2714_v18 = vpop.permute.xlu1 %2713 }
0x13ed   : > { %v2732_v37 = vmul.f32 %v2723_v24, %v2714_v18  ;;  %v2733_v14 = vmul.f32 %v2727_v10, %v2714_v18  ;;  %5061 = vrot.lane.b32.xlu1 %v5060_v39, %s5390_s19  ;;  %v6122_v10 = vld [vmem:[%s6939_s7 + $0xa0] sm:$0xff] }
0x13ee   : > { %v2742_v26 = vadd.f32 %v2734_v40, %v5987_v43  ;;  %v2743_v29 = vadd.f32 %v2735_v41, %v5989_v53  ;;  %v5406_v43 = vmov 97   ;;  %v3122_v53 = vld [vmem:[%s6939_s7 + $0x8] sm:$0xff] }
0x13ef   : > { %v2740_v54 = vadd.f32 %v2732_v37, %v5979_v19  ;;  %v2741_v55 = vadd.f32 %v2733_v14, %v5985_v47  ;;  %v5404_v19 = vmov 0.0   ;;  %v5405_v47 = vmov 98   ;;  %5175 = vset.pattern.permute.xlu0 %v5406_v43 }
0x13f0   : > { %v2750_v30 = vmax.f32 %v2742_v26, 0.0  ;;  %v2751_v56 = vmax.f32 %v2743_v29, 0.0  ;;  %2960 = vmatprep.mubr.f32.mxu1 %v5404_v19  ;;  %5176 = vset.pattern.permute.xlu1 %v5405_v47 }
0x13f1   : > { %v2748_v57 = vmax.f32 %v2740_v54, 0.0  ;;  %v2749_v2 = vmax.f32 %v2741_v55, 0.0 }
0x13f2   : > { %v5070_v58 = vpack.i.bf16 %v2751_v56, %v2750_v30 }
0x13f3   : > { %v5065_v59 = vpack.i.bf16 %v2749_v2, %v2748_v57  ;;  %v4741_v23 = vpack.c.bf16 %v2751_v56, %v2749_v2  ;;  %v6031_v62 = vpack.c.bf16 %v2750_v30, %v2748_v57 }
0x13f4   : > { %5071 = vrot.lane.b32.xlu1 %v5070_v58, %s5390_s19 }
0x13f5   : > { %5066 = vrot.lane.b32.xlu0 %v5065_v59, %s5390_s19  ;;  %4742 = vmatprep.subr.bf16.mxu1 %v4741_v23 }
0x13f6   : > { %4766 = vmatpush1.bf16.msra.mxu0 %v6031_v62  ;;  %4744 = vmatpush1.bf16.msra.mxu1 %v6031_v62 }
0x13f7   : > { %4767 = vmatprep.subr.bf16.mxu0 %v5403_v51 }
0x13f8   : > { %5081 = vrot.lane.b32.xlu1 %v5060_v39, %s5385_s12 }
0x13f9   : > { %5076 = vrot.lane.b32.xlu0 %v5055_v33, %s5385_s12 }
0x13fc   : > { %5091 = vrot.lane.b32.xlu1 %v5070_v58, %s5385_s12 }
0x13fd   : > { %5086 = vrot.lane.b32.xlu0 %v5065_v59, %s5385_s12 }
0x1400   : > { %5101 = vrot.lane.b32.xlu1 %v5060_v39, %s6949_s15 }
0x1401   : > { %5096 = vrot.lane.b32.xlu0 %v5055_v33, %s6949_s15 }
0x1404   : > { %5111 = vrot.lane.b32.xlu1 %v5070_v58, %s6949_s15 }
0x1405   : > { %5106 = vrot.lane.b32.xlu0 %v5065_v59, %s6949_s15 }
0x1408   : > { %5121 = vrot.lane.b32.xlu1 %v5060_v39, %s5384_s11 }
0x1409   : > { %5116 = vrot.lane.b32.xlu0 %v5055_v33, %s5384_s11 }
0x140c   : > { %5131 = vrot.lane.b32.xlu1 %v5070_v58, %s5384_s11 }
0x140d   : > { %5126 = vrot.lane.b32.xlu0 %v5065_v59, %s5384_s11 }
0x1410   : > { %5141 = vrot.lane.b32.xlu1 %v5060_v39, %s5392_s21 }
0x1411   : > { %5136 = vrot.lane.b32.xlu0 %v5055_v33, %s5392_s21 }
0x1414   : > { %5151 = vrot.lane.b32.xlu1 %v5070_v58, %s5392_s21 }
0x1415   : > { %5146 = vrot.lane.b32.xlu0 %v5065_v59, %s5392_s21 }
0x1418   : > { %5161 = vrot.lane.b32.xlu1 %v5060_v39, %s5400_s22 }
0x1419   : > { %5156 = vrot.lane.b32.xlu0 %v5055_v33, %s5400_s22 }
0x141c   : > { %5171 = vrot.lane.b32.xlu1 %v5070_v58, %s5400_s22 }
0x141d   : > { %5166 = vrot.lane.b32.xlu0 %v5065_v59, %s5400_s22 }
0x1420   : > { %3187 = vrot.lane.b32.xlu1 %v3122_v53, %s5400_s22 }
0x1421   : > { %3185 = vrot.lane.b32.xlu0 %v6067_v15, %s5400_s22 }
0x1424   : > { %3191 = vrot.lane.b32.xlu1 %v3124_v0, %s5400_s22 }
0x1425   : > { %3189 = vrot.lane.b32.xlu0 %v6078_v1, %s5400_s22 }
0x1428   : > { %3195 = vrot.lane.b32.xlu1 %v3126_v3, %s5400_s22 }
0x1429   : > { %3193 = vrot.lane.b32.xlu0 %v6089_v6, %s5400_s22 }
0x142c   : > { %3199 = vrot.lane.b32.xlu1 %v3128_v21, %s5400_s22 }
0x142d   : > { %3197 = vrot.lane.b32.xlu0 %v6100_v34, %s5400_s22 }
0x1430   : > { %3203 = vrot.lane.b32.xlu1 %v3130_v7, %s5400_s22 }
0x1431   : > { %3201 = vrot.lane.b32.xlu0 %v6111_v8, %s5400_s22 }
0x1434   : > { %3207 = vrot.lane.b32.xlu1 %v3132_v9, %s5400_s22 }
0x1435   : > { %3205 = vrot.lane.b32.xlu0 %v6122_v10, %s5400_s22 }
0x1438   : > { %3211 = vrot.lane.b32.xlu1 %v3134_v11, %s5400_s22 }
0x1439   : > { %3209 = vrot.lane.b32.xlu0 %v6133_v22, %s5400_s22 }
0x143c   : > { %3215 = vrot.lane.b32.xlu1 %v3136_v45, %s5400_s22 }
0x143d   : > { %3213 = vrot.lane.b32.xlu0 %v6144_v31, %s5400_s22 }
0x1440   : > { %3467 = vperm.xlu1 %5176, %v6152_v5  }
0x1441   : > { %3154 = vperm.xlu0 %5175, %v6152_v5  }
0x1444   : > { %5177 = vset.pattern.permute.xlu1 %v5406_v43 }
0x1445   : > { %3158 = vperm.xlu1 %5177, %v6159_v46   ;;  %5178 = vset.pattern.permute.xlu0 %v5405_v47 }
0x1446   : > { %3471 = vperm.xlu0 %5178, %v6159_v46  }
0x1449   : > { %3162 = vperm.xlu1 %5177, %v6167_v48  }
0x144a   : > { %5180 = vset.pattern.permute.xlu0 %v5406_v43 }
0x144b   : > { %3166 = vperm.xlu0 %5180, %v6174_v12  }
0x144d   : > { %5179 = vset.pattern.permute.xlu1 %v5405_v47 }
0x144e   : > { %3475 = vperm.xlu1 %5179, %v6167_v48  }
0x144f   : > { %5183 = vset.pattern.permute.xlu0 %v5405_v47 }
0x1450   : > { %3451 = vperm.xlu0 %5183, %v6183_v13  }
0x1452   : > { %5181 = vset.pattern.permute.xlu1 %v5406_v43 }
0x1453   : > { %3138 = vperm.xlu1 %5181, %v6183_v13  }
0x1454   : > { %5186 = vset.pattern.permute.xlu0 %v5406_v43 }
0x1455   : > { %3146 = vperm.xlu0 %5186, %v6192_v52  }
0x1457   : > { %5182 = vset.pattern.permute.xlu1 %v5405_v47 }
0x1458   : > { %3479 = vperm.xlu1 %5182, %v6174_v12  }
0x1459   : > { %5188 = vset.pattern.permute.xlu0 %v5405_v47 }
0x145a   : > { %3463 = vperm.xlu0 %5188, %v6201_v50  }
0x145b   : > { %v6210_v42 = vpop.permute.xlu1 %5056 }
0x145c   : > { %5184 = vset.pattern.permute.xlu1 %v5406_v43  ;;  %v5059_v4 = vunpack.i.h.bf16 %v6210_v42  ;;  %v5058_v17 = vunpack.i.l.bf16 %v6210_v42 }
0x145d   : > { %3142 = vperm.xlu1 %5184, %v6207_v16  }
0x145e   : > { %5190 = vset.pattern.permute.xlu0 %v5407_v49  ;;  %v2776_v25 = vsel %vm2067_vm14, %v5058_v17, %v5059_v4 }
0x145f   : > { %v6216_v44 = vpop.permute.xlu1 %5061  ;;  %2864 = vperm.xlu0 %5190, %v6167_v48  }
0x1460   : > { %v5064_v20 = vunpack.i.h.bf16 %v6216_v44  ;;  %v5063_v24 = vunpack.i.l.bf16 %v6216_v44 }
0x1461   : > { %5185 = vset.pattern.permute.xlu1 %v5405_v47 }
0x1462   : > { %v2777_v27 = vsel %vm2067_vm14, %v5063_v24, %v5064_v20  ;;  %v4745_v28 = vpack.c.bf16 %v5064_v20, %v5059_v4  ;;  %3455 = vperm.xlu1 %5185, %v6207_v16  }
0x1463   : > { %v4747_v63 = vpack.c.bf16 %v2777_v27, %v2776_v25  ;;  %2839 = vperm.xlu0 %5190, %v6207_v16  }
0x1464   : > { %4746 = vmatprep.subr.bf16.mxu1 %v4745_v28 }
0x1465   : > { %4748 = vmatpush1.bf16.msra.mxu1 %v4747_v63  ;;  %4769 = vmatpush1.bf16.msra.mxu0 %v4747_v63 }
0x1466   : > { %v6230_v32 = vpop.permute.xlu1 %5071  ;;  %4770 = vmatprep.subr.bf16.mxu0 %v5403_v51  ;;  %3459 = vperm.xlu1 %5185, %v6192_v52  }
0x1467   : > { %v5074_v35 = vunpack.i.h.bf16 %v6230_v32  ;;  %v5073_v33 = vunpack.i.l.bf16 %v6230_v32  ;;  %v6236_v39 = vpop.permute.xlu0 %5066  ;;  %2849 = vperm.xlu0 %5190, %v6201_v50  }
0x1468   : > { %v5069_v60 = vunpack.i.h.bf16 %v6236_v39  ;;  %v5068_v40 = vunpack.i.l.bf16 %v6236_v39 }
0x1469   : > { %v2779_v41 = vsel %vm2067_vm14, %v5073_v33, %v5074_v35 }
0x146a   : > { %v4749_v18 = vpack.c.bf16 %v5074_v35, %v5069_v60  ;;  %v2778_v37 = vsel %vm2067_vm14, %v5068_v40, %v5069_v60  ;;  %v6247_v14 = vpop.permute.xlu1 %5081  ;;  %5187 = vset.pattern.permute.xlu1 %v5406_v43  ;;  %v4801_v44 = vpack.c.bf16 %v5073_v33, %v5068_v40 }
0x146b   : > { %v4751_v26 = vpack.c.bf16 %v2779_v41, %v2778_v37  ;;  %v5084_v29 = vunpack.i.h.bf16 %v6247_v14  ;;  %v5083_v54 = vunpack.i.l.bf16 %v6247_v14  ;;  %v6252_v55 = vpop.permute.xlu0 %5076  ;;  %3150 = vperm.xlu1 %5187, %v6201_v50  }
0x146c   : > { %v5079_v30 = vunpack.i.h.bf16 %v6252_v55  ;;  %v5078_v56 = vunpack.i.l.bf16 %v6252_v55  ;;  %4750 = vmatprep.subr.bf16.mxu1 %v4749_v18 }
0x146d   : > { %v2805_v57 = vsel %vm2065_vm15, %v5083_v54, %v5084_v29  ;;  %4752 = vmatpush1.bf16.msra.mxu1 %v4751_v26  ;;  %4772 = vmatpush1.bf16.msra.mxu0 %v4751_v26 }
0x146e   : > { %v4753_v2 = vpack.c.bf16 %v5084_v29, %v5079_v30  ;;  %v2804_v58 = vsel %vm2065_vm15, %v5078_v56, %v5079_v30  ;;  %v6263_v59 = vpop.permute.xlu1 %5091  ;;  %4773 = vmatprep.subr.bf16.mxu0 %v5403_v51  ;;  %v4804_v32 = vpack.c.bf16 %v5083_v54, %v5078_v56 }
0x146f   : > { %v4755_v23 = vpack.c.bf16 %v2805_v57, %v2804_v58  ;;  %v5094_v47 = vunpack.i.h.bf16 %v6263_v59  ;;  %v5093_v43 = vunpack.i.l.bf16 %v6263_v59  ;;  %v6268_v53 = vpop.permute.xlu0 %5086  ;;  %5189 = vset.pattern.permute.xlu1 %v5407_v49 }
0x1470   : > { %v5089_v0 = vunpack.i.h.bf16 %v6268_v53  ;;  %v5088_v3 = vunpack.i.l.bf16 %v6268_v53  ;;  %4754 = vmatprep.subr.bf16.mxu1 %v4753_v2  ;;  %2854 = vperm.xlu1 %5189, %v6152_v5  }
0x1471   : > { %v2807_v21 = vsel %vm2065_vm15, %v5093_v43, %v5094_v47  ;;  %4756 = vmatpush1.bf16.msra.mxu1 %v4755_v23  ;;  %4775 = vmatpush1.bf16.msra.mxu0 %v4755_v23 }
0x1472   : > { %v4757_v7 = vpack.c.bf16 %v5094_v47, %v5089_v0  ;;  %v2806_v9 = vsel %vm2065_vm15, %v5088_v3, %v5089_v0  ;;  %v5102_v11 = vpop.permute.xlu1 %5101  ;;  %4776 = vmatprep.subr.bf16.mxu0 %v5403_v51  ;;  %v4807_v39 = vpack.c.bf16 %v5093_v43, %v5088_v3 }
0x1473   : > { %v4759_v45 = vpack.c.bf16 %v2807_v21, %v2806_v9  ;;  %v5104_v4 = vunpack.i.h.bf16 %v5102_v11  ;;  %v5103_v49 = vunpack.i.l.bf16 %v5102_v11  ;;  %v5097_v20 = vpop.permute.xlu0 %5096 }
0x1474   : > { %v5099_v25 = vunpack.i.h.bf16 %v5097_v20  ;;  %v5098_v27 = vunpack.i.l.bf16 %v5097_v20  ;;  %4758 = vmatprep.subr.bf16.mxu1 %v4757_v7  ;;  %2859 = vperm.xlu1 %5189, %v6159_v46  }
0x1475   : > { %v3090_v28 = vsel %vm2063_vm13, %v5103_v49, %v5104_v4  ;;  %4760 = vmatpush1.bf16.msra.mxu1 %v4759_v45  ;;  %4778 = vmatpush1.bf16.msra.mxu0 %v4759_v45 }
0x1476   : > { %v3089_v63 = vsel %vm2063_vm13, %v5098_v27, %v5099_v25  ;;  %v5112_v35 = vpop.permute.xlu1 %5111  ;;  %4779 = vmatprep.subr.bf16.mxu0 %v5403_v51  ;;  %4791 = vmatprep.subr.bf16.mxu1 %v5403_v51 }
0x1477   : > { %v6285_v60 = vpack.c.bf16 %v3090_v28, %v3089_v63  ;;  %v5114_v41 = vunpack.i.h.bf16 %v5112_v35  ;;  %v5113_v18 = vunpack.i.l.bf16 %v5112_v35  ;;  %v5107_v37 = vpop.permute.xlu0 %5106 }
0x1478   : > { %v5109_v26 = vunpack.i.h.bf16 %v5107_v37  ;;  %v5108_v29 = vunpack.i.l.bf16 %v5107_v37  ;;  %4376 = vmatmul.mubr.msk.f32.vlgmr.msra.gmra.mrb[16].mxu1 %vm2065_vm15, %v6067_v15  ;;  %2869 = vperm.xlu1 %5189, %v6174_v12  }
0x1479   : > { %v3092_v30 = vsel %vm2063_vm13, %v5113_v18, %v5114_v41  ;;  %4781 = vmatpush1.bf16.msra.mxu0 %v6285_v60  ;;  %4793 = vmatpush1.bf16.msra.mxu1 %v6020_v38 }
0x147a   : > { %v3091_v57 = vsel %vm2063_vm13, %v5108_v29, %v5109_v26  ;;  %v5122_v2 = vpop.permute.xlu1 %5121  ;;  %2966 = vmatprep.mubr.f32.mxu1 %v5404_v19  ;;  %4782 = vmatprep.subr.bf16.mxu0 %v5403_v51 }
0x147b   : > { %v6296_v58 = vpack.c.bf16 %v3092_v30, %v3091_v57  ;;  %v5124_v23 = vunpack.i.h.bf16 %v5122_v2  ;;  %v5123_v47 = vunpack.i.l.bf16 %v5122_v2  ;;  %v5117_v15 = vpop.permute.xlu0 %5116  ;;  %4794 = vmatprep.subr.bf16.mxu1 %v5403_v51 }
0x147c   : > { %v5119_v0 = vunpack.i.h.bf16 %v5117_v15  ;;  %v5118_v21 = vunpack.i.l.bf16 %v5117_v15  ;;  %4377 = vmatmul.mubr.msk.f32.gmra.mrb[18].mxu1 %vm2065_vm15, %v6078_v1  ;;  %2834 = vperm.xlu1 %5189, %v6183_v13   ;;  %v4798_v1 = vpack.c.bf16 %v5063_v24, %v5058_v17 }
0x147d   : > { %v3114_v38 = vsel %vm2061_vm12, %v5123_v47, %v5124_v23  ;;  %4784 = vmatpush1.bf16.msra.mxu0 %v6296_v58  ;;  %4796 = vmatpush1.bf16.msra.mxu1 %v6031_v62 }
0x147e   : > { %v3113_v7 = vsel %vm2061_vm12, %v5118_v21, %v5119_v0  ;;  %v5132_v9 = vpop.permute.xlu1 %5131  ;;  %2972 = vmatprep.mubr.f32.mxu1 %v5404_v19  ;;  %4785 = vmatprep.subr.bf16.mxu0 %v5403_v51 }
0x147f   : > { %v6312_v11 = vpack.c.bf16 %v3114_v38, %v3113_v7  ;;  %v5134_v45 = vunpack.i.h.bf16 %v5132_v9  ;;  %v5133_v4 = vunpack.i.l.bf16 %v5132_v9  ;;  %v5127_v49 = vpop.permute.xlu0 %5126  ;;  %4797 = vmatprep.subr.bf16.mxu1 %v5403_v51 }
0x1480   : > { %v5129_v62 = vunpack.i.h.bf16 %v5127_v49  ;;  %v5128_v20 = vunpack.i.l.bf16 %v5127_v49  ;;  %4378 = vmatmul.mubr.msk.f32.gmra.mrb[20].mxu1 %vm2065_vm15, %v6089_v6  ;;  %2844 = vperm.xlu1 %5189, %v6192_v52  }
0x1481   : > { %v3116_v25 = vsel %vm2061_vm12, %v5133_v4, %v5134_v45  ;;  %4787 = vmatpush1.bf16.msra.mxu0 %v6312_v11  ;;  %4799 = vmatpush1.bf16.msra.mxu1 %v4798_v1 }
0x1482   : > { %v3115_v42 = vsel %vm2061_vm12, %v5128_v20, %v5129_v62  ;;  %v5142_v17 = vpop.permute.xlu1 %5141  ;;  %2978 = vmatprep.mubr.f32.mxu1 %v5404_v19  ;;  %4788 = vmatprep.subr.bf16.mxu0 %v5403_v51 }
0x1483   : > { %v4789_v6 = vpack.c.bf16 %v3116_v25, %v3115_v42  ;;  %v5137_v24 = vpop.permute.xlu0 %5136  ;;  %4800 = vmatprep.subr.bf16.mxu1 %v5403_v51  ;;  %v5143_v59 = vunpack.i.l.bf16 %v5142_v17 }
0x1484   : > { %4379 = vmatmul.mubr.msk.f32.gmra.mrb[22].mxu1 %vm2065_vm15, %v6100_v34  ;;  %v5139_v43 = vunpack.i.h.bf16 %v5137_v24  ;;  %v5138_v53 = vunpack.i.l.bf16 %v5137_v24 }
0x1485   : > { %4790 = vmatpush1.bf16.msra.mxu0 %v4789_v6  ;;  %4802 = vmatpush1.bf16.msra.mxu1 %v4801_v44 }
0x1486   : > { %v6330_v27 = vpop.permute.xlu1 %5151  ;;  %2984 = vmatprep.mubr.f32.mxu1 %v5404_v19  ;;  %4803 = vmatprep.subr.bf16.mxu1 %v5403_v51  ;;  %v3410_v35 = vsel %vm2059_vm11, %v5138_v53, %v5139_v43 }
0x1487   : > { %v5147_v33 = vpop.permute.xlu0 %5146  ;;  %v5153_v41 = vunpack.i.l.bf16 %v6330_v27 }
0x1488   : > { %4380 = vmatmul.mubr.msk.f32.gmra.mrb[24].mxu1 %vm2065_vm15, %v6111_v8  ;;  %v5149_v18 = vunpack.i.h.bf16 %v5147_v33  ;;  %v5148_v37 = vunpack.i.l.bf16 %v5147_v33 }
0x1489   : > { %4805 = vmatpush1.bf16.msra.mxu1 %v4804_v32  ;;  %2990 = vmatprep.mubr.f32.mxu1 %v5404_v19 }
0x148a   : > { %v6341_v34 = vpop.permute.xlu1 %5161  ;;  %4806 = vmatprep.subr.bf16.mxu1 %v5403_v51  ;;  %v3412_v0 = vsel %vm2059_vm11, %v5148_v37, %v5149_v18 }
0x148b   : > { %v6348_v40 = vpop.permute.xlu0 %5156  ;;  %v5164_v57 = vunpack.i.h.bf16 %v6341_v34  ;;  %v5163_v2 = vunpack.i.l.bf16 %v6341_v34 }
0x148c   : > { %4381 = vmatmul.mubr.msk.f32.gmra.mrb[26].mxu1 %vm2065_vm15, %v6122_v10  ;;  %v5158_v23 = vunpack.i.l.bf16 %v6348_v40 }
0x148d   : > { %4808 = vmatpush1.bf16.msra.mxu1 %v4807_v39  ;;  %2996 = vmatprep.mubr.f32.mxu1 %v5404_v19  ;;  %v3435_v9 = vsel %vm1441_vm10, %v5163_v2, %v5164_v57  ;;  %v3442_v39 = vld [vmem:[%s6939_s7 + $0x10] sm:$0xff]  ;;  %v3686_v57 = vld [vmem:[%s6940_s8 + $0x58] sm:$0xff] }
0x148e   : > { %v6353_v8 = vpop.permute.xlu1 %5171  ;;  %4809 = vmatprep.subr.bf16.mxu1 %v5403_v51 }
0x148f   : > { %v6356_v14 = vpop.permute.xlu0 %5166  ;;  %v5173_v4 = vunpack.i.l.bf16 %v6353_v8 }
0x1490   : > { %4382 = vmatmul.mubr.msk.f32.gmra.mrb[28].mxu1 %vm2065_vm15, %v6133_v22  ;;  %v5144_v22 = vunpack.i.h.bf16 %v5142_v17  ;;  %v5169_v49 = vunpack.i.h.bf16 %v6356_v14  ;;  %v5168_v62 = vunpack.i.l.bf16 %v6356_v14 }
0x1491   : > { %4811 = vmatpush1.bf16.msra.mxu1 %v6285_v60  ;;  %3002 = vmatprep.mubr.f32.mxu1 %v5404_v19 }
0x1492   : > { %v3188_v54 = vpop.permute.xlu1 %3187  ;;  %4812 = vmatprep.subr.bf16.mxu1 %v5403_v51  ;;  %v3411_v63 = vsel %vm2059_vm11, %v5143_v59, %v5144_v22 }
0x1493   : > { %v3186_v10 = vpop.permute.xlu0 %3185  ;;  %4392 = vmatprep.mubr.msk.f32.mxu0 %vm1441_vm10, %v3188_v54  ;;  %v4822_v29 = vpack.c.bf16 %v3411_v63, %v3410_v35  ;;  %v3677_v35 = vld [vmem:[%s6940_s8 + $0x10] sm:$0xff] }
0x1494   : > { %v3217_v55 = vsel %vm1441_vm10, %v3186_v10, %v3188_v54  ;;  %4383 = vmatmul.mubr.msk.f32.gmra.mrb[30].mxu1 %vm2065_vm15, %v6144_v31  ;;  %v3444_v54 = vld [vmem:[%s6939_s7 + $0x50] sm:$0xff] }
0x1495   : > { %3314 = vmatmul.mubr.f32.vlgmr.msra.gmra.mrb[20].mxu0 %v3217_v55  ;;  %4814 = vmatpush1.bf16.msra.mxu1 %v6296_v58  ;;  %v5159_v58 = vunpack.i.h.bf16 %v6348_v40 }
0x1496   : > { %v3192_v56 = vpop.permute.xlu1 %3191  ;;  %4815 = vmatprep.subr.bf16.mxu1 %v5403_v51  ;;  %4404 = vmatprep.mubr.msk.f32.mxu1 %vm2065_vm15, %v6183_v13  ;;  %v5154_v13 = vunpack.i.h.bf16 %v6330_v27 }
0x1497   : > { %v3190_v3 = vpop.permute.xlu0 %3189  ;;  %4393 = vmatprep.mubr.msk.f32.mxu0 %vm1441_vm10, %v3192_v56  ;;  %v3434_v1 = vsel %vm1441_vm10, %v5158_v23, %v5159_v58 }
0x1498   : > { %v3218_v28 = vsel %vm1441_vm10, %v3190_v3, %v3192_v56  ;;  %v3413_v15 = vsel %vm2059_vm11, %v5153_v41, %v5154_v13  ;;  %v4828_v42 = vpack.c.bf16 %v3435_v9, %v3434_v1  ;;  %v3676_v3 = vld [vmem:[%s6940_s8 + $0x8] sm:$0xff]  ;;  %v3687_v1 = vld [vmem:[%s6940_s8 + $0x60] sm:$0xff] }
0x1499   : > { %3319 = vmatmul.mubr.f32.gmra.mrb[22].mxu0 %v3218_v28  ;;  %4817 = vmatpush1.bf16.msra.mxu1 %v6312_v11  ;;  %v4825_v7 = vpack.c.bf16 %v3413_v15, %v3412_v0  ;;  %v5174_v11 = vunpack.i.h.bf16 %v6353_v8  ;;  %v3678_v28 = vld [vmem:[%s6940_s8 + $0x18] sm:$0xff]  ;;  %v3680_v13 = vld [vmem:[%s6940_s8 + $0x28] sm:$0xff]  ;;  %v3685_v15 = vld [vmem:[%s6940_s8 + $0x50] sm:$0xff] }
0x149a   : > { %v3196_v31 = vpop.permute.xlu1 %3195  ;;  %4818 = vmatprep.subr.bf16.mxu1 %v5403_v51  ;;  %v4833_v63 = vpack.c.bf16 %v3678_v28, %v3676_v3  ;;  %v3688_v0 = vld [vmem:[%s6940_s8 + $0x68] sm:$0xff]  ;;  %v3701_v3 = vld [vmem:[%s6940_s8 + $0xd0] sm:$0xff] }
0x149b   : > { %v3194_v60 = vpop.permute.xlu0 %3193  ;;  %4394 = vmatprep.mubr.msk.f32.mxu0 %vm1441_vm10, %v3196_v31  ;;  %v3437_v44 = vsel %vm1441_vm10, %v5173_v4, %v5174_v11  ;;  %v3689_v11 = vld [vmem:[%s6940_s8 + $0x70] sm:$0xff]  ;;  %v3692_v4 = vld [vmem:[%s6940_s8 + $0x88] sm:$0xff] }
0x149c   : > { %v3219_v26 = vsel %vm1441_vm10, %v3194_v60, %v3196_v31  ;;  %v3675_v31 = vld [vmem:[%s6940_s8] sm:$0xff]  ;;  %v3682_v60 = vld [vmem:[%s6940_s8 + $0x38] sm:$0xff]  ;;  %4834 = vmatprep.subr.bf16.mxu0 %v4833_v63  ;;  %v3704_v63 = vld [vmem:[%s6940_s8 + $0xe8] sm:$0xff] }
0x149d   : > { %3324 = vmatmul.mubr.f32.gmra.mrb[24].mxu0 %v3219_v26  ;;  %4820 = vmatpush1.bf16.msra.mxu1 %v4789_v6  ;;  %v3436_v6 = vsel %vm1441_vm10, %v5168_v62, %v5169_v49  ;;  %v4835_v18 = vpack.c.bf16 %v3677_v35, %v3675_v31  ;;  %v4837_v37 = vpack.c.bf16 %v3682_v60, %v3680_v13  ;;  %v3679_v26 = vld [vmem:[%s6940_s8 + $0x20] sm:$0xff]  ;;  %v3694_v49 = vld [vmem:[%s6940_s8 + $0x98] sm:$0xff] }
0x149e   : > { %v3200_v30 = vpop.permute.xlu1 %3199  ;;  %4821 = vmatprep.subr.bf16.mxu1 %v5403_v51  ;;  %v4831_v32 = vpack.c.bf16 %v3437_v44, %v3436_v6  ;;  %v4847_v62 = vpack.c.bf16 %v3689_v11, %v3687_v1  ;;  %v3706_v35 = vld [vmem:[%s6940_s8 + $0xf8] sm:$0xff]  ;;  %v3712_v11 = vld [vmem:[%s6940_s8 + $0x128] sm:$0xff] }
0x149f   : > { %v3198_v47 = vpop.permute.xlu0 %3197  ;;  %4395 = vmatprep.mubr.msk.f32.mxu0 %vm1441_vm10, %v3200_v30  ;;  %4836 = vmatpush1.bf16.msra.mxu0 %v4835_v18  ;;  %v4861_v18 = vpack.c.bf16 %v3706_v35, %v3704_v63 }
0x14a0   : > { %v3220_v21 = vsel %vm1441_vm10, %v3198_v47, %v3200_v30  ;;  %v3684_v30 = vld [vmem:[%s6940_s8 + $0x48] sm:$0xff]  ;;  %4838 = vmatprep.subr.bf16.mxu0 %v4837_v37  ;;  %v3683_v47 = vld [vmem:[%s6940_s8 + $0x40] sm:$0xff] }
0x14a1   : > { %3329 = vmatmul.mubr.f32.gmra.mrb[26].mxu0 %v3220_v21  ;;  %4823 = vmatpush1.bf16.msra.mxu1 %v4822_v29  ;;  %v3681_v29 = vld [vmem:[%s6940_s8 + $0x30] sm:$0xff]  ;;  %v4841_v23 = vpack.c.bf16 %v3686_v57, %v3684_v30  ;;  %v3690_v21 = vld [vmem:[%s6940_s8 + $0x78] sm:$0xff]  ;;  %v3703_v37 = vld [vmem:[%s6940_s8 + $0xe0] sm:$0xff] }
0x14a2   : > { %v3204_v38 = vpop.permute.xlu1 %3203  ;;  %4824 = vmatprep.subr.bf16.mxu1 %v5403_v51  ;;  %v4839_v58 = vpack.c.bf16 %v3681_v29, %v3679_v26  ;;  %v4845_v9 = vpack.c.bf16 %v3690_v21, %v3688_v0  ;;  %v3705_v26 = vld [vmem:[%s6940_s8 + $0xf0] sm:$0xff]  ;;  %v3708_v57 = vld [vmem:[%s6940_s8 + $0x108] sm:$0xff]  ;;  %v3707_v21 = vld [vmem:[%s6940_s8 + $0x100] sm:$0xff] }
0x14a3   : > { %v3202_v45 = vpop.permute.xlu0 %3201  ;;  %4396 = vmatprep.mubr.msk.f32.mxu0 %vm1441_vm10, %v3204_v38 }
0x14a4   : > { %v3221_v20 = vsel %vm1441_vm10, %v3202_v45, %v3204_v38  ;;  %4840 = vmatpush1.bf16.msra.mxu0 %v4839_v58  ;;  %v3710_v58 = vld [vmem:[%s6940_s8 + $0x118] sm:$0xff] }
0x14a5   : > { %3334 = vmatmul.mubr.f32.gmra.mrb[28].mxu0 %v3221_v20  ;;  %4826 = vmatpush1.bf16.msra.mxu1 %v4825_v7  ;;  %v4843_v7 = vpack.c.bf16 %v3685_v15, %v3683_v47  ;;  %v4863_v47 = vpack.c.bf16 %v3705_v26, %v3703_v37  ;;  %v4865_v0 = vpack.c.bf16 %v3710_v58, %v3708_v57  ;;  %v3717_v37 = vld [vmem:[%s6940_s8 + $0x150] sm:$0xff]  ;;  %v3722_v58 = vld [vmem:[%s6940_s8 + $0x178] sm:$0xff] }
0x14a6   : > { %v3208_v25 = vpop.permute.xlu1 %3207  ;;  %4827 = vmatprep.subr.bf16.mxu1 %v5403_v51  ;;  %4842 = vmatprep.subr.bf16.mxu0 %v4841_v23 }
0x14a7   : > { %v3206_v17 = vpop.permute.xlu0 %3205  ;;  %4397 = vmatprep.mubr.msk.f32.mxu0 %vm1441_vm10, %v3208_v25 }
0x14a8   : > { %v3222_v24 = vsel %vm1441_vm10, %v3206_v17, %v3208_v25  ;;  %4844 = vmatpush1.bf16.msra.mxu0 %v4843_v7  ;;  %v4849_v25 = vpack.c.bf16 %v3694_v49, %v3692_v4  ;;  %v3693_v17 = vld [vmem:[%s6940_s8 + $0x90] sm:$0xff]  ;;  %v3714_v4 = vld [vmem:[%s6940_s8 + $0x138] sm:$0xff] }
0x14a9   : > { %3339 = vmatmul.mubr.f32.gmra.mrb[30].mxu0 %v3222_v24  ;;  %4829 = vmatpush1.bf16.msra.mxu1 %v4828_v42  ;;  %v3691_v42 = vld [vmem:[%s6940_s8 + $0x80] sm:$0xff]  ;;  %v3696_v24 = vld [vmem:[%s6940_s8 + $0xa8] sm:$0xff]  ;;  %v3709_v7 = vld [vmem:[%s6940_s8 + $0x110] sm:$0xff] }
0x14aa   : > { %v3212_v27 = vpop.permute.xlu1 %3211  ;;  %4830 = vmatprep.subr.bf16.mxu1 %v5403_v51  ;;  %v3443_v51 = vld [vmem:[%s6939_s7 + $0x30] sm:$0xff]  ;;  %4846 = vmatprep.subr.bf16.mxu0 %v4845_v9 }
0x14ab   : > { %v3210_v33 = vpop.permute.xlu0 %3209  ;;  %4398 = vmatprep.mubr.msk.f32.mxu0 %vm1441_vm10, %v3212_v27 }
0x14ac   : > { %v3223_v34 = vsel %vm1441_vm10, %v3210_v33, %v3212_v27  ;;  %v3698_v27 = vld [vmem:[%s6940_s8 + $0xb8] sm:$0xff]  ;;  %4848 = vmatpush1.bf16.msra.mxu0 %v4847_v62  ;;  %v4851_v33 = vpack.c.bf16 %v3693_v17, %v3691_v42  ;;  %v4867_v42 = vpack.c.bf16 %v3709_v7, %v3707_v21 }
0x14ad   : > { %3344 = vmatmul.mubr.f32.gmra.mrb[32].mxu0 %v3223_v34  ;;  %4832 = vmatpush1.bf16.msra.mxu1 %v4831_v32 }
0x14ae   : > { %v3216_v40 = vpop.permute.xlu1 %3215  ;;  %4850 = vmatprep.subr.bf16.mxu0 %v4849_v25 }
0x14af   : > { %v3214_v8 = vpop.permute.xlu0 %3213  ;;  %4399 = vmatprep.mubr.msk.f32.mxu0 %vm1441_vm10, %v3216_v40 }
0x14b0   : > { %3563 = vmatmul.mubr.f32.vlgmr.msra.gmra.mrb[32].mxu1 %v3442_v39  ;;  %v3224_v14 = vsel %vm1441_vm10, %v3214_v8, %v3216_v40  ;;  %v4853_v39 = vpack.c.bf16 %v3698_v27, %v3696_v24  ;;  %v3695_v40 = vld [vmem:[%s6940_s8 + $0xa0] sm:$0xff]  ;;  %v3697_v8 = vld [vmem:[%s6940_s8 + $0xb0] sm:$0xff]  ;;  %4852 = vmatpush1.bf16.msra.mxu0 %v4851_v33  ;;  %v4869_v27 = vpack.c.bf16 %v3714_v4, %v3712_v11 }
0x14b1   : > { %3349 = vmatmul.mubr.f32.gmra.mrb[34].mxu0 %v3224_v14  ;;  %4405 = vmatprep.mubr.msk.f32.mxu1 %vm2065_vm15, %v6207_v16  ;;  %v3445_v16 = vld [vmem:[%s6939_s7 + $0x70] sm:$0xff]  ;;  %v3711_v33 = vld [vmem:[%s6940_s8 + $0x120] sm:$0xff] }
0x14b2   : > { %4854 = vmatprep.subr.bf16.mxu0 %v4853_v39  ;;  %v3713_v39 = vld [vmem:[%s6940_s8 + $0x130] sm:$0xff]  ;;  %v3719_v4 = vld [vmem:[%s6940_s8 + $0x160] sm:$0xff] }
0x14b4   : > { %3568 = vmatmul.mubr.f32.gmra.mrb[34].mxu1 %v3443_v51  ;;  %v3700_v51 = vld [vmem:[%s6940_s8 + $0xc8] sm:$0xff] }
0x14b5   : > { %4406 = vmatprep.mubr.msk.f32.mxu1 %vm2065_vm15, %v6192_v52  ;;  %v3446_v52 = vld [vmem:[%s6939_s7 + $0x90] sm:$0xff] }
0x14b8   : > { %3573 = vmatmul.mubr.f32.gmra.mrb[36].mxu1 %v3444_v54  ;;  %v3702_v54 = vld [vmem:[%s6940_s8 + $0xd8] sm:$0xff] }
0x14b9   : > { %4407 = vmatprep.mubr.msk.f32.mxu1 %vm2065_vm15, %v6201_v50  ;;  %v3447_v50 = vld [vmem:[%s6939_s7 + $0xb0] sm:$0xff] }
0x14bc   : > { %3578 = vmatmul.mubr.f32.gmra.mrb[38].mxu1 %v3445_v16 }
0x14bd   : > { %4408 = vmatprep.mubr.msk.f32.mxu1 %vm2065_vm15, %v6152_v5  ;;  %v3448_v5 = vld [vmem:[%s6939_s7 + $0xd0] sm:$0xff] }
0x14bf   : > { %v6448_v10 = vpop.permute.xlu1 %3467 }
0x14c0   : > { %3583 = vmatmul.mubr.f32.gmra.mrb[40].mxu1 %v3446_v52  ;;  %v6462_v43 = vpop.permute.xlu0 %3154  ;;  %v4855_v52 = vpack.c.bf16 %v3697_v8, %v3695_v40 }
0x14c1   : > { %4409 = vmatprep.mubr.msk.f32.mxu1 %vm2065_vm15, %v6159_v46  ;;  %v3449_v46 = vld [vmem:[%s6939_s7 + $0xf0] sm:$0xff] }
0x14c2   : > { %4856 = vmatpush1.bf16.msra.mxu0 %v4855_v52 }
0x14c4   : > { %3588 = vmatmul.mubr.f32.gmra.mrb[42].mxu1 %v3447_v50  ;;  %v6450_v55 = vpop.permute.xlu1 %3158 }
0x14c5   : > { %4410 = vmatprep.mubr.msk.f32.mxu1 %vm2065_vm15, %v6167_v48  ;;  %v6484_v41 = vpop.permute.xlu0 %3471 }
0x14c8   : > { %3593 = vmatmul.mubr.f32.gmra.mrb[44].mxu1 %v3448_v5  ;;  %v6452_v48 = vpop.permute.xlu1 %3162  ;;  %v4857_v5 = vpack.c.bf16 %v3702_v54, %v3700_v51  ;;  %v3716_v51 = vld [vmem:[%s6940_s8 + $0x148] sm:$0xff]  ;;  %v3718_v54 = vld [vmem:[%s6940_s8 + $0x158] sm:$0xff] }
0x14c9   : > { %4411 = vmatprep.mubr.msk.f32.mxu1 %vm2065_vm15, %v6174_v12 }
0x14ca   : > { %v6512_v38 = vpop.permute.xlu0 %3166  ;;  %4858 = vmatprep.subr.bf16.mxu0 %v4857_v5 }
0x14cc   : > { %3598 = vmatmul.mubr.f32.gmra.mrb[46].mxu1 %v3449_v46  ;;  %v3699_v46 = vld [vmem:[%s6940_s8 + $0xc0] sm:$0xff] }
0x14cd   : > { %3937 = vmatprep.mubr.f32.mxu1 %v5404_v19  ;;  %v6454_v56 = vpop.permute.xlu1 %3475  ;;  %v4859_v13 = vpack.c.bf16 %v3701_v3, %v3699_v46  ;;  %v4871_v46 = vpack.c.bf16 %v3713_v39, %v3711_v33 }
0x14cf   : > { %v6538_v6 = vpop.permute.xlu0 %3451  ;;  %4860 = vmatpush1.bf16.msra.mxu0 %v4859_v13  ;;  %v4873_v13 = vpack.c.bf16 %v3718_v54, %v3716_v51  ;;  %v3723_v54 = vld [vmem:[%s6940_s8 + $0x180] sm:$0xff] }
0x14d0   : > { %4862 = vmatprep.subr.bf16.mxu0 %v4861_v18  ;;  %v3715_v18 = vld [vmem:[%s6940_s8 + $0x140] sm:$0xff] }
0x14d1   : > { %v4875_v21 = vpack.c.bf16 %v3717_v37, %v3715_v18 }
0x14d2   : > { %v6456_v22 = vpop.permute.xlu1 %3138 }
0x14d3   : > { %4864 = vmatpush1.bf16.msra.mxu0 %v4863_v47 }
0x14d4   : > { %v6562_v16 = vpop.permute.xlu0 %3146  ;;  %4866 = vmatprep.subr.bf16.mxu0 %v4865_v0 }
0x14d7   : > { %v6458_v59 = vpop.permute.xlu1 %3479  ;;  %4868 = vmatpush1.bf16.msra.mxu0 %v4867_v42  ;;  %v3726_v42 = vld [vmem:[%s6940_s8 + $0x198] sm:$0xff] }
0x14d8   : > { %4870 = vmatprep.subr.bf16.mxu0 %v4869_v27 }
0x14d9   : > { %v6590_v30 = vpop.permute.xlu0 %3463 }
0x14db   : > { %4872 = vmatpush1.bf16.msra.mxu0 %v4871_v46 }
0x14dc   : > { %v6460_v12 = vpop.permute.xlu1 %3142  ;;  %4874 = vmatprep.subr.bf16.mxu0 %v4873_v13 }
0x14de   : > { %v2865_v25 = vpop.permute.xlu0 %2864 }
0x14df   : > { %4876 = vmatpush1.bf16.msra.mxu0 %v4875_v21  ;;  %v3734_v21 = vld [vmem:[%s6940_s8 + $0x1d8] sm:$0xff] }
0x14e1   : > { %v6464_v53 = vpop.permute.xlu1 %3455 }
0x14e2   : > { %v2840_v57 = vpop.permute.xlu0 %2839 }
0x14e5   : > { %v6498_v2 = vpop.permute.xlu1 %3459 }
0x14ea   : > { %v6520_v45 = vpop.permute.xlu1 %3150 }
0x14ef   : > { %v2855_v32 = vpop.permute.xlu1 %2854 }
0x14f3   : > { %v2860_v28 = vpop.permute.xlu1 %2859 }
0x14f7   : > { %v6598_v23 = vpop.permute.xlu1 %2869 }
0x14fb   : > { %v2835_v40 = vpop.permute.xlu1 %2834 }
0x14ff   : > { %v2845_v46 = vpop.permute.xlu1 %2844 }
0x154b   : > { %v6528_v20 = vpop.f32.mrb[16].mxu1 }
0x154c   : > { %v6536_v44 = vpop.f32.mrb[17].mxu1  ;;  %v2963_v3 = vadd.f32 %v6528_v20, %v2835_v40  ;;  %v3720_v20 = vld [vmem:[%s6940_s8 + $0x168] sm:$0xff] }
0x154d   : > { %v4877_v11 = vpack.c.bf16 %v3722_v58, %v3720_v20  ;;  %v3727_v20 = vld [vmem:[%s6940_s8 + $0x1a0] sm:$0xff]  ;;  %v3729_v58 = vld [vmem:[%s6940_s8 + $0x1b0] sm:$0xff] }
0x154f   : > { %v6546_v34 = vpop.f32.mrb[18].mxu1  ;;  %4878 = vmatprep.subr.bf16.mxu0 %v4877_v11 }
0x1550   : > { %v6554_v14 = vpop.f32.mrb[19].mxu1 }
0x1553   : > { %v6564_v50 = vpop.f32.mrb[20].mxu1 }
0x1554   : > { %v6572_v31 = vpop.f32.mrb[21].mxu1 }
0x1557   : > { %v6580_v60 = vpop.f32.mrb[22].mxu1 }
0x1558   : > { %v6588_v29 = vpop.f32.mrb[23].mxu1 }
0x155b   : > { %v2986_v15 = vpop.f32.mrb[24].mxu1 }
0x155c   : > { %v2987_v9 = vadd.f32 %v2986_v15, %v2855_v32  ;;  %v2988_v1 = vpop.f32.mrb[25].mxu1  ;;  %v2965_v15 = vadd.f32 %v6536_v44, %v2835_v40 }
0x155d   : > { %v2989_v49 = vadd.f32 %v2988_v1, %v2855_v32  ;;  %v2969_v1 = vadd.f32 %v6546_v34, %v2840_v57  ;;  %v3724_v34 = vld [vmem:[%s6940_s8 + $0x188] sm:$0xff] }
0x155e   : > { %v4384_v62 = vmul.f32 -1.442695, %v2987_v9  ;;  %v4881_v51 = vpack.c.bf16 %v3726_v42, %v3724_v34  ;;  %v3733_v34 = vld [vmem:[%s6940_s8 + $0x1d0] sm:$0xff] }
0x155f   : > { %v4385_v17 = vmul.f32 -1.442695, %v2989_v49  ;;  %v2992_v24 = vpop.f32.mrb[26].mxu1  ;;  %v3721_v49 = vld [vmem:[%s6940_s8 + $0x170] sm:$0xff] }
0x1560   : > { %5270 = vpow2.f32 %v4384_v62  ;;  %v2993_v8 = vadd.f32 %v2992_v24, %v2860_v28  ;;  %v2994_v32 = vpop.f32.mrb[27].mxu1  ;;  %v4879_v39 = vpack.c.bf16 %v3721_v49, %v3719_v4  ;;  %v4887_v4 = vpack.c.bf16 %v3729_v58, %v3727_v20 }
0x1561   : > { %5272 = vpow2.f32 %v4385_v17  ;;  %v2995_v52 = vadd.f32 %v2994_v32, %v2860_v28 }
0x1562   : > { %v4386_v5 = vmul.f32 -1.442695, %v2993_v8  ;;  %4880 = vmatpush1.bf16.msra.mxu0 %v4879_v39  ;;  %v3738_v39 = vld [vmem:[%s6940_s8 + $0x1f8] sm:$0xff] }
0x1563   : > { %v4387_v63 = vmul.f32 -1.442695, %v2995_v52  ;;  %v2998_v35 = vpop.f32.mrb[28].mxu1  ;;  %4882 = vmatprep.subr.bf16.mxu0 %v4881_v51 }
0x1564   : > { %5274 = vpow2.f32 %v4386_v5  ;;  %v2999_v26 = vadd.f32 %v2998_v35, %v2865_v25  ;;  %v3000_v28 = vpop.f32.mrb[29].mxu1  ;;  %v2971_v5 = vadd.f32 %v6554_v14, %v2840_v57  ;;  %v3730_v35 = vld [vmem:[%s6940_s8 + $0x1b8] sm:$0xff]  ;;  %v2975_v14 = vadd.f32 %v6564_v50, %v2845_v46  ;;  %v3732_v50 = vld [vmem:[%s6940_s8 + $0x1c8] sm:$0xff] }
0x1565   : > { %5276 = vpow2.f32 %v4387_v63  ;;  %v3001_v47 = vadd.f32 %v3000_v28, %v2865_v25  ;;  %v3728_v63 = vld [vmem:[%s6940_s8 + $0x1a8] sm:$0xff] }
0x1566   : > { %v4388_v0 = vmul.f32 -1.442695, %v2999_v26  ;;  %5278 = vtanh.f32 %v2963_v3  ;;  %v4885_v57 = vpack.c.bf16 %v3730_v35, %v3728_v63 }
0x1567   : > { %v4389_v7 = vmul.f32 -1.442695, %v3001_v47  ;;  %v3004_v9 = vpop.f32.mrb[30].mxu1 }
0x1568   : > { %5280 = vpow2.f32 %v4388_v0  ;;  %v3005_v44 = vadd.f32 %v3004_v9, %v6598_v23  ;;  %v3006_v62 = vpop.f32.mrb[31].mxu1  ;;  %v6646_v25 = vpop.f32.mrb[20].mxu0 }
0x1569   : > { %5282 = vpow2.f32 %v4389_v7  ;;  %v3007_v17 = vadd.f32 %v3006_v62, %v6598_v23  ;;  %v3317_v24 = vpop.f32.mrb[21].mxu0  ;;  %v3725_v23 = vld [vmem:[%s6940_s8 + $0x190] sm:$0xff]  ;;  %v2850_v9 = vpop.permute.xlu0 %2849  ;;  %v3731_v62 = vld [vmem:[%s6940_s8 + $0x1c0] sm:$0xff] }
0x156a   : > { %v5271_v27 = vpop.eup %5270  ;;  %5284 = vtanh.f32 %v2965_v15  ;;  %v4390_v33 = vmul.f32 -1.442695, %v3005_v44  ;;  %v4883_v37 = vpack.c.bf16 %v3725_v23, %v3723_v54  ;;  %v2977_v15 = vadd.f32 %v6572_v31, %v2845_v46  ;;  %v3737_v46 = vld [vmem:[%s6940_s8 + $0x1f0] sm:$0xff] }
0x156b   : > { %v5273_v40 = vpop.eup %5272  ;;  %v3041_v8 = vadd.f32 1.0, %v5271_v27  ;;  %5286 = vtanh.f32 %v2969_v1  ;;  %v4391_v32 = vmul.f32 -1.442695, %v3007_v17  ;;  %v4889_v44 = vpack.c.bf16 %v3734_v21, %v3732_v50 }
0x156c   : > { %v3042_v52 = vadd.f32 1.0, %v5273_v40  ;;  %5288 = vpow2.f32 %v4390_v33  ;;  %v6662_v3 = vpop.f32.mrb[22].mxu0  ;;  %4884 = vmatpush1.bf16.msra.mxu0 %v4883_v37  ;;  %v2981_v24 = vadd.f32 %v6580_v60, %v2850_v9  ;;  %v3736_v33 = vld [vmem:[%s6940_s8 + $0x1e8] sm:$0xff]  ;;  %v4891_v51 = vpack.c.bf16 %v3733_v34, %v3731_v62 }
0x156d   : > { %5290 = vrcp.f32 %v3041_v8  ;;  %v3322_v13 = vpop.f32.mrb[23].mxu0  ;;  %4886 = vmatprep.subr.bf16.mxu0 %v4885_v57  ;;  %v2983_v60 = vadd.f32 %v6588_v29, %v2850_v9 }
0x156e   : > { %v5275_v18 = vpop.eup %5274  ;;  %5292 = vrcp.f32 %v3042_v52  ;;  %v4893_v52 = vpack.c.bf16 %v3738_v39, %v3736_v33  ;;  %v3316_v39 = vadd.f32 %v6646_v25, %v6456_v22  ;;  %v3321_v22 = vadd.f32 %v6662_v3, %v6460_v12  ;;  %v3740_v25 = vld [vmem:[%s6940_s8 + $0x208] sm:$0xff] }
0x156f   : > { %v5277_v26 = vpop.eup %5276  ;;  %v3043_v28 = vadd.f32 1.0, %v5275_v18  ;;  %5294 = vpow2.f32 %v4391_v32 }
0x1570   : > { %v3044_v47 = vadd.f32 1.0, %v5277_v26  ;;  %5296 = vtanh.f32 %v2971_v5  ;;  %v6678_v0 = vpop.f32.mrb[24].mxu0  ;;  %v5279_v7 = vpop.eup %5278  ;;  %4888 = vmatpush1.bf16.msra.mxu0 %v4887_v4  ;;  %v3735_v5 = vld [vmem:[%s6940_s8 + $0x1e0] sm:$0xff] }
0x1571   : > { %5298 = vrcp.f32 %v3043_v28  ;;  %v3327_v1 = vpop.f32.mrb[25].mxu0  ;;  %4890 = vmatprep.subr.bf16.mxu0 %v4889_v44  ;;  %v4895_v57 = vpack.c.bf16 %v3737_v46, %v3735_v5 }
0x1572   : > { %v5281_v11 = vpop.eup %5280  ;;  %5300 = vrcp.f32 %v3044_v47 }
0x1573   : > { %v5283_v49 = vpop.eup %5282  ;;  %v3045_v31 = vadd.f32 1.0, %v5281_v11  ;;  %5302 = vtanh.f32 %v2975_v14 }
0x1574   : > { %v5285_v42 = vpop.eup %5284  ;;  %v3046_v17 = vadd.f32 1.0, %v5283_v49  ;;  %5304 = vtanh.f32 %v2977_v15  ;;  %v6693_v27 = vpop.f32.mrb[26].mxu0  ;;  %4892 = vmatpush1.bf16.msra.mxu0 %v4891_v51 }
0x1575   : > { %v5287_v40 = vpop.eup %5286  ;;  %5306 = vrcp.f32 %v3045_v31  ;;  %v3332_v8 = vpop.f32.mrb[27].mxu0  ;;  %4894 = vmatprep.subr.bf16.mxu0 %v4893_v52 }
0x1576   : > { %v5289_v32 = vpop.eup %5288  ;;  %5308 = vrcp.f32 %v3046_v17 }
0x1577   : > { %v5291_v54 = vpop.eup %5290  ;;  %v3047_v23 = vadd.f32 1.0, %v5289_v32  ;;  %5310 = vtanh.f32 %v2981_v24 }
0x1578   : > { %v5293_v63 = vpop.eup %5292  ;;  %v3335_v35 = vpop.f32.mrb[28].mxu0  ;;  %v6708_v13 = vmul.f32 %v5291_v54, %v5279_v7  ;;  %4896 = vmatpush1.bf16.msra.mxu0 %v4895_v57 }
0x1579   : > { %v5295_v18 = vpop.eup %5294  ;;  %5312 = vrcp.f32 %v3047_v23  ;;  %v3336_v37 = vadd.f32 %v3335_v35, %v6462_v43  ;;  %v3337_v29 = vpop.f32.mrb[29].mxu0  ;;  %v6711_v26 = vmul.f32 %v5293_v63, %v5285_v42 }
0x157a   : > { %v5297_v28 = vpop.eup %5296  ;;  %v3048_v14 = vadd.f32 1.0, %v5295_v18  ;;  %5314 = vtanh.f32 %v2983_v60  ;;  %v3741_v29 = vld [vmem:[%s6940_s8 + $0x210] sm:$0xff] }
0x157b   : > { %v5299_v20 = vpop.eup %5298  ;;  %v4400_v58 = vmul.f32 -1.442695, %v3336_v37  ;;  %v3739_v37 = vld [vmem:[%s6940_s8 + $0x200] sm:$0xff] }
0x157c   : > { %v5301_v47 = vpop.eup %5300  ;;  %5316 = vrcp.f32 %v3048_v14  ;;  %v3340_v15 = vpop.f32.mrb[30].mxu0  ;;  %v6713_v50 = vmul.f32 %v5299_v20, %v5287_v40  ;;  %v3744_v20 = vld [vmem:[%s6940_s8 + $0x228] sm:$0xff] }
0x157d   : > { %v5303_v21 = vpop.eup %5302  ;;  %5318 = vpow2.f32 %v4400_v58  ;;  %v3341_v43 = vadd.f32 %v3340_v15, %v6450_v55  ;;  %v3342_v7 = vpop.f32.mrb[31].mxu0  ;;  %v6716_v9 = vmul.f32 %v5301_v47, %v5297_v28  ;;  %v4899_v28 = vpack.c.bf16 %v3741_v29, %v3739_v37  ;;  %v3746_v58 = vld [vmem:[%s6940_s8 + $0x238] sm:$0xff]  ;;  %v3743_v47 = vld [vmem:[%s6940_s8 + $0x220] sm:$0xff]  ;;  %v3757_v29 = vld [vmem:[%s6940_s8 + $0x290] sm:$0xff] }
0x157e   : > { %v5305_v1 = vpop.eup %5304  ;;  %v3326_v15 = vadd.f32 %v6678_v0, %v6562_v16  ;;  %v3748_v7 = vld [vmem:[%s6940_s8 + $0x248] sm:$0xff]  ;;  %v3747_v16 = vld [vmem:[%s6940_s8 + $0x240] sm:$0xff]  ;;  %v3749_v0 = vld [vmem:[%s6940_s8 + $0x250] sm:$0xff] }
0x157f   : > { %v5307_v11 = vpop.eup %5306  ;;  %v4401_v4 = vmul.f32 -1.442695, %v3341_v43  ;;  %v3745_v43 = vld [vmem:[%s6940_s8 + $0x230] sm:$0xff]  ;;  %v3755_v37 = vld [vmem:[%s6940_s8 + $0x280] sm:$0xff] }
0x1580   : > { %v5309_v49 = vpop.eup %5308  ;;  %v3345_v31 = vpop.f32.mrb[32].mxu0  ;;  %v6718_v44 = vmul.f32 %v5307_v11, %v5303_v21  ;;  %v4901_v21 = vpack.c.bf16 %v3746_v58, %v3744_v20  ;;  %v4903_v11 = vpack.c.bf16 %v3745_v43, %v3743_v47 }
0x1581   : > { %5320 = vpow2.f32 %v4401_v4  ;;  %v3346_v62 = vadd.f32 %v3345_v31, %v6452_v48  ;;  %v3347_v34 = vpop.f32.mrb[33].mxu0  ;;  %v6721_v42 = vmul.f32 %v5309_v49, %v5305_v1  ;;  %v5311_v17 = vpop.eup %5310  ;;  %v3750_v1 = vld [vmem:[%s6940_s8 + $0x258] sm:$0xff] }
0x1582   : > { %v4905_v4 = vpack.c.bf16 %v3750_v1, %v3748_v7  ;;  %v3754_v34 = vld [vmem:[%s6940_s8 + $0x278] sm:$0xff]  ;;  %v3759_v7 = vld [vmem:[%s6940_s8 + $0x2a0] sm:$0xff]  ;;  %v3761_v1 = vld [vmem:[%s6940_s8 + $0x2b0] sm:$0xff] }
0x1583   : > { %v5313_v24 = vpop.eup %5312  ;;  %v4402_v55 = vmul.f32 -1.442695, %v3346_v62  ;;  %v6723_v33 = vpop.f32.mrb[32].mxu1  ;;  %v3752_v62 = vld [vmem:[%s6940_s8 + $0x268] sm:$0xff] }
0x1584   : > { %v3350_v40 = vpop.f32.mrb[34].mxu0  ;;  %v3566_v8 = vpop.f32.mrb[33].mxu1  ;;  %v6727_v32 = vmul.f32 %v5313_v24, %v5311_v17 }
0x1585   : > { %v5315_v51 = vpop.eup %5314  ;;  %5322 = vpow2.f32 %v4402_v55  ;;  %v3351_v54 = vadd.f32 %v3350_v40, %v6512_v38  ;;  %v3352_v48 = vpop.f32.mrb[35].mxu0  ;;  %v3742_v38 = vld [vmem:[%s6940_s8 + $0x218] sm:$0xff]  ;;  %v3331_v55 = vadd.f32 %v6693_v27, %v6520_v45  ;;  %v4909_v8 = vpack.c.bf16 %v3754_v34, %v3752_v62  ;;  %v3756_v45 = vld [vmem:[%s6940_s8 + $0x288] sm:$0xff] }
0x1586   : > { %v5317_v23 = vpop.eup %5316  ;;  %5324 = vtanh.f32 %v3316_v39  ;;  %v4897_v18 = vpack.c.bf16 %v3742_v38, %v3740_v25  ;;  %v4907_v39 = vpack.c.bf16 %v3749_v0, %v3747_v16  ;;  %v3758_v27 = vld [vmem:[%s6940_s8 + $0x298] sm:$0xff] }
0x1587   : > { %v5319_v60 = vpop.eup %5318  ;;  %v4403_v52 = vmul.f32 -1.442695, %v3351_v54  ;;  %v6730_v5 = vpop.f32.mrb[34].mxu1  ;;  %v6732_v46 = vmul.f32 %v5317_v23, %v5315_v51  ;;  %v3751_v51 = vld [vmem:[%s6940_s8 + $0x260] sm:$0xff]  ;;  %v3753_v54 = vld [vmem:[%s6940_s8 + $0x270] sm:$0xff]  ;;  %v3766_v16 = vld [vmem:[%s6940_s8 + $0x2d8] sm:$0xff] }
0x1588   : > { %v3370_v63 = vadd.f32 1.0, %v5319_v60  ;;  %v3571_v35 = vpop.f32.mrb[35].mxu1  ;;  %4898 = vmatprep.subr.bf16.mxu1 %v4897_v18  ;;  %v4911_v25 = vpack.c.bf16 %v3753_v54, %v3751_v51  ;;  %v4913_v18 = vpack.c.bf16 %v3758_v27, %v3756_v45  ;;  %v3768_v54 = vld [vmem:[%s6940_s8 + $0x2e8] sm:$0xff] }
0x1589   : > { %5326 = vpow2.f32 %v4403_v52  ;;  %4900 = vmatpush1.bf16.msra.mxu1 %v4899_v28  ;;  %v3760_v28 = vld [vmem:[%s6940_s8 + $0x2a8] sm:$0xff] }
0x158a   : > { %5328 = vrcp.f32 %v3370_v63  ;;  %4902 = vmatprep.subr.bf16.mxu1 %v4901_v21 }
0x158b   : > { %v5321_v12 = vpop.eup %5320  ;;  %v6748_v3 = vpop.f32.mrb[36].mxu1  ;;  %5330 = vtanh.f32 %v3321_v22 }
0x158c   : > { %v3371_v14 = vadd.f32 1.0, %v5321_v12  ;;  %v3576_v57 = vpop.f32.mrb[37].mxu1 }
0x158d   : > { %4904 = vmatpush1.bf16.msra.mxu1 %v4903_v11 }
0x158e   : > { %5332 = vrcp.f32 %v3371_v14  ;;  %4906 = vmatprep.subr.bf16.mxu1 %v4905_v4  ;;  %v3762_v14 = vld [vmem:[%s6940_s8 + $0x2b8] sm:$0xff] }
0x158f   : > { %v5323_v49 = vpop.eup %5322  ;;  %v6776_v31 = vpop.f32.mrb[38].mxu1  ;;  %5334 = vtanh.f32 %v3326_v15  ;;  %v4915_v15 = vpack.c.bf16 %v3757_v29, %v3755_v37  ;;  %v4917_v43 = vpack.c.bf16 %v3762_v14, %v3760_v28  ;;  %v3575_v29 = vadd.f32 %v6748_v3, %v6498_v2 }
0x1590   : > { %v3372_v17 = vadd.f32 1.0, %v5323_v49  ;;  %v3581_v24 = vpop.f32.mrb[39].mxu1  ;;  %v5325_v40 = vpop.eup %5324 }
0x1591   : > { %4908 = vmatpush1.bf16.msra.mxu1 %v4907_v39  ;;  %v3763_v39 = vld [vmem:[%s6940_s8 + $0x2c0] sm:$0xff] }
0x1592   : > { %5336 = vrcp.f32 %v3372_v17  ;;  %4910 = vmatprep.subr.bf16.mxu1 %v4909_v8  ;;  %v4919_v17 = vpack.c.bf16 %v3761_v1, %v3759_v7 }
0x1593   : > { %v5327_v48 = vpop.eup %5326  ;;  %v3584_v23 = vpop.f32.mrb[40].mxu1  ;;  %5338 = vtanh.f32 %v3331_v55 }
0x1594   : > { %v5329_v60 = vpop.eup %5328  ;;  %v3373_v52 = vadd.f32 1.0, %v5327_v48  ;;  %v3585_v63 = vadd.f32 %v3584_v23, %v6448_v10  ;;  %v3586_v35 = vpop.f32.mrb[41].mxu1  ;;  %v3770_v48 = vld [vmem:[%s6940_s8 + $0x2f8] sm:$0xff] }
0x1595   : > { %v3382_v22 = vmul.f32 %v5329_v60, %v5325_v40  ;;  %v5331_v12 = vpop.eup %5330  ;;  %4912 = vmatpush1.bf16.msra.mxu1 %v4911_v25  ;;  %v3765_v40 = vld [vmem:[%s6940_s8 + $0x2d0] sm:$0xff] }
0x1596   : > { %5340 = vrcp.f32 %v3373_v52  ;;  %v4412_v38 = vmul.f32 -1.442695, %v3585_v63  ;;  %4914 = vmatprep.subr.bf16.mxu1 %v4913_v18  ;;  %v4923_v52 = vpack.c.bf16 %v3765_v40, %v3763_v39 }
0x1597   : > { %3639 = vrot.lane.b32.xlu1 %v3382_v22, %s5400_s22  ;;  %v3589_v10 = vpop.f32.mrb[42].mxu1  ;;  %v3570_v22 = vadd.f32 %v6730_v5, %v6464_v53 }
0x1598   : > { %v5333_v57 = vpop.eup %5332  ;;  %5342 = vpow2.f32 %v4412_v38  ;;  %v3590_v20 = vadd.f32 %v3589_v10, %v6484_v41  ;;  %v3591_v58 = vpop.f32.mrb[43].mxu1  ;;  %v3764_v41 = vld [vmem:[%s6940_s8 + $0x2c8] sm:$0xff]  ;;  %v3769_v38 = vld [vmem:[%s6940_s8 + $0x2f0] sm:$0xff] }
0x1599   : > { %v6813_v47 = vmul.f32 %v5333_v57, %v5331_v12  ;;  %v5335_v11 = vpop.eup %5334  ;;  %4916 = vmatpush1.bf16.msra.mxu1 %v4915_v15  ;;  %v4921_v55 = vpack.c.bf16 %v3766_v16, %v3764_v41  ;;  %v3580_v12 = vadd.f32 %v6776_v31, %v6590_v30  ;;  %v5408_v30 = vmov 35   ;;  %v5372_v41 = vld [vmem:[%s6937_s5] sm:$0xff]  ;;  %v5373_v16 = vld [vmem:[%s6937_s5 + $0x8] sm:$0xff] }
0x159a   : > { %v4413_v21 = vmul.f32 -1.442695, %v3590_v20  ;;  %4918 = vmatprep.subr.bf16.mxu1 %v4917_v43  ;;  %5206 = vset.pattern.permute.xlu0 %v5408_v30 }
0x159b   : > { %v3594_v4 = vpop.f32.mrb[44].mxu1  ;;  %5207 = vset.pattern.permute.xlu1 %v5408_v30 }
0x159c   : > { %v5337_v0 = vpop.eup %5336  ;;  %5344 = vpow2.f32 %v4413_v21  ;;  %v3595_v49 = vadd.f32 %v3594_v4, %v6454_v56  ;;  %v3596_v62 = vpop.f32.mrb[45].mxu1  ;;  %v3565_v56 = vadd.f32 %v6723_v33, %v6538_v6  ;;  %v4925_v6 = vpack.c.bf16 %v3770_v48, %v3768_v54 }
0x159d   : > { %v6828_v34 = vmul.f32 %v5337_v0, %v5335_v11  ;;  %v5339_v8 = vpop.eup %5338  ;;  %4920 = vmatpush1.bf16.msra.mxu1 %v4919_v17  ;;  %v5409_v0 = vmov 36   ;;  %v5410_v62 = vmov 37   ;;  %v5411_v17 = vmov 38  }
0x159e   : > { %v4414_v24 = vmul.f32 -1.442695, %v3595_v49  ;;  %4922 = vmatprep.subr.bf16.mxu1 %v4921_v55  ;;  %v5374_v49 = vld [vmem:[%s6937_s5 + $0x10] sm:$0xff] }
0x159f   : > { %v3599_v51 = vpop.f32.mrb[46].mxu1 }
0x15a0   : > { %v5341_v23 = vpop.eup %5340  ;;  %5346 = vpow2.f32 %v4414_v24  ;;  %v3600_v45 = vadd.f32 %v3599_v51, %v6458_v59  ;;  %v3601_v27 = vpop.f32.mrb[47].mxu1  ;;  %v3767_v59 = vld [vmem:[%s6940_s8 + $0x2e0] sm:$0xff] }
0x15a1   : > { %v3385_v60 = vmul.f32 %v5341_v23, %v5339_v8  ;;  %5348 = vtanh.f32 %v3565_v56  ;;  %4924 = vmatpush1.bf16.msra.mxu1 %v4923_v52  ;;  %v4927_v37 = vpack.c.bf16 %v3769_v38, %v3767_v59 }
0x15a2   : > { %v5343_v63 = vpop.eup %5342  ;;  %v4415_v35 = vmul.f32 -1.442695, %v3600_v45  ;;  %4926 = vmatprep.subr.bf16.mxu1 %v4925_v6  ;;  %v3780_v6 = vsub.s32 1, %v5949_v61 }
0x15a3   : > { %v3619_v33 = vadd.f32 1.0, %v5343_v63 }
0x15a4   : > { %5350 = vpow2.f32 %v4415_v35 }
0x15a5   : > { %5352 = vrcp.f32 %v3619_v33  ;;  %4928 = vmatpush1.bf16.msra.mxu1 %v4927_v37  ;;  %v3970_v33 = vld [vmem:[%s394_s23] sm:$0x3] }
0x15a6   : > { %v5345_v25 = vpop.eup %5344  ;;  %5354 = vtanh.f32 %v3570_v22  ;;  %v3991_v38 = vrot.slane %v3970_v33, %v5958_v36 }
0x15a7   : > { %v3620_v18 = vadd.f32 1.0, %v5345_v25  ;;  %v3995_v25 = vrot.slane %v3970_v33, %v3780_v6 }
0x15a9   : > { %5356 = vrcp.f32 %v3620_v18 }
0x15aa   : > { %v5347_v53 = vpop.eup %5346  ;;  %5358 = vtanh.f32 %v3575_v29 }
0x15ab   : > { %v3621_v5 = vadd.f32 1.0, %v5347_v53  ;;  %v5349_v10 = vpop.eup %5348 }
0x15ad   : > { %5360 = vrcp.f32 %v3621_v5 }
0x15ae   : > { %v5351_v28 = vpop.eup %5350  ;;  %5362 = vtanh.f32 %v3580_v12 }
0x15af   : > { %v5353_v14 = vpop.eup %5352  ;;  %v3622_v57 = vadd.f32 1.0, %v5351_v28 }
0x15b0   : > { %v3631_v20 = vmul.f32 %v5353_v14, %v5349_v10  ;;  %v5355_v58 = vpop.eup %5354 }
0x15b1   : > { %5364 = vrcp.f32 %v3622_v57 }
0x15b2   : > { %v5191_v15 = vpack.i.bf16 %v6813_v47, %v3631_v20 }
0x15b3   : > { %v5357_v2 = vpop.eup %5356 }
0x15b4   : > { %5192 = vrot.lane.b32.xlu0 %v5191_v15, %s5400_s22  ;;  %v3632_v3 = vmul.f32 %v5357_v2, %v5355_v58  ;;  %v5359_v21 = vpop.eup %5358 }
0x15b6   : > { %v5196_v43 = vpack.i.bf16 %v6828_v34, %v3632_v3  ;;  %v5375_v34 = vld [vmem:[%s6937_s5 + $0x18] sm:$0xff] }
0x15b7   : > { %v5361_v7 = vpop.eup %5360 }
0x15b8   : > { %5197 = vrot.lane.b32.xlu1 %v5196_v43, %s5400_s22  ;;  %v3633_v31 = vmul.f32 %v5361_v7, %v5359_v21  ;;  %v5363_v1 = vpop.eup %5362 }
0x15ba   : > { %v5201_v11 = vpack.i.bf16 %v3385_v60, %v3633_v31 }
0x15bb   : > { %v5365_v4 = vpop.eup %5364 }
0x15bc   : > { %5202 = vrot.lane.b32.xlu0 %v5201_v11, %s5400_s22  ;;  %v3634_v47 = vmul.f32 %v5365_v4, %v5363_v1 }
0x15be   : > { %3661 = vrot.lane.b32.xlu1 %v3634_v47, %s5400_s22 }
0x15c0   : > { %3972 = vperm.xlu0 %5206, %v5372_v41  }
0x15c2   : > { %3976 = vperm.xlu1 %5207, %v5373_v16  }
0x15c4   : > { %5208 = vset.pattern.permute.xlu0 %v5409_v0 }
0x15c5   : > { %4007 = vperm.xlu0 %5208, %v5372_v41  }
0x15c6   : > { %3980 = vperm.xlu1 %5207, %v5374_v49  }
0x15c9   : > { %4015 = vperm.xlu0 %5208, %v5374_v49  }
0x15ca   : > { %5209 = vset.pattern.permute.xlu1 %v5409_v0 }
0x15cb   : > { %4011 = vperm.xlu1 %5209, %v5373_v16  }
0x15cd   : > { %5212 = vset.pattern.permute.xlu0 %v5410_v62 }
0x15ce   : > { %4123 = vperm.xlu0 %5212, %v5372_v41  }
0x15cf   : > { %5210 = vset.pattern.permute.xlu1 %v5408_v30 }
0x15d0   : > { %3984 = vperm.xlu1 %5210, %v5375_v34  }
0x15d2   : > { %4135 = vperm.xlu0 %5212, %v5375_v34  }
0x15d4   : > { %5211 = vset.pattern.permute.xlu1 %v5409_v0 }
0x15d5   : > { %4019 = vperm.xlu1 %5211, %v5375_v34  }
0x15d6   : > { %5215 = vset.pattern.permute.xlu0 %v5411_v17 }
0x15d7   : > { %4151 = vperm.xlu0 %5215, %v5373_v16  }
0x15d9   : > { %5213 = vset.pattern.permute.xlu1 %v5410_v62 }
0x15da   : > { %4127 = vperm.xlu1 %5213, %v5373_v16  }
0x15de   : > { %4131 = vperm.xlu1 %5213, %v5374_v49  }
0x15e2   : > { %5214 = vset.pattern.permute.xlu1 %v5411_v17 }
0x15e3   : > { %4147 = vperm.xlu1 %5214, %v5372_v41  }
0x15e7   : > { %4155 = vperm.xlu1 %5214, %v5374_v49  }
0x15eb   : > { %4159 = vperm.xlu1 %5214, %v5375_v34  }
0x1609   : > { %v3640_v24 = vpop.permute.xlu1 %3639 }
0x160a   : > { %v3667_v55 = vsel %vm1441_vm10, %v6711_v26, %v3640_v24 }
0x160b   : > { %3848 = vmatprep.mubr.f32.mxu0 %v3667_v55 }
0x160c   : > { %3849 = vmatmul.mubr.f32.vlgmr.msra.gmra.mrb[36].mxu0 %v6708_v13 }
0x1626   : > { %v5193_v39 = vpop.permute.xlu0 %5192 }
0x1627   : > { %v5195_v40 = vunpack.i.h.bf16 %v5193_v39  ;;  %v5194_v8 = vunpack.i.l.bf16 %v5193_v39 }
0x1629   : > { %v3668_v56 = vsel %vm1441_vm10, %v6716_v9, %v5195_v40  ;;  %v3671_v51 = vsel %vm1441_vm10, %v3640_v24, %v5194_v8 }
0x162a   : > { %v5198_v54 = vpop.permute.xlu1 %5197  ;;  %3854 = vmatprep.mubr.f32.mxu0 %v3668_v56  ;;  %3938 = vmatmul.mubr.f32.vlgmr.msra.gmra.mrb[48].mxu1 %v3671_v51 }
0x162b   : > { %v5200_v48 = vunpack.i.h.bf16 %v5198_v54  ;;  %v5199_v23 = vunpack.i.l.bf16 %v5198_v54  ;;  %3855 = vmatmul.mubr.f32.gmra.mrb[38].mxu0 %v6713_v50  ;;  %3943 = vmatprep.mubr.f32.mxu1 %v5404_v19 }
0x162d   : > { %v3669_v13 = vsel %vm1441_vm10, %v6721_v42, %v5200_v48  ;;  %v3672_v26 = vsel %vm1441_vm10, %v5195_v40, %v5199_v23 }
0x162e   : > { %v5203_v45 = vpop.permute.xlu0 %5202  ;;  %3860 = vmatprep.mubr.f32.mxu0 %v3669_v13  ;;  %3944 = vmatmul.mubr.f32.gmra.mrb[50].mxu1 %v3672_v26 }
0x162f   : > { %v5205_v9 = vunpack.i.h.bf16 %v5203_v45  ;;  %v5204_v27 = vunpack.i.l.bf16 %v5203_v45  ;;  %3861 = vmatmul.mubr.f32.gmra.mrb[40].mxu0 %v6718_v44  ;;  %3949 = vmatprep.mubr.f32.mxu1 %v5404_v19 }
0x1630   : > { %v3662_v52 = vpop.permute.xlu1 %3661 }
0x1631   : > { %v3670_v50 = vsel %vm1441_vm10, %v6732_v46, %v5205_v9  ;;  %v3673_v60 = vsel %vm1441_vm10, %v5200_v48, %v5204_v27  ;;  %v3674_v42 = vsel %vm1441_vm10, %v5205_v9, %v3662_v52  ;;  %v4416_v46 = vld [vmem:[%s6940_s8 + $0x300] ss:$8 sm:$0x3] }
0x1632   : > { %3866 = vmatprep.mubr.f32.mxu0 %v3670_v50  ;;  %3950 = vmatmul.mubr.f32.gmra.mrb[52].mxu1 %v3673_v60  ;;  %v3781_v22 = vrot.slane %v4416_v46, %v3780_v6 }
0x1633   : > { %3867 = vmatmul.mubr.f32.gmra.mrb[42].mxu0 %v6727_v32  ;;  %3955 = vmatprep.mubr.f32.mxu1 %v5404_v19  ;;  %v3777_v19 = vrot.slane %v4416_v46, %v5958_v36 }
0x1636   : > { %3956 = vmatmul.mubr.f32.gmra.mrb[54].mxu1 %v3674_v42 }
0x163f   : > { %v3973_v32 = vpop.permute.xlu0 %3972 }
0x1640   : > { %v3999_v18 = vmul.f32 %v3995_v25, %v3973_v32  ;;  %v3998_v53 = vmul.f32 %v3991_v38, %v3973_v32 }
0x1641   : > { %v3977_v44 = vpop.permute.xlu1 %3976 }
0x1642   : > { %v4000_v2 = vmul.f32 %v3991_v38, %v3977_v44  ;;  %v4001_v7 = vmul.f32 %v3995_v25, %v3977_v44 }
0x1644   : > { %v4008_v37 = vpop.permute.xlu0 %4007 }
0x1645   : > { %v3981_v59 = vpop.permute.xlu1 %3980  ;;  %v4023_v57 = vadd.f32 %v4008_v37, %v3999_v18  ;;  %v4022_v3 = vadd.f32 %v4008_v37, %v3998_v53 }
0x1646   : > { %v4002_v1 = vmul.f32 %v3991_v38, %v3981_v59  ;;  %v4003_v39 = vmul.f32 %v3995_v25, %v3981_v59 }
0x1648   : > { %v4016_v36 = vpop.permute.xlu0 %4015 }
0x1649   : > { %v4026_v51 = vadd.f32 %v4016_v36, %v4002_v1  ;;  %v4027_v44 = vadd.f32 %v4016_v36, %v4003_v39 }
0x164a   : > { %v4012_v61 = vpop.permute.xlu1 %4011 }
0x164b   : > { %v4024_v34 = vadd.f32 %v4012_v61, %v4000_v2  ;;  %v4025_v40 = vadd.f32 %v4012_v61, %v4001_v7 }
0x164f   : > { %v3985_v62 = vpop.permute.xlu1 %3984 }
0x1650   : > { %v4004_v23 = vmul.f32 %v3991_v38, %v3985_v62  ;;  %v4005_v6 = vmul.f32 %v3995_v25, %v3985_v62 }
0x1654   : > { %v4020_v59 = vpop.permute.xlu1 %4019 }
0x1655   : > { %v4029_v61 = vadd.f32 %v4020_v59, %v4005_v6 }
0x16df   : > { %v3850_v63 = vpop.f32.mrb[36].mxu0 }
0x16e0   : > { %v3852_v35 = vpop.f32.mrb[37].mxu0  ;;  %v3851_v29 = vadd.f32 %v3850_v63, %v3777_v19 }
0x16e1   : > { %v3853_v5 = vadd.f32 %v3852_v35, %v3781_v22 }
0x16fd   : > { %v3939_v12 = vpop.f32.mrb[48].mxu1 }
0x16fe   : > { %v3940_v10 = vadd.f32 %v3939_v12, %v3851_v29  ;;  %v3856_v28 = vpop.f32.mrb[38].mxu0  ;;  %v3941_v14 = vpop.f32.mrb[49].mxu1 }
0x16ff   : > { %v3857_v20 = vadd.f32 %v3856_v28, %v3777_v19  ;;  %v3942_v58 = vadd.f32 %v3941_v14, %v3853_v5  ;;  %v3858_v15 = vpop.f32.mrb[39].mxu0 }
0x1700   : > { %v3962_v21 = vmax.f32 %v3940_v10, 0.0  ;;  %v3859_v43 = vadd.f32 %v3858_v15, %v3781_v22 }
0x1701   : > { %v3963_v30 = vmax.f32 %v3942_v58, 0.0  ;;  %v3945_v31 = vpop.f32.mrb[50].mxu1 }
0x1702   : > { %v3946_v11 = vadd.f32 %v3945_v31, %v3857_v20  ;;  %v3862_v4 = vpop.f32.mrb[40].mxu0  ;;  %v3947_v47 = vpop.f32.mrb[51].mxu1  ;;  %v6906_v17 = vadd.f32 %v4022_v3, %v3962_v21 }
0x1703   : > { %v6904_v41 = vadd.f32 %v4023_v57, %v3963_v30  ;;  %v3863_v16 = vadd.f32 %v3862_v4, %v3777_v19  ;;  %v3948_v0 = vadd.f32 %v3947_v47, %v3859_v43  ;;  %v3864_v49 = vpop.f32.mrb[41].mxu0 }
0x1704   : > { %v3964_v24 = vmax.f32 %v3946_v11, 0.0  ;;  %v3865_v55 = vadd.f32 %v3864_v49, %v3781_v22  ;;  %v4038_v52 = vmax.f32 %v6906_v17, 0.0 }
0x1705   : > { %v3965_v8 = vmax.f32 %v3948_v0, 0.0  ;;  %v3951_v56 = vpop.f32.mrb[52].mxu1  ;;  %v4039_v45 = vmax.f32 %v6904_v41, 0.0 }
0x1706   : > { %v6908_v54 = vadd.f32 %v4024_v34, %v3964_v24  ;;  %v3952_v48 = vadd.f32 %v3951_v56, %v3863_v16  ;;  %v3868_v13 = vpop.f32.mrb[42].mxu0  ;;  %v3953_v26 = vpop.f32.mrb[53].mxu1 }
0x1707   : > { %v4033_v9 = vadd.f32 %v4025_v40, %v3965_v8  ;;  %v3869_v27 = vadd.f32 %v3868_v13, %v3777_v19  ;;  %v3954_v50 = vadd.f32 %v3953_v26, %v3865_v55  ;;  %v3870_v60 = vpop.f32.mrb[43].mxu0  ;;  %v4055_v19 = vsel %vm2061_vm12, %v4039_v45, 0.0 }
0x1708   : > { %v4040_v42 = vmax.f32 %v6908_v54, 0.0  ;;  %v3966_v63 = vmax.f32 %v3952_v48, 0.0  ;;  %v3871_v35 = vadd.f32 %v3870_v60, %v3781_v22  ;;  %v4028_v22 = vadd.f32 %v4020_v59, %v4004_v23 }
0x1709   : > { %v4041_v46 = vmax.f32 %v4033_v9, 0.0  ;;  %v3967_v32 = vmax.f32 %v3954_v50, 0.0  ;;  %v3957_v33 = vpop.f32.mrb[54].mxu1 }
0x170a   : > { %v4046_v38 = vadd.f32 %v4040_v42, %v4038_v52  ;;  %v4034_v18 = vadd.f32 %v4026_v51, %v3966_v63  ;;  %v3958_v37 = vadd.f32 %v3957_v33, %v3869_v27  ;;  %v3959_v29 = vpop.f32.mrb[55].mxu1 }
0x170b   : > { %v4056_v53 = vsel %vm2061_vm12, %v4041_v46, 0.0  ;;  %v4035_v5 = vadd.f32 %v4027_v44, %v3967_v32  ;;  %v3960_v12 = vadd.f32 %v3959_v29, %v3871_v35 }
0x170c   : > { %v4057_v10 = vadd.f32 %v4056_v53, %v4055_v19  ;;  %v4042_v28 = vmax.f32 %v4034_v18, 0.0  ;;  %v3968_v14 = vmax.f32 %v3958_v37, 0.0 }
0x170d   : > { %v4043_v57 = vmax.f32 %v4035_v5, 0.0  ;;  %v3969_v25 = vmax.f32 %v3960_v12, 0.0  ;;  %v4128_v5 = vpop.permute.xlu1 %4127 }
0x170e   : > { %v4047_v20 = vadd.f32 %v4046_v38, %v4042_v28  ;;  %v4036_v58 = vadd.f32 %v4028_v22, %v3968_v14 }
0x170f   : > { %v4058_v15 = vsel %vm2061_vm12, %v4043_v57, 0.0  ;;  %v4037_v2 = vadd.f32 %v4029_v61, %v3969_v25 }
0x1710   : > { %v4059_v3 = vadd.f32 %v4058_v15, %v4057_v10  ;;  %v4044_v21 = vmax.f32 %v4036_v58, 0.0 }
0x1711   : > { %v4045_v43 = vmax.f32 %v4037_v2, 0.0  ;;  %v4132_v25 = vpop.permute.xlu1 %4131 }
0x1712   : > { %v4048_v7 = vadd.f32 %v4047_v20, %v4044_v21 }
0x1713   : > { %v4060_v36 = vsel %vm2061_vm12, %v4045_v43, 0.0 }
0x1714   : > { %v4049_v30 = vrot.slane %v4048_v7, 4  ;;  %v4061_v31 = vadd.f32 %v4060_v36, %v4059_v3 }
0x1715   : > { %v4148_v3 = vpop.permute.xlu1 %4147 }
0x1716   : > { %v4050_v1 = vadd.f32 %v4049_v30, %v4048_v7  ;;  %v4062_v11 = vrot.slane %v4061_v31, 4 }
0x1718   : > { %v4051_v4 = vrot.slane %v4050_v1, 2  ;;  %v4063_v47 = vadd.f32 %v4062_v11, %v4061_v31 }
0x171a   : > { %v4052_v41 = vadd.f32 %v4051_v4, %v4050_v1  ;;  %v4064_v16 = vrot.slane %v4063_v47, 2 }
0x171c   : > { %v4053_v0 = vrot.slane %v4052_v41, 1  ;;  %v4065_v49 = vadd.f32 %v4064_v16, %v4063_v47 }
0x171e   : > { %v4054_v62 = vadd.f32 %v4053_v0, %v4052_v41  ;;  %v4066_v34 = vrot.slane %v4065_v49, 1 }
0x1720   : > { %v4068_v17 = vmul.f32 0.03125, %v4054_v62  ;;  %v4067_v24 = vadd.f32 %v4066_v34, %v4065_v49 }
0x1722   : > { %v4074_v55 = vsub.f32 %v4042_v28, %v4068_v17  ;;  %v4076_v39 = vsub.f32 %v4044_v21, %v4068_v17  ;;  %v4069_v40 = vmul.f32 0.03125, %v4067_v24  ;;  %v4070_v8 = vsub.f32 %v4038_v52, %v4068_v17  ;;  %v4124_v21 = vpop.permute.xlu0 %4123 }
0x1723   : > { %v4072_v56 = vsub.f32 %v4040_v42, %v4068_v17 }
0x1724   : > { %v4075_v51 = vsub.f32 %v4043_v57, %v4069_v40  ;;  %v4077_v54 = vsub.f32 %v4045_v43, %v4069_v40  ;;  %v4071_v48 = vsub.f32 %v4039_v45, %v4069_v40  ;;  %v4073_v23 = vsub.f32 %v4041_v46, %v4069_v40  ;;  %v4156_v43 = vpop.permute.xlu1 %4155 }
0x1725   : > { %v4078_v13 = vmul.f32 %v4070_v8, %v4070_v8  ;;  %v4080_v26 = vmul.f32 %v4072_v56, %v4072_v56  ;;  %v4082_v50 = vmul.f32 %v4074_v55, %v4074_v55  ;;  %v4084_v44 = vmul.f32 %v4076_v39, %v4076_v39 }
0x1726   : > { %v4079_v9 = vmul.f32 %v4071_v48, %v4071_v48  ;;  %v4081_v27 = vmul.f32 %v4073_v23, %v4073_v23  ;;  %v4083_v60 = vmul.f32 %v4075_v51, %v4075_v51  ;;  %v4085_v6 = vmul.f32 %v4077_v54, %v4077_v54  ;;  %v4136_v7 = vpop.permute.xlu0 %4135 }
0x1727   : > { %v4086_v63 = vadd.f32 %v4080_v26, %v4078_v13 }
0x1728   : > { %v4095_v35 = vsel %vm2061_vm12, %v4079_v9, 0.0  ;;  %v4096_v33 = vsel %vm2061_vm12, %v4081_v27, 0.0  ;;  %v4098_v59 = vsel %vm2061_vm12, %v4083_v60, 0.0  ;;  %v4100_v46 = vsel %vm2061_vm12, %v4085_v6, 0.0  ;;  %v4160_v40 = vpop.permute.xlu1 %4159 }
0x1729   : > { %v4087_v32 = vadd.f32 %v4086_v63, %v4082_v50  ;;  %v4097_v52 = vadd.f32 %v4096_v33, %v4095_v35 }
0x172a   : > { %v4152_v4 = vpop.permute.xlu0 %4151 }
0x172b   : > { %v4088_v42 = vadd.f32 %v4087_v32, %v4084_v44  ;;  %v4099_v45 = vadd.f32 %v4098_v59, %v4097_v52 }
0x172d   : > { %v4089_v38 = vrot.slane %v4088_v42, 4  ;;  %v4101_v18 = vadd.f32 %v4100_v46, %v4099_v45 }
0x172f   : > { %v4090_v37 = vadd.f32 %v4089_v38, %v4088_v42  ;;  %v4102_v29 = vrot.slane %v4101_v18, 4 }
0x1731   : > { %v4091_v19 = vrot.slane %v4090_v37, 2  ;;  %v4103_v53 = vadd.f32 %v4102_v29, %v4101_v18 }
0x1733   : > { %v4092_v12 = vadd.f32 %v4091_v19, %v4090_v37  ;;  %v4104_v10 = vrot.slane %v4103_v53, 2 }
0x1735   : > { %v4093_v28 = vrot.slane %v4092_v12, 1  ;;  %v4105_v14 = vadd.f32 %v4104_v10, %v4103_v53 }
0x1737   : > { %v4094_v22 = vadd.f32 %v4093_v28, %v4092_v12  ;;  %v4106_v57 = vrot.slane %v4105_v14, 1 }
0x1739   : > { %v4108_v61 = vmul.f32 0.03125, %v4094_v22  ;;  %v4107_v20 = vadd.f32 %v4106_v57, %v4105_v14 }
0x173b   : > { %v4110_v58 = vadd.f32 1e-05, %v4108_v61  ;;  %v4109_v15 = vmul.f32 0.03125, %v4107_v20 }
0x173d   : > { %5366 = vrsqrt.f32 %v4110_v58  ;;  %v4111_v2 = vadd.f32 1e-05, %v4109_v15 }
0x173f   : > { %5368 = vrsqrt.f32 %v4111_v2 }
0x1747   : > { %v5367_v36 = vpop.eup %5366 }
0x1748   : > { %v4116_v30 = vmul.f32 %v5367_v36, %v4072_v56  ;;  %v4118_v31 = vmul.f32 %v5367_v36, %v4074_v55  ;;  %v4114_v1 = vmul.f32 %v5367_v36, %v4070_v8  ;;  %v4120_v11 = vmul.f32 %v5367_v36, %v4076_v39 }
0x1749   : > { %v5369_v47 = vpop.eup %5368 }
0x174a   : > { %v4140_v41 = vmul.f32 %v4128_v5, %v4116_v30  ;;  %v4142_v16 = vmul.f32 %v4132_v25, %v4118_v31  ;;  %v4138_v0 = vmul.f32 %v4124_v21, %v4114_v1  ;;  %v4144_v49 = vmul.f32 %v4136_v7, %v4120_v11 }
0x174b   : > { %v4117_v62 = vmul.f32 %v5369_v47, %v4073_v23  ;;  %v4119_v34 = vmul.f32 %v5369_v47, %v4075_v51  ;;  %v4115_v17 = vmul.f32 %v5369_v47, %v4071_v48  ;;  %v4121_v24 = vmul.f32 %v5369_v47, %v4077_v54 }
0x174c   : > { %v4162_v13 = vadd.f32 %v4148_v3, %v4138_v0  ;;  %v4166_v56 = vadd.f32 %v4156_v43, %v4142_v16  ;;  %v4168_v55 = vadd.f32 %v4160_v40, %v4144_v49  ;;  %v4164_v8 = vadd.f32 %v4152_v4, %v4140_v41 }
0x174d   : > { %v4141_v39 = vmul.f32 %v4128_v5, %v4117_v62  ;;  %v4143_v26 = vmul.f32 %v4132_v25, %v4119_v34  ;;  %v4139_v9 = vmul.f32 %v4124_v21, %v4115_v17  ;;  %v4145_v27 = vmul.f32 %v4136_v7, %v4121_v24 }
0x174e   : > { %4170 = vst [vmem:[%s404_s30] sm:$0xff] %v4162_v13  ;;  %4174 = vst [vmem:[%s404_s30 + $0x20] sm:$0xff] %v4166_v56 }
0x174f   : > { %4176 = vst [vmem:[%s404_s30 + $0x30] sm:$0xff] %v4168_v55  ;;  %4172 = vst [vmem:[%s404_s30 + $0x10] sm:$0xff] %v4164_v8  ;;  %v4163_v50 = vadd.f32 %v4148_v3, %v4139_v9  ;;  %v4167_v60 = vadd.f32 %v4156_v43, %v4143_v26  ;;  %v4169_v63 = vadd.f32 %v4160_v40, %v4145_v27 }
0x1750   : > { %v4165_v23 = vadd.f32 %v4152_v4, %v4141_v39 }
0x1751   : > { %4171 = vst.msk [vmem:[%s404_s30 + $0x8] sm:$0xff] %vm2061_vm12, %v4163_v50  ;;  %4175 = vst.msk [vmem:[%s404_s30 + $0x28] sm:$0xff] %vm2061_vm12, %v4167_v60 }
0x1752   : > { %4177 = vst.msk [vmem:[%s404_s30 + $0x38] sm:$0xff] %vm2061_vm12, %v4169_v63  ;;  %4173 = vst.msk [vmem:[%s404_s30 + $0x18] sm:$0xff] %vm2061_vm12, %v4165_v23 }
0x1753 PF: > { %s21_s13 = sadd.s32 1, %s5382_s13  }
0x1754   : > { %p18_p4 = scmp.ge.s32.totalorder %s21_s13, 4  }
0x1756   :  { %20 = sbr.rel (!%p18_p4) target bundleno = 1 (0x1), region = 111 }

</bundles_post_ra>
